<compile_context>
chip_gen: v6e
topology: v6e:2x2x1
jax: 0.10.0
libtpu: 0.0.40
codegen_flags: <defaults>
</compile_context>

<pallas_src>
import math
import functools

import jax
import jax.numpy as jnp
from jax.experimental import pallas as pl
from jax.experimental.pallas import tpu as pltpu


# ----------------------------- device / budget helpers ---------------------------------

def _device_kind():
    try:
        return jax.devices()[0].device_kind.lower()
    except Exception:
        return ""


_KIND = _device_kind()
_BIG_VMEM = ("v5" in _KIND) or ("v6" in _KIND)          # 128 MiB physical VMEM
_VMEM_LIMIT = (96 << 20) if _BIG_VMEM else (48 << 20)   # v7x: 64 MiB physical -> stay <=48
_LIVE_BUDGET = (56 << 20) if _BIG_VMEM else (28 << 20)  # live-set budget for query tiling


def _cparams(*sem):
    return pltpu.CompilerParams(dimension_semantics=tuple(sem),
                                vmem_limit_bytes=_VMEM_LIMIT)


# ----------------------------- tiling helpers -------------------------------------------

def _flatten_rows(x):
    K = int(x.shape[-1])
    lead = x.shape[:-1]
    M = 1
    for d in lead:
        M *= int(d)
    return x.reshape(M, K), lead, M


def _pick_row_tile(m, row_bytes, target=1024, budget=8 << 20):
    """Largest row tile <= target that fits the budget; full-dim if m is small."""
    cap = min(target, max(8, budget // max(1, row_bytes)))
    cap = max(8, (cap // 8) * 8)
    return m if m <= cap else cap


def _pick_query_tile(n, row_bytes, fixed_bytes, budget):
    """Multiple-of-8 query tile (or n itself when small). Need not divide n: the fused
    kernel masks ragged rows with an in-kernel validity mask, so no tq=n fallback."""
    avail = max(budget - fixed_bytes, 1 << 20)
    cap = max(8, avail // max(1, row_bytes))
    cap = max(8, (cap // 8) * 8)
    cap = min(cap, 512)
    if n <= cap:
        return n
    best = 0
    t = 8
    while t <= cap:
        if n % t == 0:
            best = t
        t += 8
    return best if best > 0 else cap


# ----------------------------- Pallas kernels -------------------------------------------

def _linear_kernel(x_ref, w_ref, b_ref, o_ref, *, relu):
    acc = jnp.dot(x_ref[...].astype(jnp.bfloat16), w_ref[...],
                  preferred_element_type=jnp.float32) + b_ref[...]
    if relu:
        acc = jnp.maximum(acc, 0.0)
    o_ref[...] = acc.astype(o_ref.dtype)


def _mlp2_kernel(x_ref, w1_ref, b1_ref, w2_ref, b2_ref, o_ref, *, relu_last):
    h = jnp.dot(x_ref[...].astype(jnp.bfloat16), w1_ref[...],
                preferred_element_type=jnp.float32) + b1_ref[...]
    h = jnp.maximum(h, 0.0)
    o = jnp.dot(h.astype(jnp.bfloat16), w2_ref[...],
                preferred_element_type=jnp.float32) + b2_ref[...]
    if relu_last:
        o = jnp.maximum(o, 0.0)
    o_ref[...] = o.astype(o_ref.dtype)


def _add_ln_kernel(a_ref, b_ref, g_ref, beta_ref, o_ref, *, eps):
    x = a_ref[...].astype(jnp.float32) + b_ref[...].astype(jnp.float32)
    mean = jnp.mean(x, axis=-1, keepdims=True)
    var = jnp.mean((x - mean) ** 2, axis=-1, keepdims=True)
    inv = jax.lax.rsqrt(var + eps)
    o_ref[...] = ((x - mean) * inv * g_ref[...] + beta_ref[...]).astype(o_ref.dtype)


def _ffn_ln_kernel(x_ref, w1_ref, b1_ref, w2_ref, b2_ref, g_ref, beta_ref, o_ref, *, eps):
    # LayerNorm(x + W2 @ relu(W1 @ x + b1) + b2), bf16 MXU operands, f32 residual.
    x = x_ref[...].astype(jnp.float32)
    h = jnp.dot(x.astype(jnp.bfloat16), w1_ref[...],
                preferred_element_type=jnp.float32) + b1_ref[...]
    h = jnp.maximum(h, 0.0)
    f = jnp.dot(h.astype(jnp.bfloat16), w2_ref[...],
                preferred_element_type=jnp.float32) + b2_ref[...]
    r = x + f
    mean = jnp.mean(r, axis=-1, keepdims=True)
    var = jnp.mean((r - mean) ** 2, axis=-1, keepdims=True)
    inv = jax.lax.rsqrt(var + eps)
    o_ref[...] = ((r - mean) * inv * g_ref[...] + beta_ref[...]).astype(o_ref.dtype)


def _fused_attn_e_kernel(q_ref, kv_ref, e_ref, film_ref, mq_ref, mk_ref,
                         we12_ref, be12_ref, weo_ref, beo_ref, wxo_ref, bxo_ref,
                         g1_ref, bt1_ref, wf1_ref, bf1_ref, wf2_ref, bf2_ref,
                         g2_ref, bt2_ref,
                         newE_ref, newX_ref, stats_ref,
                         *, dx, inv_sqrt_df, n_total, tq, eps):
    qi = pl.program_id(1)

    qm = mq_ref[0]                                        # (tq, 1) query-node mask
    km = mk_ref[0]                                        # (n, 1)  key-node mask

    # Valid-row mask for ragged last query tiles (tq need not divide n).
    row = jax.lax.broadcasted_iota(jnp.int32, (tq, 1), 0) + qi * tq
    rvalid = (row < n_total).astype(jnp.float32)          # (tq, 1)

    q = q_ref[0].astype(jnp.float32) * qm                 # (tq, dx)
    kv = kv_ref[0].astype(jnp.float32)                    # (n, 2dx)
    k = kv[:, 0:dx] * km
    v = kv[:, dx:2 * dx] * km

    e_in = e_ref[0].astype(jnp.float32)                   # (tq, n, de)
    _, n, de = e_in.shape
    emask = qm[:, None, :] * km[None, :, :]               # (tq, n, 1)

    # --- pooled statistics of the *input* E tile (sum / min / max / sum-of-squares) ----
    rmask = rvalid[:, None, :]                            # (tq, 1, 1)
    ev = (e_in * rmask).reshape(tq * n, de)
    s = jnp.sum(ev, axis=0, keepdims=True)
    sq = jnp.sum(ev * ev, axis=0, keepdims=True)
    mn = jnp.min(jnp.where(rmask > 0.0, e_in, jnp.float32(jnp.inf)).reshape(tq * n, de),
                 axis=0, keepdims=True)
    mx = jnp.max(jnp.where(rmask > 0.0, e_in, jnp.float32(-jnp.inf)).reshape(tq * n, de),
                 axis=0, keepdims=True)
    stats_ref[...] = jnp.concatenate([s, mn, mx, sq], axis=0)[None, None]

    # --- E1/E2 projection (e_mul|e_add fused, bf16 MXU operands, f32 accumulate) --------
    e12 = jnp.dot(e_in.reshape(tq * n, de).astype(jnp.bfloat16), we12_ref[...],
                  preferred_element_type=jnp.float32) + be12_ref[...]
    e12 = e12.reshape(tq, n, 2 * dx)
    e1 = e12[:, :, 0:dx] * emask
    e2 = e12[:, :, dx:2 * dx] * emask

    # Y = (Q * K / sqrt(df)) * (E1 + 1) + E2   (per-feature; heads partition the features)
    y = (q[:, None, :] * k[None, :, :]) * inv_sqrt_df
    y = y * (e1 + 1.0) + e2                               # (tq, n, dx)

    film = film_ref[0]                                    # (1, 4dx)
    ye_add = film[:, 0:dx]
    ye_mul = film[:, dx:2 * dx]
    yx_add = film[:, 2 * dx:3 * dx]
    yx_mul = film[:, 3 * dx:4 * dx]

    # --- newE = e_out(ye_add + (ye_mul + 1) * Y) * mask ---------------------------------
    newe = ye_add + (ye_mul + 1.0) * y
    newe = jnp.dot(newe.reshape(tq * n, dx).astype(jnp.bfloat16), weo_ref[...],
                   preferred_element_type=jnp.float32) + beo_ref[...]
    newe = newe.reshape(tq, n, de) * emask

    # --- fused residual + normE1 --------------------------------------------------------
    r = e_in + newe
    mean = jnp.mean(r, axis=-1, keepdims=True)
    var = jnp.mean((r - mean) ** 2, axis=-1, keepdims=True)
    e_ln1 = (r - mean) * jax.lax.rsqrt(var + eps) * g1_ref[...] + bt1_ref[...]

    # --- fused E feed-forward + normE2 (no (bs,n,n,*) HBM round trip) -------------------
    h = jnp.dot(e_ln1.reshape(tq * n, de).astype(jnp.bfloat16), wf1_ref[...],
                preferred_element_type=jnp.float32) + bf1_ref[...]
    h = jnp.maximum(h, 0.0)
    f = jnp.dot(h.astype(jnp.bfloat16), wf2_ref[...],
                preferred_element_type=jnp.float32) + bf2_ref[...]
    r2 = e_ln1 + f.reshape(tq, n, de)
    mean2 = jnp.mean(r2, axis=-1, keepdims=True)
    var2 = jnp.mean((r2 - mean2) ** 2, axis=-1, keepdims=True)
    e_out = (r2 - mean2) * jax.lax.rsqrt(var2 + eps) * g2_ref[...] + bt2_ref[...]
    newE_ref[...] = e_out[None].astype(newE_ref.dtype)

    # --- masked softmax over keys (NaN-safe) + attn*V + x_out ---------------------------
    ym = jnp.where(km[None, :, :] > 0.0, y, jnp.float32(-1e30))
    m_ = jnp.max(ym, axis=1, keepdims=True)
    ex = jnp.exp(ym - m_) * km[None, :, :]
    denom = jnp.sum(ex, axis=1, keepdims=True)
    attn = ex * pl.reciprocal(jnp.maximum(denom, 1e-30), approx=True)
    wv = jnp.sum(attn * v[None, :, :], axis=1)            # (tq, dx)

    newx = yx_add + (yx_mul + 1.0) * wv
    newx = jnp.dot(newx.astype(jnp.bfloat16), wxo_ref[...],
                   preferred_element_type=jnp.float32) + bxo_ref[...]
    newX_ref[...] = (newx * qm)[None].astype(newX_ref.dtype)


# ----------------------------- kernel wrappers ------------------------------------------

def linear_pallas(x, p, relu=False, out_dtype=jnp.float32):
    """y = x @ wT + b with prepared {'wT': (K,N) bf16, 'b': (1,N) f32}."""
    x2, lead, M = _flatten_rows(x)
    K = x2.shape[1]
    N = int(p["wT"].shape[1])
    TM = _pick_row_tile(M, (K + N) * 4)
    out = pl.pallas_call(
        functools.partial(_linear_kernel, relu=relu),
        out_shape=jax.ShapeDtypeStruct((M, N), out_dtype),
        grid=(pl.cdiv(M, TM),),
        in_specs=[
            pl.BlockSpec((TM, K), lambda i: (i, 0)),
            pl.BlockSpec((K, N), lambda i: (0, 0)),
            pl.BlockSpec((1, N), lambda i: (0, 0)),
        ],
        out_specs=pl.BlockSpec((TM, N), lambda i: (i, 0)),
        compiler_params=_cparams("parallel"),
    )(x2, p["wT"], p["b"])
    return out.reshape(*lead, N)


def mlp2_pallas(x, p1, p2, relu_last, out_dtype=jnp.float32):
    """Fused Linear -> ReLU -> Linear (-> optional ReLU) with prepared weights."""
    x2, lead, M = _flatten_rows(x)
    K = x2.shape[1]
    H = int(p1["wT"].shape[1])
    N = int(p2["wT"].shape[1])
    TM = _pick_row_tile(M, (K + H + N) * 4)
    out = pl.pallas_call(
        functools.partial(_mlp2_kernel, relu_last=relu_last),
        out_shape=jax.ShapeDtypeStruct((M, N), out_dtype),
        grid=(pl.cdiv(M, TM),),
        in_specs=[
            pl.BlockSpec((TM, K), lambda i: (i, 0)),
            pl.BlockSpec((K, H), lambda i: (0, 0)),
            pl.BlockSpec((1, H), lambda i: (0, 0)),
            pl.BlockSpec((H, N), lambda i: (0, 0)),
            pl.BlockSpec((1, N), lambda i: (0, 0)),
        ],
        out_specs=pl.BlockSpec((TM, N), lambda i: (i, 0)),
        compiler_params=_cparams("parallel"),
    )(x2, p1["wT"], p1["b"], p2["wT"], p2["b"])
    return out.reshape(*lead, N)


def add_layernorm_pallas(a, b, ln, eps=1e-5):
    """LayerNorm(a + b) in one pass; ln = {'g': (1,D), 'bt': (1,D)}."""
    a2, lead, M = _flatten_rows(a)
    b2, _, _ = _flatten_rows(b)
    D = a2.shape[1]
    TM = _pick_row_tile(M, 2 * D * 4)
    out = pl.pallas_call(
        functools.partial(_add_ln_kernel, eps=eps),
        out_shape=jax.ShapeDtypeStruct((M, D), jnp.float32),
        grid=(pl.cdiv(M, TM),),
        in_specs=[
            pl.BlockSpec((TM, D), lambda i: (i, 0)),
            pl.BlockSpec((TM, D), lambda i: (i, 0)),
            pl.BlockSpec((1, D), lambda i: (0, 0)),
            pl.BlockSpec((1, D), lambda i: (0, 0)),
        ],
        out_specs=pl.BlockSpec((TM, D), lambda i: (i, 0)),
        compiler_params=_cparams("parallel"),
    )(a2, b2, ln["g"], ln["bt"])
    return out.reshape(*lead, D)


def ffn_layernorm_pallas(x, ffn, eps=1e-5):
    """LayerNorm(x + lin2(relu(lin1(x)))) fully fused."""
    x2, lead, M = _flatten_rows(x)
    D = x2.shape[1]
    F = int(ffn["w1T"].shape[1])
    TM = _pick_row_tile(M, (2 * D + F) * 4)
    out = pl.pallas_call(
        functools.partial(_ffn_ln_kernel, eps=eps),
        out_shape=jax.ShapeDtypeStruct((M, D), jnp.float32),
        grid=(pl.cdiv(M, TM),),
        in_specs=[
            pl.BlockSpec((TM, D), lambda i: (i, 0)),
            pl.BlockSpec((D, F), lambda i: (0, 0)),
            pl.BlockSpec((1, F), lambda i: (0, 0)),
            pl.BlockSpec((F, D), lambda i: (0, 0)),
            pl.BlockSpec((1, D), lambda i: (0, 0)),
            pl.BlockSpec((1, D), lambda i: (0, 0)),
            pl.BlockSpec((1, D), lambda i: (0, 0)),
        ],
        out_specs=pl.BlockSpec((TM, D), lambda i: (i, 0)),
        compiler_params=_cparams("parallel"),
    )(x2, ffn["w1T"], ffn["b1"], ffn["w2T"], ffn["b2"], ffn["g"], ffn["bt"])
    return out.reshape(*lead, D)


def fused_attention_layer_E(q, kv, E, film, node_mask, fe, n_head, eps=1e-5):
    """Fused NodeEdgeBlock + E residual/LN + E FFN/LN + pooled E stats.

    q:    (bs, n, dx)     f32 Q projection (unmasked; masked in-kernel)
    kv:   (bs, n, 2dx)    f32 K|V projections
    E:    (bs, n, n, de)  bf16 hidden edge features (layer input)
    film: (bs, 1, 4dx)    f32 y_e_add|y_e_mul|y_x_add|y_x_mul projections of y
    Returns newX (bs,n,dx) f32, E_new (bs,n,n,de) bf16 (post normE2),
            stats (bs, nq, 4, de) f32 partial [sum, min, max, sumsq].
    """
    bs, n, dx = q.shape
    de = int(E.shape[-1])
    dim_ffE = int(fe["wf1"].shape[1])
    df = dx // n_head

    mask3 = node_mask.astype(jnp.float32).reshape(bs, n, 1)

    # Live-set estimate: f32 (tq,n,*) temporaries dominate; weights + resident KV fixed.
    row_bytes = 4 * n * (6 * dx + 6 * de + dim_ffE) + 16 * dx
    fixed_bytes = (2 * (de * 2 * dx + dx * de + dx * dx + de * dim_ffE + dim_ffE * de) * 2
                   + 2 * (n * 2 * dx * 4) + 2 * (n * de * 2))
    tq = _pick_query_tile(n, row_bytes, fixed_bytes, _LIVE_BUDGET)
    nq = pl.cdiv(n, tq)

    kernel = functools.partial(_fused_attn_e_kernel, dx=dx,
                               inv_sqrt_df=1.0 / math.sqrt(df),
                               n_total=n, tq=tq, eps=eps)
    newE, newX, stats = pl.pallas_call(
        kernel,
        out_shape=(jax.ShapeDtypeStruct((bs, n, n, de), jnp.bfloat16),
                   jax.ShapeDtypeStruct((bs, n, dx), jnp.float32),
                   jax.ShapeDtypeStruct((bs, nq, 4, de), jnp.float32)),
        grid=(bs, nq),
        in_specs=[
            pl.BlockSpec((1, tq, dx), lambda b, qi: (b, qi, 0)),            # Q (query tile)
            pl.BlockSpec((1, n, 2 * dx), lambda b, qi: (b, 0, 0)),          # K|V (all keys)
            pl.BlockSpec((1, tq, n, de), lambda b, qi: (b, qi, 0, 0)),      # E tile (bf16)
            pl.BlockSpec((1, 1, 4 * dx), lambda b, qi: (b, 0, 0)),          # y FiLM vectors
            pl.BlockSpec((1, tq, 1), lambda b, qi: (b, qi, 0)),             # query-node mask
            pl.BlockSpec((1, n, 1), lambda b, qi: (b, 0, 0)),               # key-node mask
            pl.BlockSpec((de, 2 * dx), lambda b, qi: (0, 0)),               # e_mul|e_add W^T
            pl.BlockSpec((1, 2 * dx), lambda b, qi: (0, 0)),
            pl.BlockSpec((dx, de), lambda b, qi: (0, 0)),                   # e_out W^T
            pl.BlockSpec((1, de), lambda b, qi: (0, 0)),
            pl.BlockSpec((dx, dx), lambda b, qi: (0, 0)),                   # x_out W^T
            pl.BlockSpec((1, dx), lambda b, qi: (0, 0)),
            pl.BlockSpec((1, de), lambda b, qi: (0, 0)),                    # normE1 gamma
            pl.BlockSpec((1, de), lambda b, qi: (0, 0)),                    # normE1 beta
            pl.BlockSpec((de, dim_ffE), lambda b, qi: (0, 0)),              # linE1 W^T
            pl.BlockSpec((1, dim_ffE), lambda b, qi: (0, 0)),
            pl.BlockSpec((dim_ffE, de), lambda b, qi: (0, 0)),              # linE2 W^T
            pl.BlockSpec((1, de), lambda b, qi: (0, 0)),
            pl.BlockSpec((1, de), lambda b, qi: (0, 0)),                    # normE2 gamma
            pl.BlockSpec((1, de), lambda b, qi: (0, 0)),                    # normE2 beta
        ],
        out_specs=(
            pl.BlockSpec((1, tq, n, de), lambda b, qi: (b, qi, 0, 0)),
            pl.BlockSpec((1, tq, dx), lambda b, qi: (b, qi, 0)),
            pl.BlockSpec((1, 1, 4, de), lambda b, qi: (b, qi, 0, 0)),
        ),
        compiler_params=_cparams("parallel", "parallel"),
    )(q, kv, E, film, mask3, mask3,
      fe["w_e12"], fe["b_e12"], fe["w_eo"], fe["b_eo"], fe["w_xo"], fe["b_xo"],
      fe["g1"], fe["bt1"], fe["wf1"], fe["bf1"], fe["wf2"], fe["bf2"],
      fe["g2"], fe["bt2"])
    return newX, newE, stats


# ----------------------------- parameters -----------------------------------------------

def init_linear(key, in_f, out_f):
    kw, kb = jax.random.split(key)
    bound = 1.0 / math.sqrt(in_f)
    w = jax.random.uniform(kw, (out_f, in_f), jnp.float32, -bound, bound)
    b = jax.random.uniform(kb, (out_f,), jnp.float32, -bound, bound)
    return {"w": w, "b": b}


def init_layernorm(d):
    return {"g": jnp.ones((d,), jnp.float32), "b": jnp.zeros((d,), jnp.float32)}


def init_graph_transformer(key, n_layers, input_dims, hidden_mlp_dims, hidden_dims,
                           output_dims, dim_ffy):
    dx, de, dy = hidden_dims["dx"], hidden_dims["de"], hidden_dims["dy"]
    keys = iter(jax.random.split(key, 64 + 32 * n_layers))
    P = {}
    P["mlp_in_X"] = [init_linear(next(keys), input_dims["X"], hidden_mlp_dims["X"]),
                     init_linear(next(keys), hidden_mlp_dims["X"], dx)]
    P["mlp_in_E"] = [init_linear(next(keys), input_dims["E"], hidden_mlp_dims["E"]),
                     init_linear(next(keys), hidden_mlp_dims["E"], de)]
    P["mlp_in_y"] = [init_linear(next(keys), input_dims["y"] + 64, hidden_mlp_dims["y"]),
                     init_linear(next(keys), hidden_mlp_dims["y"], dy)]
    P["layers"] = []
    for _ in range(n_layers):
        sa = {}
        for name in ("q", "k", "v", "x_out"):
            sa[name] = init_linear(next(keys), dx, dx)
        sa["e_add"] = init_linear(next(keys), de, dx)
        sa["e_mul"] = init_linear(next(keys), de, dx)
        for name in ("y_e_mul", "y_e_add", "y_x_mul", "y_x_add"):
            sa[name] = init_linear(next(keys), dy, dx)
        sa["y_y"] = init_linear(next(keys), dy, dy)
        sa["x_y"] = init_linear(next(keys), 4 * dx, dy)
        sa["e_y"] = init_linear(next(keys), 4 * de, dy)
        sa["e_out"] = init_linear(next(keys), dx, de)
        sa["y_out"] = [init_linear(next(keys), dy, dy), init_linear(next(keys), dy, dy)]
        L = {"self_attn": sa,
             "linX1": init_linear(next(keys), dx, hidden_dims["dim_ffX"]),
             "linX2": init_linear(next(keys), hidden_dims["dim_ffX"], dx),
             "linE1": init_linear(next(keys), de, hidden_dims["dim_ffE"]),
             "linE2": init_linear(next(keys), hidden_dims["dim_ffE"], de),
             "lin_y1": init_linear(next(keys), dy, dim_ffy),
             "lin_y2": init_linear(next(keys), dim_ffy, dy),
             "normX1": init_layernorm(dx), "normX2": init_layernorm(dx),
             "normE1": init_layernorm(de), "normE2": init_layernorm(de),
             "norm_y1": init_layernorm(dy), "norm_y2": init_layernorm(dy)}
        P["layers"].append(L)
    P["mlp_out_X"] = [init_linear(next(keys), dx, hidden_mlp_dims["X"]),
                      init_linear(next(keys), hidden_mlp_dims["X"], output_dims["X"])]
    P["mlp_out_E"] = [init_linear(next(keys), de, hidden_mlp_dims["E"]),
                      init_linear(next(keys), hidden_mlp_dims["E"], output_dims["E"])]
    P["mlp_out_y"] = [init_linear(next(keys), dy, hidden_mlp_dims["y"]),
                      init_linear(next(keys), hidden_mlp_dims["y"], output_dims["y"])]
    return P


def prepare_params(P):
    """One-time weight fusion / transpose / bf16 cast (hoisted out of the forward)."""
    def prep_lin(p):
        return {"wT": jnp.transpose(p["w"]).astype(jnp.bfloat16),
                "b": p["b"].reshape(1, -1)}

    Q = {}
    for name in ("mlp_in_X", "mlp_in_E", "mlp_out_X", "mlp_out_E"):
        Q[name] = [prep_lin(P[name][0]), prep_lin(P[name][1])]
    for name in ("mlp_in_y", "mlp_out_y"):
        Q[name] = P[name]                       # tiny (M = bs): plain XLA, keep raw

    layers = []
    for L in P["layers"]:
        sa = L["self_attn"]
        lp = {
            "q": prep_lin(sa["q"]),
            "kv": {"wT": jnp.transpose(jnp.concatenate([sa["k"]["w"], sa["v"]["w"]], 0)
                                       ).astype(jnp.bfloat16),
                   "b": jnp.concatenate([sa["k"]["b"], sa["v"]["b"]]).reshape(1, -1)},
            "w_yp": jnp.transpose(jnp.concatenate(
                [sa["y_e_add"]["w"], sa["y_e_mul"]["w"], sa["y_x_add"]["w"],
                 sa["y_x_mul"]["w"], sa["y_y"]["w"]], 0)),
            "b_yp": jnp.concatenate(
                [sa["y_e_add"]["b"], sa["y_e_mul"]["b"], sa["y_x_add"]["b"],
                 sa["y_x_mul"]["b"], sa["y_y"]["b"]]),
            "fusedE": {
                "w_e12": jnp.transpose(jnp.concatenate([sa["e_mul"]["w"], sa["e_add"]["w"]],
                                                       0)).astype(jnp.bfloat16),
                "b_e12": jnp.concatenate([sa["e_mul"]["b"], sa["e_add"]["b"]]).reshape(1, -1),
                "w_eo": jnp.transpose(sa["e_out"]["w"]).astype(jnp.bfloat16),
                "b_eo": sa["e_out"]["b"].reshape(1, -1),
                "w_xo": jnp.transpose(sa["x_out"]["w"]).astype(jnp.bfloat16),
                "b_xo": sa["x_out"]["b"].reshape(1, -1),
                "g1": L["normE1"]["g"].reshape(1, -1), "bt1": L["normE1"]["b"].reshape(1, -1),
                "wf1": jnp.transpose(L["linE1"]["w"]).astype(jnp.bfloat16),
                "bf1": L["linE1"]["b"].reshape(1, -1),
                "wf2": jnp.transpose(L["linE2"]["w"]).astype(jnp.bfloat16),
                "bf2": L["linE2"]["b"].reshape(1, -1),
                "g2": L["normE2"]["g"].reshape(1, -1), "bt2": L["normE2"]["b"].reshape(1, -1),
            },
            "normX1": {"g": L["normX1"]["g"].reshape(1, -1),
                       "bt": L["normX1"]["b"].reshape(1, -1)},
            "ffnX": {"w1T": jnp.transpose(L["linX1"]["w"]).astype(jnp.bfloat16),
                     "b1": L["linX1"]["b"].reshape(1, -1),
                     "w2T": jnp.transpose(L["linX2"]["w"]).astype(jnp.bfloat16),
                     "b2": L["linX2"]["b"].reshape(1, -1),
                     "g": L["normX2"]["g"].reshape(1, -1),
                     "bt": L["normX2"]["b"].reshape(1, -1)},
            "x_y": sa["x_y"], "e_y": sa["e_y"], "y_out": sa["y_out"],
            "lin_y1": L["lin_y1"], "lin_y2": L["lin_y2"],
            "norm_y1": L["norm_y1"], "norm_y2": L["norm_y2"],
        }
        layers.append(lp)
    Q["layers"] = layers
    return Q


# ----------------------------- forward pass ---------------------------------------------

def timestep_embedding(timesteps, dim, max_period=10000):
    half = dim // 2
    freqs = jnp.exp(-math.log(max_period) * jnp.arange(half, dtype=jnp.float32) / half)
    args = timesteps.astype(jnp.float32) * freqs[None]
    emb = jnp.concatenate([jnp.cos(args), jnp.sin(args)], axis=-1)
    if dim % 2:
        emb = jnp.concatenate([emb, jnp.zeros_like(emb[:, :1])], axis=-1)
    return emb


def _layer_norm(x, g, b, eps=1e-5):
    m = jnp.mean(x, axis=-1, keepdims=True)
    v = jnp.mean((x - m) ** 2, axis=-1, keepdims=True)
    return (x - m) * jax.lax.rsqrt(v + eps) * g + b


def xey_layer(L, X, E, y, node_mask, n_head, eps=1e-5):
    # Dropout layers / checkpoint are identity for the forward pass (eval semantics).
    bs, n, dx = X.shape

    # Lane-dense X projections (Pallas): Q separate from K|V (no unused DMA bytes).
    q = linear_pallas(X, L["q"])
    kv = linear_pallas(X, L["kv"])

    # Tiny y projections (M = bs): plain XLA.
    yproj = jnp.dot(y, L["w_yp"]) + L["b_yp"]                    # (bs, 4dx + dy)
    film = yproj[:, :4 * dx].reshape(bs, 1, 4 * dx)
    y_y = yproj[:, 4 * dx:]

    # ONE fused kernel: E1/E2 + FiLM + e_out, +res +normE1, E-FFN +normE2,
    # masked softmax + attn*V + x_out, pooled E statistics.
    newX, E_new, estats = fused_attention_layer_E(q, kv, E, film, node_mask,
                                                  L["fusedE"], n_head, eps)

    # X path: residual+LN then fused FFN+LN (Pallas).
    Xr = add_layernorm_pallas(X, newX, L["normX1"], eps)
    X_new = ffn_layernorm_pallas(Xr, L["ffnX"], eps)

    # y path (tiny, plain XLA).
    zx = jnp.concatenate([jnp.mean(X, axis=1), jnp.min(X, axis=1),
                          jnp.max(X, axis=1), jnp.std(X, axis=1, ddof=1)], axis=-1)
    x_y = jnp.dot(zx, L["x_y"]["w"].T) + L["x_y"]["b"]

    s = jnp.sum(estats[:, :, 0, :], axis=1)
    mn = jnp.min(estats[:, :, 1, :], axis=1)
    mx = jnp.max(estats[:, :, 2, :], axis=1)
    sq = jnp.sum(estats[:, :, 3, :], axis=1)
    cnt = jnp.float32(n * n)
    mean_e = s / cnt
    var_e = jnp.maximum(sq - s * s / cnt, 0.0) / (cnt - 1.0)     # ddof=1
    ze = jnp.concatenate([mean_e, mn, mx, jnp.sqrt(var_e)], axis=-1)
    e_y = jnp.dot(ze, L["e_y"]["w"].T) + L["e_y"]["b"]

    new_y = y_y + x_y + e_y
    h = jnp.maximum(jnp.dot(new_y, L["y_out"][0]["w"].T) + L["y_out"][0]["b"], 0.0)
    new_y = jnp.dot(h, L["y_out"][1]["w"].T) + L["y_out"][1]["b"]

    y1 = _layer_norm(y + new_y, L["norm_y1"]["g"], L["norm_y1"]["b"], eps)
    ffy = jnp.dot(jnp.maximum(jnp.dot(y1, L["lin_y1"]["w"].T) + L["lin_y1"]["b"], 0.0),
                  L["lin_y2"]["w"].T) + L["lin_y2"]["b"]
    y_new = _layer_norm(y1 + ffy, L["norm_y2"]["g"], L["norm_y2"]["b"], eps)

    return X_new, E_new, y_new


def graph_transformer_forward(P, X, E, y, node_mask, *, n_head,
                              out_dim_X, out_dim_E, out_dim_y):
    bs, n = X.shape[0], X.shape[1]
    diag_mask = (1.0 - jnp.eye(n, dtype=X.dtype))[None, :, :, None]   # (1, n, n, 1)

    X_to_out = X[..., :out_dim_X]
    E_to_out = E[..., :out_dim_E]
    y_to_out = y[..., :out_dim_y]

    # Hidden E activations live in bf16 in HBM (E dominates memory traffic).
    new_E = mlp2_pallas(E, P["mlp_in_E"][0], P["mlp_in_E"][1], relu_last=True,
                        out_dtype=jnp.bfloat16)
    new_E = (new_E + jnp.swapaxes(new_E, 1, 2)) * 0.5

    t_emb = timestep_embedding(y[:, -1:], 64)
    y_in = jnp.concatenate([y, t_emb], axis=-1)

    Xh = mlp2_pallas(X, P["mlp_in_X"][0], P["mlp_in_X"][1], relu_last=True)
    yh = jnp.maximum(jnp.dot(y_in, P["mlp_in_y"][0]["w"].T) + P["mlp_in_y"][0]["b"], 0.0)
    yh = jnp.maximum(jnp.dot(yh, P["mlp_in_y"][1]["w"].T) + P["mlp_in_y"][1]["b"], 0.0)

    x_mask = node_mask[..., None]
    e_mask1 = x_mask[:, :, None, :]
    e_mask2 = x_mask[:, None, :, :]
    Xh = Xh * x_mask
    Eh = (new_E * (e_mask1 * e_mask2)).astype(jnp.bfloat16)

    # torch.utils.checkpoint is a training-memory optimization; forward math identical.
    for layer in P["layers"]:
        Xh, Eh, yh = xey_layer(layer, Xh, Eh, yh, node_mask, n_head)

    Xo = mlp2_pallas(Xh, P["mlp_out_X"][0], P["mlp_out_X"][1], relu_last=False)
    Eo = mlp2_pallas(Eh, P["mlp_out_E"][0], P["mlp_out_E"][1], relu_last=False)
    yo = jnp.dot(jnp.maximum(jnp.dot(yh, P["mlp_out_y"][0]["w"].T) + P["mlp_out_y"][0]["b"],
                             0.0),
                 P["mlp_out_y"][1]["w"].T) + P["mlp_out_y"][1]["b"]

    Xo = Xo + X_to_out
    Eo = (Eo + E_to_out) * diag_mask
    yo = yo + y_to_out
    Eo = 0.5 * (Eo + jnp.swapaxes(Eo, 1, 2))

    # final PlaceHolder.mask
    Xo = Xo * x_mask
    Eo = Eo * e_mask1 * e_mask2
    return Xo, Eo, yo


# ----------------------------- demo ------------------------------------------------------

if __name__ == "__main__":
    bs, n = 2, 8
    input_dims = {"X": 4, "E": 2, "y": 1}
    hidden_mlp_dims = {"X": 16, "E": 8, "y": 16}
    hidden_dims = {"dx": 32, "de": 16, "dy": 16, "n_head": 4,
                   "dim_ffX": 64, "dim_ffE": 32}
    dim_ffy = 2048  # XEyTransformerLayer default (GraphTransformer never overrides it)
    output_dims = {"X": 4, "E": 2, "y": 1}
    n_layers = 2

    key = jax.random.PRNGKey(0)
    kp, kx, ke, ky = jax.random.split(key, 4)
    raw_params = init_graph_transformer(kp, n_layers, input_dims, hidden_mlp_dims,
                                        hidden_dims, output_dims, dim_ffy)
    params = prepare_params(raw_params)   # one-time weight fusion/transpose/bf16 cast

    X = jax.random.normal(kx, (bs, n, input_dims["X"]), jnp.float32)
    E = jax.random.normal(ke, (bs, n, n, input_dims["E"]), jnp.float32)
    E = 0.5 * (E + jnp.swapaxes(E, 1, 2))
    y = jax.random.normal(ky, (bs, input_dims["y"]), jnp.float32)
    node_mask = jnp.array([[1.0] * n, [1.0] * 6 + [0.0] * 2], jnp.float32)

    fwd = jax.jit(functools.partial(graph_transformer_forward,
                                    n_head=hidden_dims["n_head"],
                                    out_dim_X=output_dims["X"],
                                    out_dim_E=output_dims["E"],
                                    out_dim_y=output_dims["y"]))
    Xo, Eo, yo = fwd(params, X, E, y, node_mask)
    jax.block_until_ready((Xo, Eo, yo))

    assert Xo.shape == (bs, n, output_dims["X"])
    assert Eo.shape == (bs, n, n, output_dims["E"])
    assert yo.shape == (bs, output_dims["y"])
    assert bool(jnp.all(jnp.isfinite(Xo)))
    assert bool(jnp.all(jnp.isfinite(Eo)))
    assert bool(jnp.all(jnp.isfinite(yo)))
    print("KERNEL_OK")
</pallas_src>

<mosaic_0001>
module attributes {stable_mosaic.version = 11 : i64} {
  func.func @_mlp2_kernel(%arg0: i32, %arg1: memref<16x4xf32, #tpu.memory_space<vmem>>, %arg2: memref<4x16xbf16, #tpu.memory_space<vmem>>, %arg3: memref<1x16xf32, #tpu.memory_space<vmem>>, %arg4: memref<16x32xbf16, #tpu.memory_space<vmem>>, %arg5: memref<1x32xf32, #tpu.memory_space<vmem>>, %arg6: memref<16x32xf32, #tpu.memory_space<vmem>>) attributes {dimension_semantics = [#tpu.dimension_semantics<parallel>], iteration_bounds = array<i64: 1>, scalar_prefetch = 0 : i64, scratch_operands = 0 : i64, tpu.core_type = #tpu.core_type<tc>, window_params = [{transform_indices = @transform_0, window_bounds = array<i64: 16, 4>}, {pipeline_mode = #tpu.pipeline_mode<synchronous>, transform_indices = @transform_1, window_bounds = array<i64: 4, 16>}, {pipeline_mode = #tpu.pipeline_mode<synchronous>, transform_indices = @transform_2, window_bounds = array<i64: 1, 16>}, {pipeline_mode = #tpu.pipeline_mode<synchronous>, transform_indices = @transform_3, window_bounds = array<i64: 16, 32>}, {pipeline_mode = #tpu.pipeline_mode<synchronous>, transform_indices = @transform_4, window_bounds = array<i64: 1, 32>}, {transform_indices = @transform_5, window_bounds = array<i64: 16, 32>}]} {
    %c0 = arith.constant 0 : index
    %c0_0 = arith.constant 0 : index
    %0 = vector.load %arg1[%c0, %c0_0] : memref<16x4xf32, #tpu.memory_space<vmem>>, vector<16x4xf32>
    %1 = arith.truncf %0 : vector<16x4xf32> to vector<16x4xbf16>
    %c0_1 = arith.constant 0 : index
    %c0_2 = arith.constant 0 : index
    %2 = vector.load %arg2[%c0_1, %c0_2] : memref<4x16xbf16, #tpu.memory_space<vmem>>, vector<4x16xbf16>
    %cst = arith.constant dense<0.000000e+00> : vector<16x16xf32>
    %3 = tpu.matmul %1, %2, %cst {dimension_numbers = #tpu.dot_dimension_numbers<[1], [0], [0], [1], [0, 0, 1, 1], [], []>} : vector<16x4xbf16>, vector<4x16xbf16>, vector<16x16xf32> -> vector<16x16xf32>
    %c0_3 = arith.constant 0 : index
    %c0_4 = arith.constant 0 : index
    %4 = vector.load %arg3[%c0_3, %c0_4] : memref<1x16xf32, #tpu.memory_space<vmem>>, vector<1x16xf32>
    %5 = vector.broadcast %4 : vector<1x16xf32> to vector<16x16xf32>
    %6 = arith.addf %3, %5 : vector<16x16xf32>
    %cst_5 = arith.constant 0.000000e+00 : f32
    %7 = vector.broadcast %cst_5 : f32 to vector<16x16xf32>
    %8 = arith.maximumf %6, %7 : vector<16x16xf32>
    %9 = arith.truncf %8 : vector<16x16xf32> to vector<16x16xbf16>
    %c0_6 = arith.constant 0 : index
    %c0_7 = arith.constant 0 : index
    %10 = vector.load %arg4[%c0_6, %c0_7] : memref<16x32xbf16, #tpu.memory_space<vmem>>, vector<16x32xbf16>
    %cst_8 = arith.constant dense<0.000000e+00> : vector<16x32xf32>
    %11 = tpu.matmul %9, %10, %cst_8 {dimension_numbers = #tpu.dot_dimension_numbers<[1], [0], [0], [1], [0, 0, 1, 1], [], []>} : vector<16x16xbf16>, vector<16x32xbf16>, vector<16x32xf32> -> vector<16x32xf32>
    %c0_9 = arith.constant 0 : index
    %c0_10 = arith.constant 0 : index
    %12 = vector.load %arg5[%c0_9, %c0_10] : memref<1x32xf32, #tpu.memory_space<vmem>>, vector<1x32xf32>
    %13 = vector.broadcast %12 : vector<1x32xf32> to vector<16x32xf32>
    %14 = arith.addf %11, %13 : vector<16x32xf32>
    %cst_11 = arith.constant 0.000000e+00 : f32
    %15 = vector.broadcast %cst_11 : f32 to vector<16x32xf32>
    %16 = arith.maximumf %14, %15 : vector<16x32xf32>
    %c0_12 = arith.constant 0 : index
    %c0_13 = arith.constant 0 : index
    %17 = vector.load %arg6[%c0_12, %c0_13] : memref<16x32xf32, #tpu.memory_space<vmem>>, vector<16x32xf32>
    tpu.vector_store %arg6[%c0_12, %c0_13], %16 {strides = array<i32>} : memref<16x32xf32, #tpu.memory_space<vmem>>, vector<16x32xf32>,
    return
  }
  func.func @transform_0(%arg0: i32) -> (i32, i32) {
    %c0_i32 = arith.constant 0 : i32
    %c0_i32_0 = arith.constant 0 : i32
    return %arg0, %c0_i32 : i32, i32
  }
  func.func @transform_1(%arg0: i32) -> (i32, i32) {
    %c0_i32 = arith.constant 0 : i32
    %c0_i32_0 = arith.constant 0 : i32
    %c0_i32_1 = arith.constant 0 : i32
    return %c0_i32, %c0_i32_0 : i32, i32
  }
  func.func @transform_2(%arg0: i32) -> (i32, i32) {
    %c0_i32 = arith.constant 0 : i32
    %c0_i32_0 = arith.constant 0 : i32
    %c0_i32_1 = arith.constant 0 : i32
    return %c0_i32, %c0_i32_0 : i32, i32
  }
  func.func @transform_3(%arg0: i32) -> (i32, i32) {
    %c0_i32 = arith.constant 0 : i32
    %c0_i32_0 = arith.constant 0 : i32
    %c0_i32_1 = arith.constant 0 : i32
    return %c0_i32, %c0_i32_0 : i32, i32
  }
  func.func @transform_4(%arg0: i32) -> (i32, i32) {
    %c0_i32 = arith.constant 0 : i32
    %c0_i32_0 = arith.constant 0 : i32
    %c0_i32_1 = arith.constant 0 : i32
    return %c0_i32, %c0_i32_0 : i32, i32
  }
  func.func @transform_5(%arg0: i32) -> (i32, i32) {
    %c0_i32 = arith.constant 0 : i32
    %c0_i32_0 = arith.constant 0 : i32
    return %arg0, %c0_i32 : i32, i32
  }
}

module attributes {stable_mosaic.version = 11 : i64} {
  func.func @_linear_kernel(%arg0: i32, %arg1: memref<16x32xf32, #tpu.memory_space<vmem>>, %arg2: memref<32x32xbf16, #tpu.memory_space<vmem>>, %arg3: memref<1x32xf32, #tpu.memory_space<vmem>>, %arg4: memref<16x32xf32, #tpu.memory_space<vmem>>) attributes {dimension_semantics = [#tpu.dimension_semantics<parallel>], iteration_bounds = array<i64: 1>, scalar_prefetch = 0 : i64, scratch_operands = 0 : i64, tpu.core_type = #tpu.core_type<tc>, window_params = [{transform_indices = @transform_0, window_bounds = array<i64: 16, 32>}, {pipeline_mode = #tpu.pipeline_mode<synchronous>, transform_indices = @transform_1, window_bounds = array<i64: 32, 32>}, {pipeline_mode = #tpu.pipeline_mode<synchronous>, transform_indices = @transform_2, window_bounds = array<i64: 1, 32>}, {transform_indices = @transform_3, window_bounds = array<i64: 16, 32>}]} {
    %c0 = arith.constant 0 : index
    %c0_0 = arith.constant 0 : index
    %0 = vector.load %arg1[%c0, %c0_0] : memref<16x32xf32, #tpu.memory_space<vmem>>, vector<16x32xf32>
    %1 = arith.truncf %0 : vector<16x32xf32> to vector<16x32xbf16>
    %c0_1 = arith.constant 0 : index
    %c0_2 = arith.constant 0 : index
    %2 = vector.load %arg2[%c0_1, %c0_2] : memref<32x32xbf16, #tpu.memory_space<vmem>>, vector<32x32xbf16>
    %cst = arith.constant dense<0.000000e+00> : vector<16x32xf32>
    %3 = tpu.matmul %1, %2, %cst {dimension_numbers = #tpu.dot_dimension_numbers<[1], [0], [0], [1], [0, 0, 1, 1], [], []>} : vector<16x32xbf16>, vector<32x32xbf16>, vector<16x32xf32> -> vector<16x32xf32>
    %c0_3 = arith.constant 0 : index
    %c0_4 = arith.constant 0 : index
    %4 = vector.load %arg3[%c0_3, %c0_4] : memref<1x32xf32, #tpu.memory_space<vmem>>, vector<1x32xf32>
    %5 = vector.broadcast %4 : vector<1x32xf32> to vector<16x32xf32>
    %6 = arith.addf %3, %5 : vector<16x32xf32>
    %c0_5 = arith.constant 0 : index
    %c0_6 = arith.constant 0 : index
    %7 = vector.load %arg4[%c0_5, %c0_6] : memref<16x32xf32, #tpu.memory_space<vmem>>, vector<16x32xf32>
    tpu.vector_store %arg4[%c0_5, %c0_6], %6 {strides = array<i32>} : memref<16x32xf32, #tpu.memory_space<vmem>>, vector<16x32xf32>,
    return
  }
  func.func @transform_0(%arg0: i32) -> (i32, i32) {
    %c0_i32 = arith.constant 0 : i32
    %c0_i32_0 = arith.constant 0 : i32
    return %arg0, %c0_i32 : i32, i32
  }
  func.func @transform_1(%arg0: i32) -> (i32, i32) {
    %c0_i32 = arith.constant 0 : i32
    %c0_i32_0 = arith.constant 0 : i32
    %c0_i32_1 = arith.constant 0 : i32
    return %c0_i32, %c0_i32_0 : i32, i32
  }
  func.func @transform_2(%arg0: i32) -> (i32, i32) {
    %c0_i32 = arith.constant 0 : i32
    %c0_i32_0 = arith.constant 0 : i32
    %c0_i32_1 = arith.constant 0 : i32
    return %c0_i32, %c0_i32_0 : i32, i32
  }
  func.func @transform_3(%arg0: i32) -> (i32, i32) {
    %c0_i32 = arith.constant 0 : i32
    %c0_i32_0 = arith.constant 0 : i32
    return %arg0, %c0_i32 : i32, i32
  }
}

module attributes {stable_mosaic.version = 11 : i64} {
  func.func @_linear_kernel(%arg0: i32, %arg1: memref<16x32xf32, #tpu.memory_space<vmem>>, %arg2: memref<32x64xbf16, #tpu.memory_space<vmem>>, %arg3: memref<1x64xf32, #tpu.memory_space<vmem>>, %arg4: memref<16x64xf32, #tpu.memory_space<vmem>>) attributes {dimension_semantics = [#tpu.dimension_semantics<parallel>], iteration_bounds = array<i64: 1>, scalar_prefetch = 0 : i64, scratch_operands = 0 : i64, tpu.core_type = #tpu.core_type<tc>, window_params = [{transform_indices = @transform_0, window_bounds = array<i64: 16, 32>}, {pipeline_mode = #tpu.pipeline_mode<synchronous>, transform_indices = @transform_1, window_bounds = array<i64: 32, 64>}, {pipeline_mode = #tpu.pipeline_mode<synchronous>, transform_indices = @transform_2, window_bounds = array<i64: 1, 64>}, {transform_indices = @transform_3, window_bounds = array<i64: 16, 64>}]} {
    %c0 = arith.constant 0 : index
    %c0_0 = arith.constant 0 : index
    %0 = vector.load %arg1[%c0, %c0_0] : memref<16x32xf32, #tpu.memory_space<vmem>>, vector<16x32xf32>
    %1 = arith.truncf %0 : vector<16x32xf32> to vector<16x32xbf16>
    %c0_1 = arith.constant 0 : index
    %c0_2 = arith.constant 0 : index
    %2 = vector.load %arg2[%c0_1, %c0_2] : memref<32x64xbf16, #tpu.memory_space<vmem>>, vector<32x64xbf16>
    %cst = arith.constant dense<0.000000e+00> : vector<16x64xf32>
    %3 = tpu.matmul %1, %2, %cst {dimension_numbers = #tpu.dot_dimension_numbers<[1], [0], [0], [1], [0, 0, 1, 1], [], []>} : vector<16x32xbf16>, vector<32x64xbf16>, vector<16x64xf32> -> vector<16x64xf32>
    %c0_3 = arith.constant 0 : index
    %c0_4 = arith.constant 0 : index
    %4 = vector.load %arg3[%c0_3, %c0_4] : memref<1x64xf32, #tpu.memory_space<vmem>>, vector<1x64xf32>
    %5 = vector.broadcast %4 : vector<1x64xf32> to vector<16x64xf32>
    %6 = arith.addf %3, %5 : vector<16x64xf32>
    %c0_5 = arith.constant 0 : index
    %c0_6 = arith.constant 0 : index
    %7 = vector.load %arg4[%c0_5, %c0_6] : memref<16x64xf32, #tpu.memory_space<vmem>>, vector<16x64xf32>
    tpu.vector_store %arg4[%c0_5, %c0_6], %6 {strides = array<i32>} : memref<16x64xf32, #tpu.memory_space<vmem>>, vector<16x64xf32>,
    return
  }
  func.func @transform_0(%arg0: i32) -> (i32, i32) {
    %c0_i32 = arith.constant 0 : i32
    %c0_i32_0 = arith.constant 0 : i32
    return %arg0, %c0_i32 : i32, i32
  }
  func.func @transform_1(%arg0: i32) -> (i32, i32) {
    %c0_i32 = arith.constant 0 : i32
    %c0_i32_0 = arith.constant 0 : i32
    %c0_i32_1 = arith.constant 0 : i32
    return %c0_i32, %c0_i32_0 : i32, i32
  }
  func.func @transform_2(%arg0: i32) -> (i32, i32) {
    %c0_i32 = arith.constant 0 : i32
    %c0_i32_0 = arith.constant 0 : i32
    %c0_i32_1 = arith.constant 0 : i32
    return %c0_i32, %c0_i32_0 : i32, i32
  }
  func.func @transform_3(%arg0: i32) -> (i32, i32) {
    %c0_i32 = arith.constant 0 : i32
    %c0_i32_0 = arith.constant 0 : i32
    return %arg0, %c0_i32 : i32, i32
  }
}

module attributes {stable_mosaic.version = 11 : i64} {
  func.func @_mlp2_kernel(%arg0: i32, %arg1: memref<128x2xf32, #tpu.memory_space<vmem>>, %arg2: memref<2x8xbf16, #tpu.memory_space<vmem>>, %arg3: memref<1x8xf32, #tpu.memory_space<vmem>>, %arg4: memref<8x16xbf16, #tpu.memory_space<vmem>>, %arg5: memref<1x16xf32, #tpu.memory_space<vmem>>, %arg6: memref<128x16xbf16, #tpu.memory_space<vmem>>) attributes {dimension_semantics = [#tpu.dimension_semantics<parallel>], iteration_bounds = array<i64: 1>, scalar_prefetch = 0 : i64, scratch_operands = 0 : i64, tpu.core_type = #tpu.core_type<tc>, window_params = [{transform_indices = @transform_0, window_bounds = array<i64: 128, 2>}, {pipeline_mode = #tpu.pipeline_mode<synchronous>, transform_indices = @transform_1, window_bounds = array<i64: 2, 8>}, {pipeline_mode = #tpu.pipeline_mode<synchronous>, transform_indices = @transform_2, window_bounds = array<i64: 1, 8>}, {pipeline_mode = #tpu.pipeline_mode<synchronous>, transform_indices = @transform_3, window_bounds = array<i64: 8, 16>}, {pipeline_mode = #tpu.pipeline_mode<synchronous>, transform_indices = @transform_4, window_bounds = array<i64: 1, 16>}, {transform_indices = @transform_5, window_bounds = array<i64: 128, 16>}]} {
    %c0 = arith.constant 0 : index
    %c0_0 = arith.constant 0 : index
    %0 = vector.load %arg1[%c0, %c0_0] : memref<128x2xf32, #tpu.memory_space<vmem>>, vector<128x2xf32>
    %1 = arith.truncf %0 : vector<128x2xf32> to vector<128x2xbf16>
    %c0_1 = arith.constant 0 : index
    %c0_2 = arith.constant 0 : index
    %2 = vector.load %arg2[%c0_1, %c0_2] : memref<2x8xbf16, #tpu.memory_space<vmem>>, vector<2x8xbf16>
    %cst = arith.constant dense<0.000000e+00> : vector<128x8xf32>
    %3 = tpu.matmul %1, %2, %cst {dimension_numbers = #tpu.dot_dimension_numbers<[1], [0], [0], [1], [0, 0, 1, 1], [], []>} : vector<128x2xbf16>, vector<2x8xbf16>, vector<128x8xf32> -> vector<128x8xf32>
    %c0_3 = arith.constant 0 : index
    %c0_4 = arith.constant 0 : index
    %4 = vector.load %arg3[%c0_3, %c0_4] : memref<1x8xf32, #tpu.memory_space<vmem>>, vector<1x8xf32>
    %5 = vector.broadcast %4 : vector<1x8xf32> to vector<128x8xf32>
    %6 = arith.addf %3, %5 : vector<128x8xf32>
    %cst_5 = arith.constant 0.000000e+00 : f32
    %7 = vector.broadcast %cst_5 : f32 to vector<128x8xf32>
    %8 = arith.maximumf %6, %7 : vector<128x8xf32>
    %9 = arith.truncf %8 : vector<128x8xf32> to vector<128x8xbf16>
    %c0_6 = arith.constant 0 : index
    %c0_7 = arith.constant 0 : index
    %10 = vector.load %arg4[%c0_6, %c0_7] : memref<8x16xbf16, #tpu.memory_space<vmem>>, vector<8x16xbf16>
    %cst_8 = arith.constant dense<0.000000e+00> : vector<128x16xf32>
    %11 = tpu.matmul %9, %10, %cst_8 {dimension_numbers = #tpu.dot_dimension_numbers<[1], [0], [0], [1], [0, 0, 1, 1], [], []>} : vector<128x8xbf16>, vector<8x16xbf16>, vector<128x16xf32> -> vector<128x16xf32>
    %c0_9 = arith.constant 0 : index
    %c0_10 = arith.constant 0 : index
    %12 = vector.load %arg5[%c0_9, %c0_10] : memref<1x16xf32, #tpu.memory_space<vmem>>, vector<1x16xf32>
    %13 = vector.broadcast %12 : vector<1x16xf32> to vector<128x16xf32>
    %14 = arith.addf %11, %13 : vector<128x16xf32>
    %cst_11 = arith.constant 0.000000e+00 : f32
    %15 = vector.broadcast %cst_11 : f32 to vector<128x16xf32>
    %16 = arith.maximumf %14, %15 : vector<128x16xf32>
    %17 = arith.truncf %16 : vector<128x16xf32> to vector<128x16xbf16>
    %c0_12 = arith.constant 0 : index
    %c0_13 = arith.constant 0 : index
    %18 = vector.load %arg6[%c0_12, %c0_13] : memref<128x16xbf16, #tpu.memory_space<vmem>>, vector<128x16xbf16>
    tpu.vector_store %arg6[%c0_12, %c0_13], %17 {strides = array<i32>} : memref<128x16xbf16, #tpu.memory_space<vmem>>, vector<128x16xbf16>,
    return
  }
  func.func @transform_0(%arg0: i32) -> (i32, i32) {
    %c0_i32 = arith.constant 0 : i32
    %c0_i32_0 = arith.constant 0 : i32
    return %arg0, %c0_i32 : i32, i32
  }
  func.func @transform_1(%arg0: i32) -> (i32, i32) {
    %c0_i32 = arith.constant 0 : i32
    %c0_i32_0 = arith.constant 0 : i32
    %c0_i32_1 = arith.constant 0 : i32
    return %c0_i32, %c0_i32_0 : i32, i32
  }
  func.func @transform_2(%arg0: i32) -> (i32, i32) {
    %c0_i32 = arith.constant 0 : i32
    %c0_i32_0 = arith.constant 0 : i32
    %c0_i32_1 = arith.constant 0 : i32
    return %c0_i32, %c0_i32_0 : i32, i32
  }
  func.func @transform_3(%arg0: i32) -> (i32, i32) {
    %c0_i32 = arith.constant 0 : i32
    %c0_i32_0 = arith.constant 0 : i32
    %c0_i32_1 = arith.constant 0 : i32
    return %c0_i32, %c0_i32_0 : i32, i32
  }
  func.func @transform_4(%arg0: i32) -> (i32, i32) {
    %c0_i32 = arith.constant 0 : i32
    %c0_i32_0 = arith.constant 0 : i32
    %c0_i32_1 = arith.constant 0 : i32
    return %c0_i32, %c0_i32_0 : i32, i32
  }
  func.func @transform_5(%arg0: i32) -> (i32, i32) {
    %c0_i32 = arith.constant 0 : i32
    %c0_i32_0 = arith.constant 0 : i32
    return %arg0, %c0_i32 : i32, i32
  }
}

module attributes {stable_mosaic.version = 11 : i64} {
  func.func @_add_ln_kernel(%arg0: i32, %arg1: memref<16x32xf32, #tpu.memory_space<vmem>>, %arg2: memref<16x32xf32, #tpu.memory_space<vmem>>, %arg3: memref<1x32xf32, #tpu.memory_space<vmem>>, %arg4: memref<1x32xf32, #tpu.memory_space<vmem>>, %arg5: memref<16x32xf32, #tpu.memory_space<vmem>>) attributes {dimension_semantics = [#tpu.dimension_semantics<parallel>], iteration_bounds = array<i64: 1>, scalar_prefetch = 0 : i64, scratch_operands = 0 : i64, tpu.core_type = #tpu.core_type<tc>, window_params = [{transform_indices = @transform_0, window_bounds = array<i64: 16, 32>}, {transform_indices = @transform_1, window_bounds = array<i64: 16, 32>}, {pipeline_mode = #tpu.pipeline_mode<synchronous>, transform_indices = @transform_2, window_bounds = array<i64: 1, 32>}, {pipeline_mode = #tpu.pipeline_mode<synchronous>, transform_indices = @transform_3, window_bounds = array<i64: 1, 32>}, {transform_indices = @transform_4, window_bounds = array<i64: 16, 32>}]} {
    %c0 = arith.constant 0 : index
    %c0_0 = arith.constant 0 : index
    %0 = vector.load %arg1[%c0, %c0_0] : memref<16x32xf32, #tpu.memory_space<vmem>>, vector<16x32xf32>
    %c0_1 = arith.constant 0 : index
    %c0_2 = arith.constant 0 : index
    %1 = vector.load %arg2[%c0_1, %c0_2] : memref<16x32xf32, #tpu.memory_space<vmem>>, vector<16x32xf32>
    %2 = arith.addf %0, %1 : vector<16x32xf32>
    %cst = arith.constant dense<0.000000e+00> : vector<16xf32>
    %3 = vector.multi_reduction <add>, %2, %cst [1] : vector<16x32xf32> to vector<16xf32>
    %4 = vector.shape_cast %3 : vector<16xf32> to vector<16x1xf32>
    %cst_3 = arith.constant 3.200000e+01 : f32
    %5 = vector.broadcast %cst_3 : f32 to vector<16x1xf32>
    %6 = arith.divf %4, %5 : vector<16x1xf32>
    %7 = vector.broadcast %6 : vector<16x1xf32> to vector<16x32xf32>
    %8 = arith.subf %2, %7 : vector<16x32xf32>
    %9 = arith.mulf %8, %8 : vector<16x32xf32>
    %cst_4 = arith.constant dense<0.000000e+00> : vector<16xf32>
    %10 = vector.multi_reduction <add>, %9, %cst_4 [1] : vector<16x32xf32> to vector<16xf32>
    %11 = vector.shape_cast %10 : vector<16xf32> to vector<16x1xf32>
    %cst_5 = arith.constant 3.200000e+01 : f32
    %12 = vector.broadcast %cst_5 : f32 to vector<16x1xf32>
    %13 = arith.divf %11, %12 : vector<16x1xf32>
    %cst_6 = arith.constant 9.99999974E-6 : f32
    %14 = vector.broadcast %cst_6 : f32 to vector<16x1xf32>
    %15 = arith.addf %13, %14 : vector<16x1xf32>
    %16 = math.rsqrt %15 : vector<16x1xf32>
    %17 = vector.broadcast %6 : vector<16x1xf32> to vector<16x32xf32>
    %18 = arith.subf %2, %17 : vector<16x32xf32>
    %19 = vector.broadcast %16 : vector<16x1xf32> to vector<16x32xf32>
    %20 = arith.mulf %18, %19 : vector<16x32xf32>
    %c0_7 = arith.constant 0 : index
    %c0_8 = arith.constant 0 : index
    %21 = vector.load %arg3[%c0_7, %c0_8] : memref<1x32xf32, #tpu.memory_space<vmem>>, vector<1x32xf32>
    %22 = vector.broadcast %21 : vector<1x32xf32> to vector<16x32xf32>
    %23 = arith.mulf %20, %22 : vector<16x32xf32>
    %c0_9 = arith.constant 0 : index
    %c0_10 = arith.constant 0 : index
    %24 = vector.load %arg4[%c0_9, %c0_10] : memref<1x32xf32, #tpu.memory_space<vmem>>, vector<1x32xf32>
    %25 = vector.broadcast %24 : vector<1x32xf32> to vector<16x32xf32>
    %26 = arith.addf %23, %25 : vector<16x32xf32>
    %c0_11 = arith.constant 0 : index
    %c0_12 = arith.constant 0 : index
    %27 = vector.load %arg5[%c0_11, %c0_12] : memref<16x32xf32, #tpu.memory_space<vmem>>, vector<16x32xf32>
    tpu.vector_store %arg5[%c0_11, %c0_12], %26 {strides = array<i32>} : memref<16x32xf32, #tpu.memory_space<vmem>>, vector<16x32xf32>,
    return
  }
  func.func @transform_0(%arg0: i32) -> (i32, i32) {
    %c0_i32 = arith.constant 0 : i32
    %c0_i32_0 = arith.constant 0 : i32
    return %arg0, %c0_i32 : i32, i32
  }
  func.func @transform_1(%arg0: i32) -> (i32, i32) {
    %c0_i32 = arith.constant 0 : i32
    %c0_i32_0 = arith.constant 0 : i32
    return %arg0, %c0_i32 : i32, i32
  }
  func.func @transform_2(%arg0: i32) -> (i32, i32) {
    %c0_i32 = arith.constant 0 : i32
    %c0_i32_0 = arith.constant 0 : i32
    %c0_i32_1 = arith.constant 0 : i32
    return %c0_i32, %c0_i32_0 : i32, i32
  }
  func.func @transform_3(%arg0: i32) -> (i32, i32) {
    %c0_i32 = arith.constant 0 : i32
    %c0_i32_0 = arith.constant 0 : i32
    %c0_i32_1 = arith.constant 0 : i32
    return %c0_i32, %c0_i32_0 : i32, i32
  }
  func.func @transform_4(%arg0: i32) -> (i32, i32) {
    %c0_i32 = arith.constant 0 : i32
    %c0_i32_0 = arith.constant 0 : i32
    return %arg0, %c0_i32 : i32, i32
  }
}

module attributes {stable_mosaic.version = 11 : i64} {
  func.func @_ffn_ln_kernel(%arg0: i32, %arg1: memref<16x32xf32, #tpu.memory_space<vmem>>, %arg2: memref<32x64xbf16, #tpu.memory_space<vmem>>, %arg3: memref<1x64xf32, #tpu.memory_space<vmem>>, %arg4: memref<64x32xbf16, #tpu.memory_space<vmem>>, %arg5: memref<1x32xf32, #tpu.memory_space<vmem>>, %arg6: memref<1x32xf32, #tpu.memory_space<vmem>>, %arg7: memref<1x32xf32, #tpu.memory_space<vmem>>, %arg8: memref<16x32xf32, #tpu.memory_space<vmem>>) attributes {dimension_semantics = [#tpu.dimension_semantics<parallel>], iteration_bounds = array<i64: 1>, scalar_prefetch = 0 : i64, scratch_operands = 0 : i64, tpu.core_type = #tpu.core_type<tc>, window_params = [{transform_indices = @transform_0, window_bounds = array<i64: 16, 32>}, {pipeline_mode = #tpu.pipeline_mode<synchronous>, transform_indices = @transform_1, window_bounds = array<i64: 32, 64>}, {pipeline_mode = #tpu.pipeline_mode<synchronous>, transform_indices = @transform_2, window_bounds = array<i64: 1, 64>}, {pipeline_mode = #tpu.pipeline_mode<synchronous>, transform_indices = @transform_3, window_bounds = array<i64: 64, 32>}, {pipeline_mode = #tpu.pipeline_mode<synchronous>, transform_indices = @transform_4, window_bounds = array<i64: 1, 32>}, {pipeline_mode = #tpu.pipeline_mode<synchronous>, transform_indices = @transform_5, window_bounds = array<i64: 1, 32>}, {pipeline_mode = #tpu.pipeline_mode<synchronous>, transform_indices = @transform_6, window_bounds = array<i64: 1, 32>}, {transform_indices = @transform_7, window_bounds = array<i64: 16, 32>}]} {
    %c0 = arith.constant 0 : index
    %c0_0 = arith.constant 0 : index
    %0 = vector.load %arg1[%c0, %c0_0] : memref<16x32xf32, #tpu.memory_space<vmem>>, vector<16x32xf32>
    %1 = arith.truncf %0 : vector<16x32xf32> to vector<16x32xbf16>
    %c0_1 = arith.constant 0 : index
    %c0_2 = arith.constant 0 : index
    %2 = vector.load %arg2[%c0_1, %c0_2] : memref<32x64xbf16, #tpu.memory_space<vmem>>, vector<32x64xbf16>
    %cst = arith.constant dense<0.000000e+00> : vector<16x64xf32>
    %3 = tpu.matmul %1, %2, %cst {dimension_numbers = #tpu.dot_dimension_numbers<[1], [0], [0], [1], [0, 0, 1, 1], [], []>} : vector<16x32xbf16>, vector<32x64xbf16>, vector<16x64xf32> -> vector<16x64xf32>
    %c0_3 = arith.constant 0 : index
    %c0_4 = arith.constant 0 : index
    %4 = vector.load %arg3[%c0_3, %c0_4] : memref<1x64xf32, #tpu.memory_space<vmem>>, vector<1x64xf32>
    %5 = vector.broadcast %4 : vector<1x64xf32> to vector<16x64xf32>
    %6 = arith.addf %3, %5 : vector<16x64xf32>
    %cst_5 = arith.constant 0.000000e+00 : f32
    %7 = vector.broadcast %cst_5 : f32 to vector<16x64xf32>
    %8 = arith.maximumf %6, %7 : vector<16x64xf32>
    %9 = arith.truncf %8 : vector<16x64xf32> to vector<16x64xbf16>
    %c0_6 = arith.constant 0 : index
    %c0_7 = arith.constant 0 : index
    %10 = vector.load %arg4[%c0_6, %c0_7] : memref<64x32xbf16, #tpu.memory_space<vmem>>, vector<64x32xbf16>
    %cst_8 = arith.constant dense<0.000000e+00> : vector<16x32xf32>
    %11 = tpu.matmul %9, %10, %cst_8 {dimension_numbers = #tpu.dot_dimension_numbers<[1], [0], [0], [1], [0, 0, 1, 1], [], []>} : vector<16x64xbf16>, vector<64x32xbf16>, vector<16x32xf32> -> vector<16x32xf32>
    %c0_9 = arith.constant 0 : index
    %c0_10 = arith.constant 0 : index
    %12 = vector.load %arg5[%c0_9, %c0_10] : memref<1x32xf32, #tpu.memory_space<vmem>>, vector<1x32xf32>
    %13 = vector.broadcast %12 : vector<1x32xf32> to vector<16x32xf32>
    %14 = arith.addf %11, %13 : vector<16x32xf32>
    %15 = arith.addf %0, %14 : vector<16x32xf32>
    %cst_11 = arith.constant dense<0.000000e+00> : vector<16xf32>
    %16 = vector.multi_reduction <add>, %15, %cst_11 [1] : vector<16x32xf32> to vector<16xf32>
    %17 = vector.shape_cast %16 : vector<16xf32> to vector<16x1xf32>
    %cst_12 = arith.constant 3.200000e+01 : f32
    %18 = vector.broadcast %cst_12 : f32 to vector<16x1xf32>
    %19 = arith.divf %17, %18 : vector<16x1xf32>
    %20 = vector.broadcast %19 : vector<16x1xf32> to vector<16x32xf32>
    %21 = arith.subf %15, %20 : vector<16x32xf32>
    %22 = arith.mulf %21, %21 : vector<16x32xf32>
    %cst_13 = arith.constant dense<0.000000e+00> : vector<16xf32>
    %23 = vector.multi_reduction <add>, %22, %cst_13 [1] : vector<16x32xf32> to vector<16xf32>
    %24 = vector.shape_cast %23 : vector<16xf32> to vector<16x1xf32>
    %cst_14 = arith.constant 3.200000e+01 : f32
    %25 = vector.broadcast %cst_14 : f32 to vector<16x1xf32>
    %26 = arith.divf %24, %25 : vector<16x1xf32>
    %cst_15 = arith.constant 9.99999974E-6 : f32
    %27 = vector.broadcast %cst_15 : f32 to vector<16x1xf32>
    %28 = arith.addf %26, %27 : vector<16x1xf32>
    %29 = math.rsqrt %28 : vector<16x1xf32>
    %30 = vector.broadcast %19 : vector<16x1xf32> to vector<16x32xf32>
    %31 = arith.subf %15, %30 : vector<16x32xf32>
    %32 = vector.broadcast %29 : vector<16x1xf32> to vector<16x32xf32>
    %33 = arith.mulf %31, %32 : vector<16x32xf32>
    %c0_16 = arith.constant 0 : index
    %c0_17 = arith.constant 0 : index
    %34 = vector.load %arg6[%c0_16, %c0_17] : memref<1x32xf32, #tpu.memory_space<vmem>>, vector<1x32xf32>
    %35 = vector.broadcast %34 : vector<1x32xf32> to vector<16x32xf32>
    %36 = arith.mulf %33, %35 : vector<16x32xf32>
    %c0_18 = arith.constant 0 : index
    %c0_19 = arith.constant 0 : index
    %37 = vector.load %arg7[%c0_18, %c0_19] : memref<1x32xf32, #tpu.memory_space<vmem>>, vector<1x32xf32>
    %38 = vector.broadcast %37 : vector<1x32xf32> to vector<16x32xf32>
    %39 = arith.addf %36, %38 : vector<16x32xf32>
    %c0_20 = arith.constant 0 : index
    %c0_21 = arith.constant 0 : index
    %40 = vector.load %arg8[%c0_20, %c0_21] : memref<16x32xf32, #tpu.memory_space<vmem>>, vector<16x32xf32>
    tpu.vector_store %arg8[%c0_20, %c0_21], %39 {strides = array<i32>} : memref<16x32xf32, #tpu.memory_space<vmem>>, vector<16x32xf32>,
    return
  }
  func.func @transform_0(%arg0: i32) -> (i32, i32) {
    %c0_i32 = arith.constant 0 : i32
    %c0_i32_0 = arith.constant 0 : i32
    return %arg0, %c0_i32 : i32, i32
  }
  func.func @transform_1(%arg0: i32) -> (i32, i32) {
    %c0_i32 = arith.constant 0 : i32
    %c0_i32_0 = arith.constant 0 : i32
    %c0_i32_1 = arith.constant 0 : i32
    return %c0_i32, %c0_i32_0 : i32, i32
  }
  func.func @transform_2(%arg0: i32) -> (i32, i32) {
    %c0_i32 = arith.constant 0 : i32
    %c0_i32_0 = arith.constant 0 : i32
    %c0_i32_1 = arith.constant 0 : i32
    return %c0_i32, %c0_i32_0 : i32, i32
  }
  func.func @transform_3(%arg0: i32) -> (i32, i32) {
    %c0_i32 = arith.constant 0 : i32
    %c0_i32_0 = arith.constant 0 : i32
    %c0_i32_1 = arith.constant 0 : i32
    return %c0_i32, %c0_i32_0 : i32, i32
  }
  func.func @transform_4(%arg0: i32) -> (i32, i32) {
    %c0_i32 = arith.constant 0 : i32
    %c0_i32_0 = arith.constant 0 : i32
    %c0_i32_1 = arith.constant 0 : i32
    return %c0_i32, %c0_i32_0 : i32, i32
  }
  func.func @transform_5(%arg0: i32) -> (i32, i32) {
    %c0_i32 = arith.constant 0 : i32
    %c0_i32_0 = arith.constant 0 : i32
    %c0_i32_1 = arith.constant 0 : i32
    return %c0_i32, %c0_i32_0 : i32, i32
  }
  func.func @transform_6(%arg0: i32) -> (i32, i32) {
    %c0_i32 = arith.constant 0 : i32
    %c0_i32_0 = arith.constant 0 : i32
    %c0_i32_1 = arith.constant 0 : i32
    return %c0_i32, %c0_i32_0 : i32, i32
  }
  func.func @transform_7(%arg0: i32) -> (i32, i32) {
    %c0_i32 = arith.constant 0 : i32
    %c0_i32_0 = arith.constant 0 : i32
    return %arg0, %c0_i32 : i32, i32
  }
}

module attributes {stable_mosaic.version = 11 : i64} {
  func.func @_fused_attn_e_kernel(%arg0: i32, %arg1: i32, %arg2: memref<1x8x32xf32, #tpu.memory_space<vmem>>, %arg3: memref<1x8x64xf32, #tpu.memory_space<vmem>>, %arg4: memref<1x8x8x16xbf16, #tpu.memory_space<vmem>>, %arg5: memref<1x1x128xf32, #tpu.memory_space<vmem>>, %arg6: memref<1x8x1xf32, #tpu.memory_space<vmem>>, %arg7: memref<1x8x1xf32, #tpu.memory_space<vmem>>, %arg8: memref<16x64xbf16, #tpu.memory_space<vmem>>, %arg9: memref<1x64xf32, #tpu.memory_space<vmem>>, %arg10: memref<32x16xbf16, #tpu.memory_space<vmem>>, %arg11: memref<1x16xf32, #tpu.memory_space<vmem>>, %arg12: memref<32x32xbf16, #tpu.memory_space<vmem>>, %arg13: memref<1x32xf32, #tpu.memory_space<vmem>>, %arg14: memref<1x16xf32, #tpu.memory_space<vmem>>, %arg15: memref<1x16xf32, #tpu.memory_space<vmem>>, %arg16: memref<16x32xbf16, #tpu.memory_space<vmem>>, %arg17: memref<1x32xf32, #tpu.memory_space<vmem>>, %arg18: memref<32x16xbf16, #tpu.memory_space<vmem>>, %arg19: memref<1x16xf32, #tpu.memory_space<vmem>>, %arg20: memref<1x16xf32, #tpu.memory_space<vmem>>, %arg21: memref<1x16xf32, #tpu.memory_space<vmem>>, %arg22: memref<1x8x8x16xbf16, #tpu.memory_space<vmem>>, %arg23: memref<1x8x32xf32, #tpu.memory_space<vmem>>, %arg24: memref<1x1x4x16xf32, #tpu.memory_space<vmem>>) attributes {dimension_semantics = [#tpu.dimension_semantics<parallel>, #tpu.dimension_semantics<parallel>], iteration_bounds = array<i64: 2, 1>, scalar_prefetch = 0 : i64, scratch_operands = 0 : i64, tpu.core_type = #tpu.core_type<tc>, window_params = [{transform_indices = @transform_0, window_bounds = array<i64: 1, 8, 32>}, {transform_indices = @transform_1, window_bounds = array<i64: 1, 8, 64>}, {transform_indices = @transform_2, window_bounds = array<i64: 1, 8, 8, 16>}, {transform_indices = @transform_3, window_bounds = array<i64: 1, 1, 128>}, {transform_indices = @transform_4, window_bounds = array<i64: 1, 8, 1>}, {transform_indices = @transform_5, window_bounds = array<i64: 1, 8, 1>}, {pipeline_mode = #tpu.pipeline_mode<synchronous>, transform_indices = @transform_6, window_bounds = array<i64: 16, 64>}, {pipeline_mode = #tpu.pipeline_mode<synchronous>, transform_indices = @transform_7, window_bounds = array<i64: 1, 64>}, {pipeline_mode = #tpu.pipeline_mode<synchronous>, transform_indices = @transform_8, window_bounds = array<i64: 32, 16>}, {pipeline_mode = #tpu.pipeline_mode<synchronous>, transform_indices = @transform_9, window_bounds = array<i64: 1, 16>}, {pipeline_mode = #tpu.pipeline_mode<synchronous>, transform_indices = @transform_10, window_bounds = array<i64: 32, 32>}, {pipeline_mode = #tpu.pipeline_mode<synchronous>, transform_indices = @transform_11, window_bounds = array<i64: 1, 32>}, {pipeline_mode = #tpu.pipeline_mode<synchronous>, transform_indices = @transform_12, window_bounds = array<i64: 1, 16>}, {pipeline_mode = #tpu.pipeline_mode<synchronous>, transform_indices = @transform_13, window_bounds = array<i64: 1, 16>}, {pipeline_mode = #tpu.pipeline_mode<synchronous>, transform_indices = @transform_14, window_bounds = array<i64: 16, 32>}, {pipeline_mode = #tpu.pipeline_mode<synchronous>, transform_indices = @transform_15, window_bounds = array<i64: 1, 32>}, {pipeline_mode = #tpu.pipeline_mode<synchronous>, transform_indices = @transform_16, window_bounds = array<i64: 32, 16>}, {pipeline_mode = #tpu.pipeline_mode<synchronous>, transform_indices = @transform_17, window_bounds = array<i64: 1, 16>}, {pipeline_mode = #tpu.pipeline_mode<synchronous>, transform_indices = @transform_18, window_bounds = array<i64: 1, 16>}, {pipeline_mode = #tpu.pipeline_mode<synchronous>, transform_indices = @transform_19, window_bounds = array<i64: 1, 16>}, {transform_indices = @transform_20, window_bounds = array<i64: 1, 8, 8, 16>}, {transform_indices = @transform_21, window_bounds = array<i64: 1, 8, 32>}, {transform_indices = @transform_22, window_bounds = array<i64: 1, 1, 4, 16>}]} {
    %c0 = arith.constant 0 : index
    %c0_0 = arith.constant 0 : index
    %c0_1 = arith.constant 0 : index
    %0 = vector.load %arg6[%c0, %c0_0, %c0_1] : memref<1x8x1xf32, #tpu.memory_space<vmem>>, vector<1x8x1xf32>
    %1 = vector.shape_cast %0 : vector<1x8x1xf32> to vector<8x1xf32>
    %c0_2 = arith.constant 0 : index
    %c0_3 = arith.constant 0 : index
    %c0_4 = arith.constant 0 : index
    %2 = vector.load %arg7[%c0_2, %c0_3, %c0_4] : memref<1x8x1xf32, #tpu.memory_space<vmem>>, vector<1x8x1xf32>
    %3 = vector.shape_cast %2 : vector<1x8x1xf32> to vector<8x1xf32>
    %4 = tpu.iota {dimensions = array<i32: 0>} : vector<8x1xi32>
    %c8_i32 = arith.constant 8 : i32
    %5 = arith.muli %arg1, %c8_i32 : i32
    %6 = vector.broadcast %5 : i32 to vector<8x1xi32>
    %7 = arith.addi %4, %6 : vector<8x1xi32>
    %c8_i32_5 = arith.constant 8 : i32
    %8 = vector.broadcast %c8_i32_5 : i32 to vector<8x1xi32>
    %9 = arith.cmpi slt, %7, %8 : vector<8x1xi32>
    %10 = arith.extui %9 : vector<8x1xi1> to vector<8x1xi32>
    %11 = arith.sitofp %10 : vector<8x1xi32> to vector<8x1xf32>
    %c0_6 = arith.constant 0 : index
    %c0_7 = arith.constant 0 : index
    %c0_8 = arith.constant 0 : index
    %12 = vector.load %arg2[%c0_6, %c0_7, %c0_8] : memref<1x8x32xf32, #tpu.memory_space<vmem>>, vector<1x8x32xf32>
    %13 = vector.shape_cast %12 : vector<1x8x32xf32> to vector<8x32xf32>
    %14 = vector.broadcast %1 : vector<8x1xf32> to vector<8x32xf32>
    %15 = arith.mulf %13, %14 : vector<8x32xf32>
    %c0_9 = arith.constant 0 : index
    %c0_10 = arith.constant 0 : index
    %c0_11 = arith.constant 0 : index
    %16 = vector.load %arg3[%c0_9, %c0_10, %c0_11] : memref<1x8x64xf32, #tpu.memory_space<vmem>>, vector<1x8x64xf32>
    %17 = vector.shape_cast %16 : vector<1x8x64xf32> to vector<8x64xf32>
    %18 = vector.extract_strided_slice %17 {offsets = [0, 0], sizes = [8, 32], strides = [1, 1]} : vector<8x64xf32> to vector<8x32xf32>
    %19 = vector.broadcast %3 : vector<8x1xf32> to vector<8x32xf32>
    %20 = arith.mulf %18, %19 : vector<8x32xf32>
    %21 = vector.extract_strided_slice %17 {offsets = [0, 32], sizes = [8, 32], strides = [1, 1]} : vector<8x64xf32> to vector<8x32xf32>
    %22 = vector.broadcast %3 : vector<8x1xf32> to vector<8x32xf32>
    %23 = arith.mulf %21, %22 : vector<8x32xf32>
    %c0_12 = arith.constant 0 : index
    %c0_13 = arith.constant 0 : index
    %c0_14 = arith.constant 0 : index
    %c0_15 = arith.constant 0 : index
    %24 = vector.load %arg4[%c0_12, %c0_13, %c0_14, %c0_15] : memref<1x8x8x16xbf16, #tpu.memory_space<vmem>>, vector<1x8x8x16xbf16>
    %25 = vector.shape_cast %24 : vector<1x8x8x16xbf16> to vector<8x8x16xbf16>
    %26 = arith.extf %25 : vector<8x8x16xbf16> to vector<8x8x16xf32>
    %27 = vector.shape_cast %1 : vector<8x1xf32> to vector<8x1x1xf32>
    %28 = vector.shape_cast %3 : vector<8x1xf32> to vector<1x8x1xf32>
    %29 = vector.broadcast %27 : vector<8x1x1xf32> to vector<8x8x1xf32>
    %30 = vector.broadcast %28 : vector<1x8x1xf32> to vector<8x8x1xf32>
    %31 = arith.mulf %29, %30 : vector<8x8x1xf32>
    %32 = vector.shape_cast %11 : vector<8x1xf32> to vector<8x1x1xf32>
    %33 = vector.broadcast %32 : vector<8x1x1xf32> to vector<8x8x16xf32>
    %34 = arith.mulf %26, %33 : vector<8x8x16xf32>
    %35 = vector.shape_cast %34 : vector<8x8x16xf32> to vector<64x16xf32>
    %cst = arith.constant dense<0.000000e+00> : vector<16xf32>
    %36 = vector.multi_reduction <add>, %35, %cst [0] : vector<64x16xf32> to vector<16xf32>
    %37 = vector.shape_cast %36 : vector<16xf32> to vector<1x16xf32>
    %38 = arith.mulf %35, %35 : vector<64x16xf32>
    %cst_16 = arith.constant dense<0.000000e+00> : vector<16xf32>
    %39 = vector.multi_reduction <add>, %38, %cst_16 [0] : vector<64x16xf32> to vector<16xf32>
    %40 = vector.shape_cast %39 : vector<16xf32> to vector<1x16xf32>
    %cst_17 = arith.constant 0.000000e+00 : f32
    %41 = vector.broadcast %cst_17 : f32 to vector<8x1x1xf32>
    %42 = arith.cmpf ogt, %32, %41 : vector<8x1x1xf32>
    %cst_18 = arith.constant 0x7F800000 : f32
    %43 = vector.shape_cast %42 : vector<8x1x1xi1> to vector<8x1x1xi1>
    %44 = vector.broadcast %43 : vector<8x1x1xi1> to vector<8x8x16xi1>
    %45 = vector.broadcast %cst_18 : f32 to vector<8x8x16xf32>
    %46 = arith.select %44, %26, %45 : vector<8x8x16xi1>, vector<8x8x16xf32>
    %47 = vector.shape_cast %46 : vector<8x8x16xf32> to vector<64x16xf32>
    %cst_19 = arith.constant dense<0x7F800000> : vector<16xf32>
    %48 = vector.multi_reduction <minimumf>, %47, %cst_19 [0] : vector<64x16xf32> to vector<16xf32>
    %49 = vector.shape_cast %48 : vector<16xf32> to vector<1x16xf32>
    %cst_20 = arith.constant 0.000000e+00 : f32
    %50 = vector.broadcast %cst_20 : f32 to vector<8x1x1xf32>
    %51 = arith.cmpf ogt, %32, %50 : vector<8x1x1xf32>
    %cst_21 = arith.constant 0xFF800000 : f32
    %52 = vector.shape_cast %51 : vector<8x1x1xi1> to vector<8x1x1xi1>
    %53 = vector.broadcast %52 : vector<8x1x1xi1> to vector<8x8x16xi1>
    %54 = vector.broadcast %cst_21 : f32 to vector<8x8x16xf32>
    %55 = arith.select %53, %26, %54 : vector<8x8x16xi1>, vector<8x8x16xf32>
    %56 = vector.shape_cast %55 : vector<8x8x16xf32> to vector<64x16xf32>
    %cst_22 = arith.constant dense<0xFF800000> : vector<16xf32>
    %57 = vector.multi_reduction <maximumf>, %56, %cst_22 [0] : vector<64x16xf32> to vector<16xf32>
    %58 = vector.shape_cast %57 : vector<16xf32> to vector<1x16xf32>
    %59 = tpu.concatenate %37, %49, %58, %40 in 0 : vector<1x16xf32>, vector<1x16xf32>, vector<1x16xf32>, vector<1x16xf32> -> vector<4x16xf32>
    %60 = vector.shape_cast %59 : vector<4x16xf32> to vector<1x1x4x16xf32>
    %c0_23 = arith.constant 0 : index
    %c0_24 = arith.constant 0 : index
    %c0_25 = arith.constant 0 : index
    %c0_26 = arith.constant 0 : index
    %61 = vector.load %arg24[%c0_23, %c0_24, %c0_25, %c0_26] : memref<1x1x4x16xf32, #tpu.memory_space<vmem>>, vector<1x1x4x16xf32>
    tpu.vector_store %arg24[%c0_23, %c0_24, %c0_25, %c0_26], %60 {strides = array<i32>} : memref<1x1x4x16xf32, #tpu.memory_space<vmem>>, vector<1x1x4x16xf32>,
    %62 = vector.shape_cast %26 : vector<8x8x16xf32> to vector<64x16xf32>
    %63 = arith.truncf %62 : vector<64x16xf32> to vector<64x16xbf16>
    %c0_27 = arith.constant 0 : index
    %c0_28 = arith.constant 0 : index
    %64 = vector.load %arg8[%c0_27, %c0_28] : memref<16x64xbf16, #tpu.memory_space<vmem>>, vector<16x64xbf16>
    %cst_29 = arith.constant dense<0.000000e+00> : vector<64x64xf32>
    %65 = tpu.matmul %63, %64, %cst_29 {dimension_numbers = #tpu.dot_dimension_numbers<[1], [0], [0], [1], [0, 0, 1, 1], [], []>} : vector<64x16xbf16>, vector<16x64xbf16>, vector<64x64xf32> -> vector<64x64xf32>
    %c0_30 = arith.constant 0 : index
    %c0_31 = arith.constant 0 : index
    %66 = vector.load %arg9[%c0_30, %c0_31] : memref<1x64xf32, #tpu.memory_space<vmem>>, vector<1x64xf32>
    %67 = vector.broadcast %66 : vector<1x64xf32> to vector<64x64xf32>
    %68 = arith.addf %65, %67 : vector<64x64xf32>
    %69 = vector.shape_cast %68 : vector<64x64xf32> to vector<8x8x64xf32>
    %70 = vector.extract_strided_slice %69 {offsets = [0, 0, 0], sizes = [8, 8, 32], strides = [1, 1, 1]} : vector<8x8x64xf32> to vector<8x8x32xf32>
    %71 = vector.broadcast %31 : vector<8x8x1xf32> to vector<8x8x32xf32>
    %72 = arith.mulf %70, %71 : vector<8x8x32xf32>
    %73 = vector.extract_strided_slice %69 {offsets = [0, 0, 32], sizes = [8, 8, 32], strides = [1, 1, 1]} : vector<8x8x64xf32> to vector<8x8x32xf32>
    %74 = vector.broadcast %31 : vector<8x8x1xf32> to vector<8x8x32xf32>
    %75 = arith.mulf %73, %74 : vector<8x8x32xf32>
    %76 = vector.shape_cast %15 : vector<8x32xf32> to vector<8x1x32xf32>
    %77 = vector.shape_cast %20 : vector<8x32xf32> to vector<1x8x32xf32>
    %78 = vector.broadcast %76 : vector<8x1x32xf32> to vector<8x8x32xf32>
    %79 = vector.broadcast %77 : vector<1x8x32xf32> to vector<8x8x32xf32>
    %80 = arith.mulf %78, %79 : vector<8x8x32xf32>
    %cst_32 = arith.constant 0.353553385 : f32
    %81 = vector.broadcast %cst_32 : f32 to vector<8x8x32xf32>
    %82 = arith.mulf %80, %81 : vector<8x8x32xf32>
    %cst_33 = arith.constant 1.000000e+00 : f32
    %83 = vector.broadcast %cst_33 : f32 to vector<8x8x32xf32>
    %84 = arith.addf %72, %83 : vector<8x8x32xf32>
    %85 = arith.mulf %82, %84 : vector<8x8x32xf32>
    %86 = arith.addf %85, %75 : vector<8x8x32xf32>
    %c0_34 = arith.constant 0 : index
    %c0_35 = arith.constant 0 : index
    %c0_36 = arith.constant 0 : index
    %87 = vector.load %arg5[%c0_34, %c0_35, %c0_36] : memref<1x1x128xf32, #tpu.memory_space<vmem>>, vector<1x1x128xf32>
    %88 = vector.shape_cast %87 : vector<1x1x128xf32> to vector<1x128xf32>
    %89 = vector.extract_strided_slice %88 {offsets = [0, 0], sizes = [1, 32], strides = [1, 1]} : vector<1x128xf32> to vector<1x32xf32>
    %90 = vector.extract_strided_slice %88 {offsets = [0, 32], sizes = [1, 32], strides = [1, 1]} : vector<1x128xf32> to vector<1x32xf32>
    %91 = vector.extract_strided_slice %88 {offsets = [0, 64], sizes = [1, 32], strides = [1, 1]} : vector<1x128xf32> to vector<1x32xf32>
    %92 = vector.extract_strided_slice %88 {offsets = [0, 96], sizes = [1, 32], strides = [1, 1]} : vector<1x128xf32> to vector<1x32xf32>
    %cst_37 = arith.constant 1.000000e+00 : f32
    %93 = vector.broadcast %cst_37 : f32 to vector<1x32xf32>
    %94 = arith.addf %90, %93 : vector<1x32xf32>
    %95 = vector.shape_cast %94 : vector<1x32xf32> to vector<1x1x32xf32>
    %96 = vector.broadcast %95 : vector<1x1x32xf32> to vector<8x8x32xf32>
    %97 = arith.mulf %96, %86 : vector<8x8x32xf32>
    %98 = vector.shape_cast %89 : vector<1x32xf32> to vector<1x1x32xf32>
    %99 = vector.broadcast %98 : vector<1x1x32xf32> to vector<8x8x32xf32>
    %100 = arith.addf %99, %97 : vector<8x8x32xf32>
    %101 = vector.shape_cast %100 : vector<8x8x32xf32> to vector<64x32xf32>
    %102 = arith.truncf %101 : vector<64x32xf32> to vector<64x32xbf16>
    %c0_38 = arith.constant 0 : index
    %c0_39 = arith.constant 0 : index
    %103 = vector.load %arg10[%c0_38, %c0_39] : memref<32x16xbf16, #tpu.memory_space<vmem>>, vector<32x16xbf16>
    %cst_40 = arith.constant dense<0.000000e+00> : vector<64x16xf32>
    %104 = tpu.matmul %102, %103, %cst_40 {dimension_numbers = #tpu.dot_dimension_numbers<[1], [0], [0], [1], [0, 0, 1, 1], [], []>} : vector<64x32xbf16>, vector<32x16xbf16>, vector<64x16xf32> -> vector<64x16xf32>
    %c0_41 = arith.constant 0 : index
    %c0_42 = arith.constant 0 : index
    %105 = vector.load %arg11[%c0_41, %c0_42] : memref<1x16xf32, #tpu.memory_space<vmem>>, vector<1x16xf32>
    %106 = vector.broadcast %105 : vector<1x16xf32> to vector<64x16xf32>
    %107 = arith.addf %104, %106 : vector<64x16xf32>
    %108 = vector.shape_cast %107 : vector<64x16xf32> to vector<8x8x16xf32>
    %109 = vector.broadcast %31 : vector<8x8x1xf32> to vector<8x8x16xf32>
    %110 = arith.mulf %108, %109 : vector<8x8x16xf32>
    %111 = arith.addf %26, %110 : vector<8x8x16xf32>
    %cst_43 = arith.constant dense<0.000000e+00> : vector<8x8xf32>
    %112 = vector.multi_reduction <add>, %111, %cst_43 [2] : vector<8x8x16xf32> to vector<8x8xf32>
    %113 = vector.shape_cast %112 : vector<8x8xf32> to vector<8x8x1xf32>
    %cst_44 = arith.constant 1.600000e+01 : f32
    %114 = vector.broadcast %cst_44 : f32 to vector<8x8x1xf32>
    %115 = arith.divf %113, %114 : vector<8x8x1xf32>
    %116 = vector.broadcast %115 : vector<8x8x1xf32> to vector<8x8x16xf32>
    %117 = arith.subf %111, %116 : vector<8x8x16xf32>
    %118 = arith.mulf %117, %117 : vector<8x8x16xf32>
    %cst_45 = arith.constant dense<0.000000e+00> : vector<8x8xf32>
    %119 = vector.multi_reduction <add>, %118, %cst_45 [2] : vector<8x8x16xf32> to vector<8x8xf32>
    %120 = vector.shape_cast %119 : vector<8x8xf32> to vector<8x8x1xf32>
    %cst_46 = arith.constant 1.600000e+01 : f32
    %121 = vector.broadcast %cst_46 : f32 to vector<8x8x1xf32>
    %122 = arith.divf %120, %121 : vector<8x8x1xf32>
    %123 = vector.broadcast %115 : vector<8x8x1xf32> to vector<8x8x16xf32>
    %124 = arith.subf %111, %123 : vector<8x8x16xf32>
    %cst_47 = arith.constant 9.99999974E-6 : f32
    %125 = vector.broadcast %cst_47 : f32 to vector<8x8x1xf32>
    %126 = arith.addf %122, %125 : vector<8x8x1xf32>
    %127 = math.rsqrt %126 : vector<8x8x1xf32>
    %128 = vector.broadcast %127 : vector<8x8x1xf32> to vector<8x8x16xf32>
    %129 = arith.mulf %124, %128 : vector<8x8x16xf32>
    %c0_48 = arith.constant 0 : index
    %c0_49 = arith.constant 0 : index
    %130 = vector.load %arg14[%c0_48, %c0_49] : memref<1x16xf32, #tpu.memory_space<vmem>>, vector<1x16xf32>
    %131 = vector.shape_cast %130 : vector<1x16xf32> to vector<1x1x16xf32>
    %132 = vector.broadcast %131 : vector<1x1x16xf32> to vector<8x8x16xf32>
    %133 = arith.mulf %129, %132 : vector<8x8x16xf32>
    %c0_50 = arith.constant 0 : index
    %c0_51 = arith.constant 0 : index
    %134 = vector.load %arg15[%c0_50, %c0_51] : memref<1x16xf32, #tpu.memory_space<vmem>>, vector<1x16xf32>
    %135 = vector.shape_cast %134 : vector<1x16xf32> to vector<1x1x16xf32>
    %136 = vector.broadcast %135 : vector<1x1x16xf32> to vector<8x8x16xf32>
    %137 = arith.addf %133, %136 : vector<8x8x16xf32>
    %138 = vector.shape_cast %137 : vector<8x8x16xf32> to vector<64x16xf32>
    %139 = arith.truncf %138 : vector<64x16xf32> to vector<64x16xbf16>
    %c0_52 = arith.constant 0 : index
    %c0_53 = arith.constant 0 : index
    %140 = vector.load %arg16[%c0_52, %c0_53] : memref<16x32xbf16, #tpu.memory_space<vmem>>, vector<16x32xbf16>
    %cst_54 = arith.constant dense<0.000000e+00> : vector<64x32xf32>
    %141 = tpu.matmul %139, %140, %cst_54 {dimension_numbers = #tpu.dot_dimension_numbers<[1], [0], [0], [1], [0, 0, 1, 1], [], []>} : vector<64x16xbf16>, vector<16x32xbf16>, vector<64x32xf32> -> vector<64x32xf32>
    %c0_55 = arith.constant 0 : index
    %c0_56 = arith.constant 0 : index
    %142 = vector.load %arg17[%c0_55, %c0_56] : memref<1x32xf32, #tpu.memory_space<vmem>>, vector<1x32xf32>
    %143 = vector.broadcast %142 : vector<1x32xf32> to vector<64x32xf32>
    %144 = arith.addf %141, %143 : vector<64x32xf32>
    %cst_57 = arith.constant 0.000000e+00 : f32
    %145 = vector.broadcast %cst_57 : f32 to vector<64x32xf32>
    %146 = arith.maximumf %144, %145 : vector<64x32xf32>
    %147 = arith.truncf %146 : vector<64x32xf32> to vector<64x32xbf16>
    %c0_58 = arith.constant 0 : index
    %c0_59 = arith.constant 0 : index
    %148 = vector.load %arg18[%c0_58, %c0_59] : memref<32x16xbf16, #tpu.memory_space<vmem>>, vector<32x16xbf16>
    %cst_60 = arith.constant dense<0.000000e+00> : vector<64x16xf32>
    %149 = tpu.matmul %147, %148, %cst_60 {dimension_numbers = #tpu.dot_dimension_numbers<[1], [0], [0], [1], [0, 0, 1, 1], [], []>} : vector<64x32xbf16>, vector<32x16xbf16>, vector<64x16xf32> -> vector<64x16xf32>
    %c0_61 = arith.constant 0 : index
    %c0_62 = arith.constant 0 : index
    %150 = vector.load %arg19[%c0_61, %c0_62] : memref<1x16xf32, #tpu.memory_space<vmem>>, vector<1x16xf32>
    %151 = vector.broadcast %150 : vector<1x16xf32> to vector<64x16xf32>
    %152 = arith.addf %149, %151 : vector<64x16xf32>
    %153 = vector.shape_cast %152 : vector<64x16xf32> to vector<8x8x16xf32>
    %154 = arith.addf %137, %153 : vector<8x8x16xf32>
    %cst_63 = arith.constant dense<0.000000e+00> : vector<8x8xf32>
    %155 = vector.multi_reduction <add>, %154, %cst_63 [2] : vector<8x8x16xf32> to vector<8x8xf32>
    %156 = vector.shape_cast %155 : vector<8x8xf32> to vector<8x8x1xf32>
    %cst_64 = arith.constant 1.600000e+01 : f32
    %157 = vector.broadcast %cst_64 : f32 to vector<8x8x1xf32>
    %158 = arith.divf %156, %157 : vector<8x8x1xf32>
    %159 = vector.broadcast %158 : vector<8x8x1xf32> to vector<8x8x16xf32>
    %160 = arith.subf %154, %159 : vector<8x8x16xf32>
    %161 = arith.mulf %160, %160 : vector<8x8x16xf32>
    %cst_65 = arith.constant dense<0.000000e+00> : vector<8x8xf32>
    %162 = vector.multi_reduction <add>, %161, %cst_65 [2] : vector<8x8x16xf32> to vector<8x8xf32>
    %163 = vector.shape_cast %162 : vector<8x8xf32> to vector<8x8x1xf32>
    %cst_66 = arith.constant 1.600000e+01 : f32
    %164 = vector.broadcast %cst_66 : f32 to vector<8x8x1xf32>
    %165 = arith.divf %163, %164 : vector<8x8x1xf32>
    %166 = vector.broadcast %158 : vector<8x8x1xf32> to vector<8x8x16xf32>
    %167 = arith.subf %154, %166 : vector<8x8x16xf32>
    %cst_67 = arith.constant 9.99999974E-6 : f32
    %168 = vector.broadcast %cst_67 : f32 to vector<8x8x1xf32>
    %169 = arith.addf %165, %168 : vector<8x8x1xf32>
    %170 = math.rsqrt %169 : vector<8x8x1xf32>
    %171 = vector.broadcast %170 : vector<8x8x1xf32> to vector<8x8x16xf32>
    %172 = arith.mulf %167, %171 : vector<8x8x16xf32>
    %c0_68 = arith.constant 0 : index
    %c0_69 = arith.constant 0 : index
    %173 = vector.load %arg20[%c0_68, %c0_69] : memref<1x16xf32, #tpu.memory_space<vmem>>, vector<1x16xf32>
    %174 = vector.shape_cast %173 : vector<1x16xf32> to vector<1x1x16xf32>
    %175 = vector.broadcast %174 : vector<1x1x16xf32> to vector<8x8x16xf32>
    %176 = arith.mulf %172, %175 : vector<8x8x16xf32>
    %c0_70 = arith.constant 0 : index
    %c0_71 = arith.constant 0 : index
    %177 = vector.load %arg21[%c0_70, %c0_71] : memref<1x16xf32, #tpu.memory_space<vmem>>, vector<1x16xf32>
    %178 = vector.shape_cast %177 : vector<1x16xf32> to vector<1x1x16xf32>
    %179 = vector.broadcast %178 : vector<1x1x16xf32> to vector<8x8x16xf32>
    %180 = arith.addf %176, %179 : vector<8x8x16xf32>
    %181 = vector.shape_cast %180 : vector<8x8x16xf32> to vector<1x8x8x16xf32>
    %182 = arith.truncf %181 : vector<1x8x8x16xf32> to vector<1x8x8x16xbf16>
    %c0_72 = arith.constant 0 : index
    %c0_73 = arith.constant 0 : index
    %c0_74 = arith.constant 0 : index
    %c0_75 = arith.constant 0 : index
    %183 = vector.load %arg22[%c0_72, %c0_73, %c0_74, %c0_75] : memref<1x8x8x16xbf16, #tpu.memory_space<vmem>>, vector<1x8x8x16xbf16>
    tpu.vector_store %arg22[%c0_72, %c0_73, %c0_74, %c0_75], %182 {strides = array<i32>} : memref<1x8x8x16xbf16, #tpu.memory_space<vmem>>, vector<1x8x8x16xbf16>,
    %184 = vector.shape_cast %3 : vector<8x1xf32> to vector<1x8x1xf32>
    %cst_76 = arith.constant 0.000000e+00 : f32
    %185 = vector.broadcast %cst_76 : f32 to vector<1x8x1xf32>
    %186 = arith.cmpf ogt, %184, %185 : vector<1x8x1xf32>
    %cst_77 = arith.constant -1.000000e+30 : f32
    %187 = vector.shape_cast %186 : vector<1x8x1xi1> to vector<1x8x1xi1>
    %188 = vector.broadcast %187 : vector<1x8x1xi1> to vector<8x8x32xi1>
    %189 = vector.broadcast %cst_77 : f32 to vector<8x8x32xf32>
    %190 = arith.select %188, %86, %189 : vector<8x8x32xi1>, vector<8x8x32xf32>
    %cst_78 = arith.constant dense<0xFF800000> : vector<8x32xf32>
    %191 = vector.multi_reduction <maximumf>, %190, %cst_78 [1] : vector<8x8x32xf32> to vector<8x32xf32>
    %192 = vector.shape_cast %191 : vector<8x32xf32> to vector<8x1x32xf32>
    %193 = vector.broadcast %192 : vector<8x1x32xf32> to vector<8x8x32xf32>
    %194 = arith.subf %190, %193 : vector<8x8x32xf32>
    %195 = math.exp %194 : vector<8x8x32xf32>
    %196 = vector.shape_cast %3 : vector<8x1xf32> to vector<1x8x1xf32>
    %197 = vector.broadcast %196 : vector<1x8x1xf32> to vector<8x8x32xf32>
    %198 = arith.mulf %195, %197 : vector<8x8x32xf32>
    %cst_79 = arith.constant dense<0.000000e+00> : vector<8x32xf32>
    %199 = vector.multi_reduction <add>, %198, %cst_79 [1] : vector<8x8x32xf32> to vector<8x32xf32>
    %200 = vector.shape_cast %199 : vector<8x32xf32> to vector<8x1x32xf32>
    %cst_80 = arith.constant 1.000000e-30 : f32
    %201 = vector.broadcast %cst_80 : f32 to vector<8x1x32xf32>
    %202 = arith.maximumf %200, %201 : vector<8x1x32xf32>
    %203 = tpu.reciprocal %202 {approx = true} : vector<8x1x32xf32> -> vector<8x1x32xf32>
    %204 = vector.broadcast %203 : vector<8x1x32xf32> to vector<8x8x32xf32>
    %205 = arith.mulf %198, %204 : vector<8x8x32xf32>
    %206 = vector.shape_cast %23 : vector<8x32xf32> to vector<1x8x32xf32>
    %207 = vector.broadcast %206 : vector<1x8x32xf32> to vector<8x8x32xf32>
    %208 = arith.mulf %205, %207 : vector<8x8x32xf32>
    %cst_81 = arith.constant dense<0.000000e+00> : vector<8x32xf32>
    %209 = vector.multi_reduction <add>, %208, %cst_81 [1] : vector<8x8x32xf32> to vector<8x32xf32>
    %cst_82 = arith.constant 1.000000e+00 : f32
    %210 = vector.broadcast %cst_82 : f32 to vector<1x32xf32>
    %211 = arith.addf %92, %210 : vector<1x32xf32>
    %212 = vector.broadcast %211 : vector<1x32xf32> to vector<8x32xf32>
    %213 = arith.mulf %212, %209 : vector<8x32xf32>
    %214 = vector.broadcast %91 : vector<1x32xf32> to vector<8x32xf32>
    %215 = arith.addf %214, %213 : vector<8x32xf32>
    %216 = arith.truncf %215 : vector<8x32xf32> to vector<8x32xbf16>
    %c0_83 = arith.constant 0 : index
    %c0_84 = arith.constant 0 : index
    %217 = vector.load %arg12[%c0_83, %c0_84] : memref<32x32xbf16, #tpu.memory_space<vmem>>, vector<32x32xbf16>
    %cst_85 = arith.constant dense<0.000000e+00> : vector<8x32xf32>
    %218 = tpu.matmul %216, %217, %cst_85 {dimension_numbers = #tpu.dot_dimension_numbers<[1], [0], [0], [1], [0, 0, 1, 1], [], []>} : vector<8x32xbf16>, vector<32x32xbf16>, vector<8x32xf32> -> vector<8x32xf32>
    %c0_86 = arith.constant 0 : index
    %c0_87 = arith.constant 0 : index
    %219 = vector.load %arg13[%c0_86, %c0_87] : memref<1x32xf32, #tpu.memory_space<vmem>>, vector<1x32xf32>
    %220 = vector.broadcast %219 : vector<1x32xf32> to vector<8x32xf32>
    %221 = arith.addf %218, %220 : vector<8x32xf32>
    %222 = vector.broadcast %1 : vector<8x1xf32> to vector<8x32xf32>
    %223 = arith.mulf %221, %222 : vector<8x32xf32>
    %224 = vector.shape_cast %223 : vector<8x32xf32> to vector<1x8x32xf32>
    %c0_88 = arith.constant 0 : index
    %c0_89 = arith.constant 0 : index
    %c0_90 = arith.constant 0 : index
    %225 = vector.load %arg23[%c0_88, %c0_89, %c0_90] : memref<1x8x32xf32, #tpu.memory_space<vmem>>, vector<1x8x32xf32>
    tpu.vector_store %arg23[%c0_88, %c0_89, %c0_90], %224 {strides = array<i32>} : memref<1x8x32xf32, #tpu.memory_space<vmem>>, vector<1x8x32xf32>,
    return
  }
  func.func @transform_0(%arg0: i32, %arg1: i32) -> (i32, i32, i32) {
    %c0_i32 = arith.constant 0 : i32
    %c0_i32_0 = arith.constant 0 : i32
    return %arg0, %arg1, %c0_i32 : i32, i32, i32
  }
  func.func @transform_1(%arg0: i32, %arg1: i32) -> (i32, i32, i32) {
    %c0_i32 = arith.constant 0 : i32
    %c0_i32_0 = arith.constant 0 : i32
    %c0_i32_1 = arith.constant 0 : i32
    return %arg0, %c0_i32, %c0_i32_0 : i32, i32, i32
  }
  func.func @transform_2(%arg0: i32, %arg1: i32) -> (i32, i32, i32, i32) {
    %c0_i32 = arith.constant 0 : i32
    %c0_i32_0 = arith.constant 0 : i32
    %c0_i32_1 = arith.constant 0 : i32
    return %arg0, %arg1, %c0_i32, %c0_i32_0 : i32, i32, i32, i32
  }
  func.func @transform_3(%arg0: i32, %arg1: i32) -> (i32, i32, i32) {
    %c0_i32 = arith.constant 0 : i32
    %c0_i32_0 = arith.constant 0 : i32
    %c0_i32_1 = arith.constant 0 : i32
    return %arg0, %c0_i32, %c0_i32_0 : i32, i32, i32
  }
  func.func @transform_4(%arg0: i32, %arg1: i32) -> (i32, i32, i32) {
    %c0_i32 = arith.constant 0 : i32
    %c0_i32_0 = arith.constant 0 : i32
    return %arg0, %arg1, %c0_i32 : i32, i32, i32
  }
  func.func @transform_5(%arg0: i32, %arg1: i32) -> (i32, i32, i32) {
    %c0_i32 = arith.constant 0 : i32
    %c0_i32_0 = arith.constant 0 : i32
    %c0_i32_1 = arith.constant 0 : i32
    return %arg0, %c0_i32, %c0_i32_0 : i32, i32, i32
  }
  func.func @transform_6(%arg0: i32, %arg1: i32) -> (i32, i32) {
    %c0_i32 = arith.constant 0 : i32
    %c0_i32_0 = arith.constant 0 : i32
    %c0_i32_1 = arith.constant 0 : i32
    return %c0_i32, %c0_i32_0 : i32, i32
  }
  func.func @transform_7(%arg0: i32, %arg1: i32) -> (i32, i32) {
    %c0_i32 = arith.constant 0 : i32
    %c0_i32_0 = arith.constant 0 : i32
    %c0_i32_1 = arith.constant 0 : i32
    return %c0_i32, %c0_i32_0 : i32, i32
  }
  func.func @transform_8(%arg0: i32, %arg1: i32) -> (i32, i32) {
    %c0_i32 = arith.constant 0 : i32
    %c0_i32_0 = arith.constant 0 : i32
    %c0_i32_1 = arith.constant 0 : i32
    return %c0_i32, %c0_i32_0 : i32, i32
  }
  func.func @transform_9(%arg0: i32, %arg1: i32) -> (i32, i32) {
    %c0_i32 = arith.constant 0 : i32
    %c0_i32_0 = arith.constant 0 : i32
    %c0_i32_1 = arith.constant 0 : i32
    return %c0_i32, %c0_i32_0 : i32, i32
  }
  func.func @transform_10(%arg0: i32, %arg1: i32) -> (i32, i32) {
    %c0_i32 = arith.constant 0 : i32
    %c0_i32_0 = arith.constant 0 : i32
    %c0_i32_1 = arith.constant 0 : i32
    return %c0_i32, %c0_i32_0 : i32, i32
  }
  func.func @transform_11(%arg0: i32, %arg1: i32) -> (i32, i32) {
    %c0_i32 = arith.constant 0 : i32
    %c0_i32_0 = arith.constant 0 : i32
    %c0_i32_1 = arith.constant 0 : i32
    return %c0_i32, %c0_i32_0 : i32, i32
  }
  func.func @transform_12(%arg0: i32, %arg1: i32) -> (i32, i32) {
    %c0_i32 = arith.constant 0 : i32
    %c0_i32_0 = arith.constant 0 : i32
    %c0_i32_1 = arith.constant 0 : i32
    return %c0_i32, %c0_i32_0 : i32, i32
  }
  func.func @transform_13(%arg0: i32, %arg1: i32) -> (i32, i32) {
    %c0_i32 = arith.constant 0 : i32
    %c0_i32_0 = arith.constant 0 : i32
    %c0_i32_1 = arith.constant 0 : i32
    return %c0_i32, %c0_i32_0 : i32, i32
  }
  func.func @transform_14(%arg0: i32, %arg1: i32) -> (i32, i32) {
    %c0_i32 = arith.constant 0 : i32
    %c0_i32_0 = arith.constant 0 : i32
    %c0_i32_1 = arith.constant 0 : i32
    return %c0_i32, %c0_i32_0 : i32, i32
  }
  func.func @transform_15(%arg0: i32, %arg1: i32) -> (i32, i32) {
    %c0_i32 = arith.constant 0 : i32
    %c0_i32_0 = arith.constant 0 : i32
    %c0_i32_1 = arith.constant 0 : i32
    return %c0_i32, %c0_i32_0 : i32, i32
  }
  func.func @transform_16(%arg0: i32, %arg1: i32) -> (i32, i32) {
    %c0_i32 = arith.constant 0 : i32
    %c0_i32_0 = arith.constant 0 : i32
    %c0_i32_1 = arith.constant 0 : i32
    return %c0_i32, %c0_i32_0 : i32, i32
  }
  func.func @transform_17(%arg0: i32, %arg1: i32) -> (i32, i32) {
    %c0_i32 = arith.constant 0 : i32
    %c0_i32_0 = arith.constant 0 : i32
    %c0_i32_1 = arith.constant 0 : i32
    return %c0_i32, %c0_i32_0 : i32, i32
  }
  func.func @transform_18(%arg0: i32, %arg1: i32) -> (i32, i32) {
    %c0_i32 = arith.constant 0 : i32
    %c0_i32_0 = arith.constant 0 : i32
    %c0_i32_1 = arith.constant 0 : i32
    return %c0_i32, %c0_i32_0 : i32, i32
  }
  func.func @transform_19(%arg0: i32, %arg1: i32) -> (i32, i32) {
    %c0_i32 = arith.constant 0 : i32
    %c0_i32_0 = arith.constant 0 : i32
    %c0_i32_1 = arith.constant 0 : i32
    return %c0_i32, %c0_i32_0 : i32, i32
  }
  func.func @transform_20(%arg0: i32, %arg1: i32) -> (i32, i32, i32, i32) {
    %c0_i32 = arith.constant 0 : i32
    %c0_i32_0 = arith.constant 0 : i32
    %c0_i32_1 = arith.constant 0 : i32
    return %arg0, %arg1, %c0_i32, %c0_i32_0 : i32, i32, i32, i32
  }
  func.func @transform_21(%arg0: i32, %arg1: i32) -> (i32, i32, i32) {
    %c0_i32 = arith.constant 0 : i32
    %c0_i32_0 = arith.constant 0 : i32
    return %arg0, %arg1, %c0_i32 : i32, i32, i32
  }
  func.func @transform_22(%arg0: i32, %arg1: i32) -> (i32, i32, i32, i32) {
    %c0_i32 = arith.constant 0 : i32
    %c0_i32_0 = arith.constant 0 : i32
    %c0_i32_1 = arith.constant 0 : i32
    return %arg0, %arg1, %c0_i32, %c0_i32_0 : i32, i32, i32, i32
  }
}

module attributes {stable_mosaic.version = 11 : i64} {
  func.func @_mlp2_kernel(%arg0: i32, %arg1: memref<16x32xf32, #tpu.memory_space<vmem>>, %arg2: memref<32x16xbf16, #tpu.memory_space<vmem>>, %arg3: memref<1x16xf32, #tpu.memory_space<vmem>>, %arg4: memref<16x4xbf16, #tpu.memory_space<vmem>>, %arg5: memref<1x4xf32, #tpu.memory_space<vmem>>, %arg6: memref<16x4xf32, #tpu.memory_space<vmem>>) attributes {dimension_semantics = [#tpu.dimension_semantics<parallel>], iteration_bounds = array<i64: 1>, scalar_prefetch = 0 : i64, scratch_operands = 0 : i64, tpu.core_type = #tpu.core_type<tc>, window_params = [{transform_indices = @transform_0, window_bounds = array<i64: 16, 32>}, {pipeline_mode = #tpu.pipeline_mode<synchronous>, transform_indices = @transform_1, window_bounds = array<i64: 32, 16>}, {pipeline_mode = #tpu.pipeline_mode<synchronous>, transform_indices = @transform_2, window_bounds = array<i64: 1, 16>}, {pipeline_mode = #tpu.pipeline_mode<synchronous>, transform_indices = @transform_3, window_bounds = array<i64: 16, 4>}, {pipeline_mode = #tpu.pipeline_mode<synchronous>, transform_indices = @transform_4, window_bounds = array<i64: 1, 4>}, {transform_indices = @transform_5, window_bounds = array<i64: 16, 4>}]} {
    %c0 = arith.constant 0 : index
    %c0_0 = arith.constant 0 : index
    %0 = vector.load %arg1[%c0, %c0_0] : memref<16x32xf32, #tpu.memory_space<vmem>>, vector<16x32xf32>
    %1 = arith.truncf %0 : vector<16x32xf32> to vector<16x32xbf16>
    %c0_1 = arith.constant 0 : index
    %c0_2 = arith.constant 0 : index
    %2 = vector.load %arg2[%c0_1, %c0_2] : memref<32x16xbf16, #tpu.memory_space<vmem>>, vector<32x16xbf16>
    %cst = arith.constant dense<0.000000e+00> : vector<16x16xf32>
    %3 = tpu.matmul %1, %2, %cst {dimension_numbers = #tpu.dot_dimension_numbers<[1], [0], [0], [1], [0, 0, 1, 1], [], []>} : vector<16x32xbf16>, vector<32x16xbf16>, vector<16x16xf32> -> vector<16x16xf32>
    %c0_3 = arith.constant 0 : index
    %c0_4 = arith.constant 0 : index
    %4 = vector.load %arg3[%c0_3, %c0_4] : memref<1x16xf32, #tpu.memory_space<vmem>>, vector<1x16xf32>
    %5 = vector.broadcast %4 : vector<1x16xf32> to vector<16x16xf32>
    %6 = arith.addf %3, %5 : vector<16x16xf32>
    %cst_5 = arith.constant 0.000000e+00 : f32
    %7 = vector.broadcast %cst_5 : f32 to vector<16x16xf32>
    %8 = arith.maximumf %6, %7 : vector<16x16xf32>
    %9 = arith.truncf %8 : vector<16x16xf32> to vector<16x16xbf16>
    %c0_6 = arith.constant 0 : index
    %c0_7 = arith.constant 0 : index
    %10 = vector.load %arg4[%c0_6, %c0_7] : memref<16x4xbf16, #tpu.memory_space<vmem>>, vector<16x4xbf16>
    %cst_8 = arith.constant dense<0.000000e+00> : vector<16x4xf32>
    %11 = tpu.matmul %9, %10, %cst_8 {dimension_numbers = #tpu.dot_dimension_numbers<[1], [0], [0], [1], [0, 0, 1, 1], [], []>} : vector<16x16xbf16>, vector<16x4xbf16>, vector<16x4xf32> -> vector<16x4xf32>
    %c0_9 = arith.constant 0 : index
    %c0_10 = arith.constant 0 : index
    %12 = vector.load %arg5[%c0_9, %c0_10] : memref<1x4xf32, #tpu.memory_space<vmem>>, vector<1x4xf32>
    %13 = vector.broadcast %12 : vector<1x4xf32> to vector<16x4xf32>
    %14 = arith.addf %11, %13 : vector<16x4xf32>
    %c0_11 = arith.constant 0 : index
    %c0_12 = arith.constant 0 : index
    %15 = vector.load %arg6[%c0_11, %c0_12] : memref<16x4xf32, #tpu.memory_space<vmem>>, vector<16x4xf32>
    tpu.vector_store %arg6[%c0_11, %c0_12], %14 {strides = array<i32>} : memref<16x4xf32, #tpu.memory_space<vmem>>, vector<16x4xf32>,
    return
  }
  func.func @transform_0(%arg0: i32) -> (i32, i32) {
    %c0_i32 = arith.constant 0 : i32
    %c0_i32_0 = arith.constant 0 : i32
    return %arg0, %c0_i32 : i32, i32
  }
  func.func @transform_1(%arg0: i32) -> (i32, i32) {
    %c0_i32 = arith.constant 0 : i32
    %c0_i32_0 = arith.constant 0 : i32
    %c0_i32_1 = arith.constant 0 : i32
    return %c0_i32, %c0_i32_0 : i32, i32
  }
  func.func @transform_2(%arg0: i32) -> (i32, i32) {
    %c0_i32 = arith.constant 0 : i32
    %c0_i32_0 = arith.constant 0 : i32
    %c0_i32_1 = arith.constant 0 : i32
    return %c0_i32, %c0_i32_0 : i32, i32
  }
  func.func @transform_3(%arg0: i32) -> (i32, i32) {
    %c0_i32 = arith.constant 0 : i32
    %c0_i32_0 = arith.constant 0 : i32
    %c0_i32_1 = arith.constant 0 : i32
    return %c0_i32, %c0_i32_0 : i32, i32
  }
  func.func @transform_4(%arg0: i32) -> (i32, i32) {
    %c0_i32 = arith.constant 0 : i32
    %c0_i32_0 = arith.constant 0 : i32
    %c0_i32_1 = arith.constant 0 : i32
    return %c0_i32, %c0_i32_0 : i32, i32
  }
  func.func @transform_5(%arg0: i32) -> (i32, i32) {
    %c0_i32 = arith.constant 0 : i32
    %c0_i32_0 = arith.constant 0 : i32
    return %arg0, %c0_i32 : i32, i32
  }
}

module attributes {stable_mosaic.version = 11 : i64} {
  func.func @_mlp2_kernel(%arg0: i32, %arg1: memref<128x16xbf16, #tpu.memory_space<vmem>>, %arg2: memref<16x8xbf16, #tpu.memory_space<vmem>>, %arg3: memref<1x8xf32, #tpu.memory_space<vmem>>, %arg4: memref<8x2xbf16, #tpu.memory_space<vmem>>, %arg5: memref<1x2xf32, #tpu.memory_space<vmem>>, %arg6: memref<128x2xf32, #tpu.memory_space<vmem>>) attributes {dimension_semantics = [#tpu.dimension_semantics<parallel>], iteration_bounds = array<i64: 1>, scalar_prefetch = 0 : i64, scratch_operands = 0 : i64, tpu.core_type = #tpu.core_type<tc>, window_params = [{transform_indices = @transform_0, window_bounds = array<i64: 128, 16>}, {pipeline_mode = #tpu.pipeline_mode<synchronous>, transform_indices = @transform_1, window_bounds = array<i64: 16, 8>}, {pipeline_mode = #tpu.pipeline_mode<synchronous>, transform_indices = @transform_2, window_bounds = array<i64: 1, 8>}, {pipeline_mode = #tpu.pipeline_mode<synchronous>, transform_indices = @transform_3, window_bounds = array<i64: 8, 2>}, {pipeline_mode = #tpu.pipeline_mode<synchronous>, transform_indices = @transform_4, window_bounds = array<i64: 1, 2>}, {transform_indices = @transform_5, window_bounds = array<i64: 128, 2>}]} {
    %c0 = arith.constant 0 : index
    %c0_0 = arith.constant 0 : index
    %0 = vector.load %arg1[%c0, %c0_0] : memref<128x16xbf16, #tpu.memory_space<vmem>>, vector<128x16xbf16>
    %c0_1 = arith.constant 0 : index
    %c0_2 = arith.constant 0 : index
    %1 = vector.load %arg2[%c0_1, %c0_2] : memref<16x8xbf16, #tpu.memory_space<vmem>>, vector<16x8xbf16>
    %cst = arith.constant dense<0.000000e+00> : vector<128x8xf32>
    %2 = tpu.matmul %0, %1, %cst {dimension_numbers = #tpu.dot_dimension_numbers<[1], [0], [0], [1], [0, 0, 1, 1], [], []>} : vector<128x16xbf16>, vector<16x8xbf16>, vector<128x8xf32> -> vector<128x8xf32>
    %c0_3 = arith.constant 0 : index
    %c0_4 = arith.constant 0 : index
    %3 = vector.load %arg3[%c0_3, %c0_4] : memref<1x8xf32, #tpu.memory_space<vmem>>, vector<1x8xf32>
    %4 = vector.broadcast %3 : vector<1x8xf32> to vector<128x8xf32>
    %5 = arith.addf %2, %4 : vector<128x8xf32>
    %cst_5 = arith.constant 0.000000e+00 : f32
    %6 = vector.broadcast %cst_5 : f32 to vector<128x8xf32>
    %7 = arith.maximumf %5, %6 : vector<128x8xf32>
    %8 = arith.truncf %7 : vector<128x8xf32> to vector<128x8xbf16>
    %c0_6 = arith.constant 0 : index
    %c0_7 = arith.constant 0 : index
    %9 = vector.load %arg4[%c0_6, %c0_7] : memref<8x2xbf16, #tpu.memory_space<vmem>>, vector<8x2xbf16>
    %cst_8 = arith.constant dense<0.000000e+00> : vector<128x2xf32>
    %10 = tpu.matmul %8, %9, %cst_8 {dimension_numbers = #tpu.dot_dimension_numbers<[1], [0], [0], [1], [0, 0, 1, 1], [], []>} : vector<128x8xbf16>, vector<8x2xbf16>, vector<128x2xf32> -> vector<128x2xf32>
    %c0_9 = arith.constant 0 : index
    %c0_10 = arith.constant 0 : index
    %11 = vector.load %arg5[%c0_9, %c0_10] : memref<1x2xf32, #tpu.memory_space<vmem>>, vector<1x2xf32>
    %12 = vector.broadcast %11 : vector<1x2xf32> to vector<128x2xf32>
    %13 = arith.addf %10, %12 : vector<128x2xf32>
    %c0_11 = arith.constant 0 : index
    %c0_12 = arith.constant 0 : index
    %14 = vector.load %arg6[%c0_11, %c0_12] : memref<128x2xf32, #tpu.memory_space<vmem>>, vector<128x2xf32>
    tpu.vector_store %arg6[%c0_11, %c0_12], %13 {strides = array<i32>} : memref<128x2xf32, #tpu.memory_space<vmem>>, vector<128x2xf32>,
    return
  }
  func.func @transform_0(%arg0: i32) -> (i32, i32) {
    %c0_i32 = arith.constant 0 : i32
    %c0_i32_0 = arith.constant 0 : i32
    return %arg0, %c0_i32 : i32, i32
  }
  func.func @transform_1(%arg0: i32) -> (i32, i32) {
    %c0_i32 = arith.constant 0 : i32
    %c0_i32_0 = arith.constant 0 : i32
    %c0_i32_1 = arith.constant 0 : i32
    return %c0_i32, %c0_i32_0 : i32, i32
  }
  func.func @transform_2(%arg0: i32) -> (i32, i32) {
    %c0_i32 = arith.constant 0 : i32
    %c0_i32_0 = arith.constant 0 : i32
    %c0_i32_1 = arith.constant 0 : i32
    return %c0_i32, %c0_i32_0 : i32, i32
  }
  func.func @transform_3(%arg0: i32) -> (i32, i32) {
    %c0_i32 = arith.constant 0 : i32
    %c0_i32_0 = arith.constant 0 : i32
    %c0_i32_1 = arith.constant 0 : i32
    return %c0_i32, %c0_i32_0 : i32, i32
  }
  func.func @transform_4(%arg0: i32) -> (i32, i32) {
    %c0_i32 = arith.constant 0 : i32
    %c0_i32_0 = arith.constant 0 : i32
    %c0_i32_1 = arith.constant 0 : i32
    return %c0_i32, %c0_i32_0 : i32, i32
  }
  func.func @transform_5(%arg0: i32) -> (i32, i32) {
    %c0_i32 = arith.constant 0 : i32
    %c0_i32_0 = arith.constant 0 : i32
    return %arg0, %c0_i32 : i32, i32
  }
}

</mosaic_0001>

<bundles_post_ra>
// kernel: graph_transformer_forward.17
= control target key start
LH: loop header
LB: loop body
LE: loop exit
PB: predicated region body
PF: predicated region fallthrough
CT: control target
= control target key end

     0   :  { %v112_v0 = vmov 0.0   ;;  %vm113_vm0 = vmmov 0   ;;  %vm41_vm1 = vcmask 261120   ;;  %vm86_vm2 = vcmask 523264   ;;  %s155_s1 = inlined_call_operand.vmem [shape: bf16[32,64], index: 1, kind: input, shape index: {}]   ;;  %s156_s0 = inlined_call_operand.vmem [shape: f32[16,32], index: 0, kind: input, shape index: {}]   ;;  %s157_s2 = inlined_call_operand.vmem [shape: f32[1,64], index: 2, kind: input, shape index: {}]   ;;  %s158_s3 = inlined_call_operand.vmem [shape: f32[16,64], index: 3, kind: output, shape index: {}]  }
   0x1   :  { %100 = vmatprep.subr.bf16.mxu0 %v112_v0  ;;  %v110_v1 = vld [vmem:[%s155_s1 + $0x8] sm:$0xff]   ;;  %104 = vmatprep.mubr.msk.bf16.mxu0 %vm113_vm0, %v112_v0  ;;  %v111_v2 = vld [vmem:[%s155_s1] sm:$0xff]  }
   0x2   :  { %101 = vmatpush3.bf16.msra.mxu0 %v110_v1  ;;  %v15_v3 = vld [vmem:[%s156_s0] sm:$0xff]  ;;  %v16_v4 = vld [vmem:[%s156_s0 + $0x8] sm:$0xff] }
   0x3   :  { %102 = vmatprep.subr.bf16.mxu0 %v112_v0  ;;  %v17_v5 = vpack.c.bf16 %v16_v4, %v15_v3  ;;  %v93_v6 = vld [vmem:[%s157_s2] ss:$0 sm:$0xff] }
   0x6   :  { %103 = vmatpush3.bf16.msra.mxu0 %v111_v2 }
   0x9   :  { %105 = vmatmul.mubr.msk.bf16.vlgmr.msra.gmra.mxu0 %vm41_vm1, %v17_v5 }
  0xc9   :  { %v79_v7 = vpop.f32.mrf.mxu0 }
  0xca   :  { %v80_v8 = vadd.f32 %v93_v6, %v79_v7 }
  0xcb   :  { %v106_v9 = vpop.f32.mrf.mxu0 }
  0xcc   :  { %87 = vst.msk [vmem:[%s158_s3] sm:$0xff] %vm86_vm2, %v80_v8 }
  0xcd   :  { %v82_v10 = vpop.f32.mrf.mxu0 }
  0xce   :  { %v83_v11 = vadd.f32 %v93_v6, %v82_v10 }
  0xcf   :  { %v107_v12 = vpop.f32.mrf.mxu0 }
  0xd0   :  { %88 = vst.msk [vmem:[%s158_s3 + $0x8] sm:$0xff] %vm86_vm2, %v83_v11 }

// kernel: graph_transformer_forward.16
= control target key start
LH: loop header
LB: loop body
LE: loop exit
PB: predicated region body
PF: predicated region fallthrough
CT: control target
= control target key end

     0   :  { %v111_v0 = vmov 0.0   ;;  %vm112_vm0 = vmmov 0   ;;  %vm41_vm1 = vcmask 261120   ;;  %s154_s1 = inlined_call_operand.vmem [shape: bf16[32,32], index: 1, kind: input, shape index: {}]   ;;  %s155_s0 = inlined_call_operand.vmem [shape: f32[16,32], index: 0, kind: input, shape index: {}]   ;;  %s156_s2 = inlined_call_operand.vmem [shape: f32[1,32], index: 2, kind: input, shape index: {}]   ;;  %s157_s3 = inlined_call_operand.vmem [shape: f32[16,32], index: 3, kind: output, shape index: {}]  }
   0x1   :  { %99 = vmatprep.subr.bf16.mxu0 %v111_v0  ;;  %v109_v1 = vld [vmem:[%s154_s1 + $0x8] sm:$0xff]   ;;  %103 = vmatprep.mubr.msk.bf16.mxu0 %vm112_vm0, %v111_v0  ;;  %v110_v2 = vld [vmem:[%s154_s1] sm:$0xff]  }
   0x2   :  { %100 = vmatpush3.bf16.msra.mxu0 %v109_v1  ;;  %v15_v3 = vld [vmem:[%s155_s0] sm:$0xff]  ;;  %v16_v4 = vld [vmem:[%s155_s0 + $0x8] sm:$0xff] }
   0x3   :  { %101 = vmatprep.subr.bf16.mxu0 %v111_v0  ;;  %v17_v5 = vpack.c.bf16 %v16_v4, %v15_v3  ;;  %v92_v6 = vld [vmem:[%s156_s2] ss:$0 sm:$0xff] }
   0x6   :  { %102 = vmatpush3.bf16.msra.mxu0 %v110_v2 }
   0x9   :  { %104 = vmatmul.mubr.msk.bf16.vlgmr.msra.gmra.mxu0 %vm41_vm1, %v17_v5 }
  0xc9   :  { %v79_v7 = vpop.f32.mrf.mxu0 }
  0xca   :  { %v80_v8 = vadd.f32 %v92_v6, %v79_v7 }
  0xcb   :  { %v105_v9 = vpop.f32.mrf.mxu0 }
  0xcc   :  { %86 = vst.msk [vmem:[%s157_s3] sm:$0xff] %vm41_vm1, %v80_v8 }
  0xcd   :  { %v82_v10 = vpop.f32.mrf.mxu0 }
  0xce   :  { %v83_v11 = vadd.f32 %v92_v6, %v82_v10 }
  0xcf   :  { %v106_v12 = vpop.f32.mrf.mxu0 }
  0xd0   :  { %87 = vst.msk [vmem:[%s157_s3 + $0x8] sm:$0xff] %vm41_vm1, %v83_v11 }

// kernel: graph_transformer_forward.15
= control target key start
LH: loop header
LB: loop body
LE: loop exit
PB: predicated region body
PF: predicated region fallthrough
CT: control target
= control target key end

     0   :  { %vm36_vm0 = vcmask 1041408   ;;  %v177_v0 = vmov 0.0   ;;  %vm178_vm1 = vmmov 0   ;;  %vm32_vm2 = vcmask 31744   ;;  %s233_s1 = inlined_call_operand.vmem [shape: bf16[4,16], index: 1, kind: input, shape index: {}]   ;;  %s234_s0 = inlined_call_operand.vmem [shape: f32[16,4], index: 0, kind: input, shape index: {}]   ;;  %s235_s3 = inlined_call_operand.vmem [shape: bf16[16,32], index: 3, kind: input, shape index: {}]   ;;  %s236_s2 = inlined_call_operand.vmem [shape: f32[1,16], index: 2, kind: input, shape index: {}]   ;;  %s237_s4 = inlined_call_operand.vmem [shape: f32[1,32], index: 4, kind: input, shape index: {}]   ;;  %s238_s5 = inlined_call_operand.vmem [shape: f32[16,32], index: 5, kind: output, shape index: {}]  }
   0x1   :  { %162 = vmatprep.subr.bf16.mxu0 %v177_v0  ;;  %v24_v1 = vld [vmem:[%s233_s1] sm:$0x3]  ;;  %164 = vmatprep.mubr.msk.bf16.mxu0 %vm178_vm1, %v177_v0  ;;  %v22_v3 = vld [vmem:[%s234_s0 + $0x8] sm:$0xff]  ;;  %vm99_vm3 = vcmask 130048   ;;  %vm146_vm4 = vcmask 261120  }
   0x2   :  { %v21_v2 = vld [vmem:[%s234_s0] sm:$0xff]  ;;  %v38_v4 = vsel %vm36_vm0, %v24_v1, 0  ;;  %168 = vmatprep.subr.bf16.mxu1 %v177_v0  ;;  %170 = vmatprep.mubr.msk.bf16.mxu1 %vm178_vm1, %v177_v0 }
   0x3   :  { %v23_v5 = vpack.c.bf16 %v22_v3, %v21_v2  ;;  %163 = vmatpush3.bf16.msra.mxu0 %v38_v4  ;;  %v176_v6 = vld [vmem:[%s235_s3] sm:$0xff]  }
   0x4   :  { %169 = vmatpush3.bf16.msra.mxu1 %v176_v6  ;;  %v153_v7 = vld [vmem:[%s236_s2] ss:$0 sm:$0xff] }
   0x5   :  { %v155_v17 = vld [vmem:[%s237_s4] ss:$0 sm:$0xff] }
   0x6   :  { %165 = vmatmul.mubr.msk.bf16.vlgmr.msra.gmra.mxu0 %vm32_vm2, %v23_v5 }
  0xc6   :  { %v74_v8 = vpop.f32.mrf.mxu0 }
  0xc7   :  { %v75_v10 = vadd.f32 %v153_v7, %v74_v8 }
  0xc8   :  { %v166_v9 = vpop.f32.mrf.mxu0 }
  0xc9   :  { %v81_v14 = vmax.f32 %v75_v10, 0.0 }
  0xca   :  { %v77_v11 = vpop.f32.mrf.mxu0 }
  0xcb   :  { %v78_v12 = vadd.f32 %v153_v7, %v77_v11 }
  0xcc   :  { %v167_v13 = vpop.f32.mrf.mxu0 }
  0xcd   :  { %v82_v15 = vmax.f32 %v78_v12, 0.0 }
  0xcf   :  { %v83_v16 = vpack.c.bf16 %v82_v15, %v81_v14 }
  0xd1   :  { %171 = vmatmul.mubr.msk.bf16.vlgmr.msra.gmra.mxu1 %vm99_vm3, %v83_v16 }
 0x191   :  { %v137_v18 = vpop.f32.mrf.mxu1 }
 0x192   :  { %v138_v19 = vadd.f32 %v155_v17, %v137_v18 }
 0x193   :  { %v172_v20 = vpop.f32.mrf.mxu1 }
 0x194   :  { %v144_v21 = vmax.f32 %v138_v19, 0.0 }
 0x195   :  { %v140_v22 = vpop.f32.mrf.mxu1 }
 0x196   :  { %147 = vst.msk [vmem:[%s238_s5] sm:$0xff] %vm146_vm4, %v144_v21  ;;  %v141_v23 = vadd.f32 %v155_v17, %v140_v22 }
 0x197   :  { %v173_v24 = vpop.f32.mrf.mxu1 }
 0x198   :  { %v145_v25 = vmax.f32 %v141_v23, 0.0 }
 0x19a   :  { %148 = vst.msk [vmem:[%s238_s5 + $0x8] sm:$0xff] %vm146_vm4, %v145_v25 }

// kernel: graph_transformer_forward.14
= control target key start
LH: loop header
LB: loop body
LE: loop exit
PB: predicated region body
PF: predicated region fallthrough
CT: control target
= control target key end

     0   :  { %vm78_vm0 = vcmask 1040384   ;;  %vm53_vm1 = vcmask 15360   ;;  %vm236_vm2 = vcmask 1043456   ;;  %vm211_vm3 = vcmask 64512   ;;  %s732_s1 = inlined_call_operand.vmem [shape: bf16[2,8], index: 1, kind: input, shape index: {}]   ;;  %s733_s0 = inlined_call_operand.vmem [shape: f32[128,2], index: 0, kind: input, shape index: {}]   ;;  %s734_s3 = inlined_call_operand.vmem [shape: bf16[8,16], index: 3, kind: input, shape index: {}]   ;;  %s735_s2 = inlined_call_operand.vmem [shape: f32[1,8], index: 2, kind: input, shape index: {}]   ;;  %s736_s4 = inlined_call_operand.vmem [shape: f32[1,16], index: 4, kind: input, shape index: {}]   ;;  %s737_s5 = inlined_call_operand.vmem [shape: bf16[128,16], index: 5, kind: output, shape index: {}]  }
   0x1   :  { %v45_v0 = vld [vmem:[%s732_s1] sm:$0x1]  ;;  %v22_v2 = vld [vmem:[%s733_s0 + $0x8] sm:$0xff]  ;;  %v23_v5 = vld [vmem:[%s733_s0 + $0x10] sm:$0xff]  ;;  %vm417_vm4 = vcmask 125952  }
   0x2   :  { %v21_v1 = vld [vmem:[%s733_s0] sm:$0xff]  ;;  %542 = vmatprep.subr.msk.bf16.mxu0 %vm78_vm0, %v45_v0  ;;  %v80_v3 = vsel %vm78_vm0, %v45_v0, 0  ;;  %v24_v6 = vld [vmem:[%s733_s0 + $0x18] sm:$0xff]  ;;  %v26_v9 = vld [vmem:[%s733_s0 + $0x28] sm:$0xff] }
   0x3   :  { %v37_v4 = vpack.c.bf16 %v22_v2, %v21_v1  ;;  %v25_v7 = vld [vmem:[%s733_s0 + $0x20] sm:$0xff]  ;;  %507 = vmatpush3.bf16.msra.mxu0 %v80_v3  ;;  %v38_v8 = vpack.c.bf16 %v24_v6, %v23_v5  ;;  %v27_v11 = vld [vmem:[%s733_s0 + $0x30] sm:$0xff]  ;;  %v28_v12 = vld [vmem:[%s733_s0 + $0x38] sm:$0xff] }
   0x4   :  { %v39_v10 = vpack.c.bf16 %v26_v9, %v25_v7  ;;  %v29_v13 = vld [vmem:[%s733_s0 + $0x40] sm:$0xff]  ;;  %v30_v14 = vld [vmem:[%s733_s0 + $0x48] sm:$0xff]  ;;  %v40_v15 = vpack.c.bf16 %v28_v12, %v27_v11  ;;  %v31_v17 = vld [vmem:[%s733_s0 + $0x50] sm:$0xff] }
   0x5   :  { %508 = vmatprep.mubr.msk.bf16.mxu0 %vm53_vm1, %v37_v4  ;;  %v41_v16 = vpack.c.bf16 %v30_v14, %v29_v13  ;;  %v32_v18 = vld [vmem:[%s733_s0 + $0x58] sm:$0xff]  ;;  %v33_v19 = vld [vmem:[%s733_s0 + $0x60] sm:$0xff]  ;;  %v34_v20 = vld [vmem:[%s733_s0 + $0x68] sm:$0xff] }
   0x6   :  { %509 = vmatmul.mubr.msk.bf16.vlgmr.msra.gmra.mxu0 %vm53_vm1, %v38_v8  ;;  %v42_v21 = vpack.c.bf16 %v32_v18, %v31_v17  ;;  %v43_v22 = vpack.c.bf16 %v34_v20, %v33_v19  ;;  %v35_v23 = vld [vmem:[%s733_s0 + $0x70] sm:$0xff]  ;;  %v36_v24 = vld [vmem:[%s733_s0 + $0x78] sm:$0xff]  ;;  %v203_v26 = vld [vmem:[%s734_s3] sm:$0xf] }
   0x7   :  { %512 = vmatprep.mubr.msk.bf16.mxu0 %vm53_vm1, %v39_v10  ;;  %v44_v25 = vpack.c.bf16 %v36_v24, %v35_v23  ;;  %543 = vmatprep.subr.msk.bf16.mxu1 %vm236_vm2, %v203_v26  ;;  %v238_v27 = vsel %vm236_vm2, %v203_v26, 0  ;;  %v438_v30 = vld [vmem:[%s735_s2] ss:$0 sm:$0xff] }
   0x8   :  { %525 = vmatpush3.bf16.msra.mxu1 %v238_v27 }
   0xe   :  { %513 = vmatmul.mubr.msk.bf16.gmra.mxu0 %vm53_vm1, %v40_v15 }
   0xf   :  { %516 = vmatprep.mubr.msk.bf16.mxu0 %vm53_vm1, %v41_v16 }
  0x16   :  { %517 = vmatmul.mubr.msk.bf16.gmra.mxu0 %vm53_vm1, %v42_v21  ;;  %v650_v21 = vld [vmem:[%s736_s4] ss:$0 sm:$0xff] }
  0x17   :  { %520 = vmatprep.mubr.msk.bf16.mxu0 %vm53_vm1, %v43_v22 }
  0x1e   :  { %521 = vmatmul.mubr.msk.bf16.gmra.mxu0 %vm53_vm1, %v44_v25 }
  0xc6   :  { %v510_v28 = vpop.f32.mrf.mxu0 }
  0xc7   :  { %v125_v34 = vadd.f32 %v510_v28, %v438_v30 }
  0xc8   :  { %v116_v29 = vpop.f32.mrf.mxu0 }
  0xc9   :  { %v117_v32 = vadd.f32 %v438_v30, %v116_v29  ;;  %v181_v41 = vmax.f32 %v125_v34, 0.0 }
  0xca   :  { %v511_v31 = vpop.f32.mrf.mxu0 }
  0xcb   :  { %v128_v33 = vadd.f32 %v511_v31, %v438_v30  ;;  %v179_v39 = vmax.f32 %v117_v32, 0.0 }
  0xcc   :  { %v119_v35 = vpop.f32.mrf.mxu0 }
  0xcd   :  { %v120_v36 = vadd.f32 %v438_v30, %v119_v35  ;;  %v182_v37 = vmax.f32 %v128_v33, 0.0 }
  0xce   :  { %v514_v38 = vpop.f32.mrf.mxu0 }
  0xcf   :  { %v180_v40 = vmax.f32 %v120_v36, 0.0  ;;  %v196_v44 = vpack.c.bf16 %v182_v37, %v181_v41  ;;  %v141_v48 = vadd.f32 %v514_v38, %v438_v30 }
  0xd0   :  { %v132_v42 = vpop.f32.mrf.mxu0 }
  0xd1   :  { %v195_v43 = vpack.c.bf16 %v180_v40, %v179_v39  ;;  %v133_v46 = vadd.f32 %v438_v30, %v132_v42  ;;  %v185_v55 = vmax.f32 %v141_v48, 0.0 }
  0xd2   :  { %v515_v45 = vpop.f32.mrf.mxu0 }
  0xd3   :  { %v144_v47 = vadd.f32 %v515_v45, %v438_v30  ;;  %526 = vmatprep.mubr.msk.bf16.mxu1 %vm211_vm3, %v195_v43  ;;  %v183_v53 = vmax.f32 %v133_v46, 0.0 }
  0xd4   :  { %v135_v49 = vpop.f32.mrf.mxu0  ;;  %527 = vmatmul.mubr.msk.bf16.vlgmr.msra.gmra.mxu1 %vm211_vm3, %v196_v44 }
  0xd5   :  { %v136_v50 = vadd.f32 %v438_v30, %v135_v49  ;;  %v186_v51 = vmax.f32 %v144_v47, 0.0 }
  0xd6   :  { %v518_v52 = vpop.f32.mrf.mxu0 }
  0xd7   :  { %v184_v54 = vmax.f32 %v136_v50, 0.0  ;;  %v198_v58 = vpack.c.bf16 %v186_v51, %v185_v55  ;;  %v157_v62 = vadd.f32 %v518_v52, %v438_v30 }
  0xd8   :  { %v148_v56 = vpop.f32.mrf.mxu0 }
  0xd9   :  { %v197_v57 = vpack.c.bf16 %v184_v54, %v183_v53  ;;  %v149_v60 = vadd.f32 %v438_v30, %v148_v56  ;;  %v189_v5 = vmax.f32 %v157_v62, 0.0 }
  0xda   :  { %v519_v59 = vpop.f32.mrf.mxu0 }
  0xdb   :  { %v160_v61 = vadd.f32 %v519_v59, %v438_v30  ;;  %530 = vmatprep.mubr.msk.bf16.mxu1 %vm211_vm3, %v197_v57  ;;  %v187_v3 = vmax.f32 %v149_v60, 0.0 }
  0xdc   :  { %v151_v63 = vpop.f32.mrf.mxu0  ;;  %531 = vmatmul.mubr.msk.bf16.gmra.mxu1 %vm211_vm3, %v198_v58 }
  0xdd   :  { %v152_v0 = vadd.f32 %v438_v30, %v151_v63  ;;  %v190_v1 = vmax.f32 %v160_v61, 0.0 }
  0xde   :  { %v522_v2 = vpop.f32.mrf.mxu0 }
  0xdf   :  { %v188_v4 = vmax.f32 %v152_v0, 0.0  ;;  %v200_v8 = vpack.c.bf16 %v190_v1, %v189_v5  ;;  %v173_v12 = vadd.f32 %v522_v2, %v438_v30 }
  0xe0   :  { %v164_v6 = vpop.f32.mrf.mxu0 }
  0xe1   :  { %v199_v7 = vpack.c.bf16 %v188_v4, %v187_v3  ;;  %v165_v10 = vadd.f32 %v438_v30, %v164_v6  ;;  %v193_v18 = vmax.f32 %v173_v12, 0.0 }
  0xe2   :  { %v523_v9 = vpop.f32.mrf.mxu0 }
  0xe3   :  { %v176_v11 = vadd.f32 %v523_v9, %v438_v30  ;;  %534 = vmatprep.mubr.msk.bf16.mxu1 %vm211_vm3, %v199_v7  ;;  %v191_v16 = vmax.f32 %v165_v10, 0.0 }
  0xe4   :  { %v167_v13 = vpop.f32.mrf.mxu0  ;;  %535 = vmatmul.mubr.msk.bf16.gmra.mxu1 %vm211_vm3, %v200_v8 }
  0xe5   :  { %v168_v14 = vadd.f32 %v438_v30, %v167_v13  ;;  %v194_v15 = vmax.f32 %v176_v11, 0.0 }
  0xe7   :  { %v192_v17 = vmax.f32 %v168_v14, 0.0  ;;  %v202_v20 = vpack.c.bf16 %v194_v15, %v193_v18 }
  0xe9   :  { %v201_v19 = vpack.c.bf16 %v192_v17, %v191_v16 }
  0xeb   :  { %538 = vmatprep.mubr.msk.bf16.mxu1 %vm211_vm3, %v201_v19 }
  0xec   :  { %539 = vmatmul.mubr.msk.bf16.gmra.mxu1 %vm211_vm3, %v202_v20 }
 0x194   :  { %v528_v22 = vpop.f32.mrf.mxu1 }
 0x195   :  { %v283_v23 = vadd.f32 %v528_v22, %v650_v21 }
 0x196   :  { %v274_v24 = vpop.f32.mrf.mxu1 }
 0x197   :  { %v339_v25 = vmax.f32 %v283_v23, 0.0  ;;  %v275_v26 = vadd.f32 %v650_v21, %v274_v24 }
 0x198   :  { %v529_v27 = vpop.f32.mrf.mxu1 }
 0x199   :  { %v474_v28 = vpack.c.bf16 %v339_v25, %v339_v25  ;;  %v337_v29 = vmax.f32 %v275_v26, 0.0  ;;  %v286_v30 = vadd.f32 %v529_v27, %v650_v21 }
 0x19a   :  { %v277_v31 = vpop.f32.mrf.mxu1 }
 0x19b   :  { %420 = vst.msk [vmem:[%s737_s5 + $0x8] sm:$0xf] %vm417_vm4, %v474_v28  ;;  %v472_v32 = vpack.c.bf16 %v337_v29, %v337_v29  ;;  %v340_v33 = vmax.f32 %v286_v30, 0.0  ;;  %v278_v34 = vadd.f32 %v650_v21, %v277_v31 }
 0x19c   :  { %v532_v35 = vpop.f32.mrf.mxu1 }
 0x19d   :  { %418 = vst.msk [vmem:[%s737_s5] sm:$0xf] %vm417_vm4, %v472_v32  ;;  %v475_v36 = vpack.c.bf16 %v340_v33, %v340_v33  ;;  %v338_v37 = vmax.f32 %v278_v34, 0.0  ;;  %v299_v38 = vadd.f32 %v532_v35, %v650_v21 }
 0x19e   :  { %v290_v39 = vpop.f32.mrf.mxu1 }
 0x19f   :  { %421 = vst.msk [vmem:[%s737_s5 + $0xc] sm:$0xf] %vm417_vm4, %v475_v36  ;;  %v473_v40 = vpack.c.bf16 %v338_v37, %v338_v37  ;;  %v343_v41 = vmax.f32 %v299_v38, 0.0  ;;  %v291_v42 = vadd.f32 %v650_v21, %v290_v39 }
 0x1a0   :  { %v533_v43 = vpop.f32.mrf.mxu1 }
 0x1a1   :  { %419 = vst.msk [vmem:[%s737_s5 + $0x4] sm:$0xf] %vm417_vm4, %v473_v40  ;;  %v478_v44 = vpack.c.bf16 %v343_v41, %v343_v41  ;;  %v341_v45 = vmax.f32 %v291_v42, 0.0  ;;  %v302_v46 = vadd.f32 %v533_v43, %v650_v21 }
 0x1a2   :  { %v293_v47 = vpop.f32.mrf.mxu1 }
 0x1a3   :  { %424 = vst.msk [vmem:[%s737_s5 + $0x18] sm:$0xf] %vm417_vm4, %v478_v44  ;;  %v476_v48 = vpack.c.bf16 %v341_v45, %v341_v45  ;;  %v344_v49 = vmax.f32 %v302_v46, 0.0  ;;  %v294_v50 = vadd.f32 %v650_v21, %v293_v47 }
 0x1a4   :  { %v536_v51 = vpop.f32.mrf.mxu1 }
 0x1a5   :  { %422 = vst.msk [vmem:[%s737_s5 + $0x10] sm:$0xf] %vm417_vm4, %v476_v48  ;;  %v479_v52 = vpack.c.bf16 %v344_v49, %v344_v49  ;;  %v342_v53 = vmax.f32 %v294_v50, 0.0  ;;  %v315_v54 = vadd.f32 %v536_v51, %v650_v21 }
 0x1a6   :  { %v306_v55 = vpop.f32.mrf.mxu1 }
 0x1a7   :  { %425 = vst.msk [vmem:[%s737_s5 + $0x1c] sm:$0xf] %vm417_vm4, %v479_v52  ;;  %v477_v56 = vpack.c.bf16 %v342_v53, %v342_v53  ;;  %v347_v57 = vmax.f32 %v315_v54, 0.0  ;;  %v307_v58 = vadd.f32 %v650_v21, %v306_v55 }
 0x1a8   :  { %v537_v59 = vpop.f32.mrf.mxu1 }
 0x1a9   :  { %423 = vst.msk [vmem:[%s737_s5 + $0x14] sm:$0xf] %vm417_vm4, %v477_v56  ;;  %v482_v60 = vpack.c.bf16 %v347_v57, %v347_v57  ;;  %v345_v61 = vmax.f32 %v307_v58, 0.0  ;;  %v318_v62 = vadd.f32 %v537_v59, %v650_v21 }
 0x1aa   :  { %v309_v63 = vpop.f32.mrf.mxu1 }
 0x1ab   :  { %428 = vst.msk [vmem:[%s737_s5 + $0x28] sm:$0xf] %vm417_vm4, %v482_v60  ;;  %v480_v0 = vpack.c.bf16 %v345_v61, %v345_v61  ;;  %v348_v1 = vmax.f32 %v318_v62, 0.0  ;;  %v310_v2 = vadd.f32 %v650_v21, %v309_v63 }
 0x1ac   :  { %v540_v3 = vpop.f32.mrf.mxu1 }
 0x1ad   :  { %426 = vst.msk [vmem:[%s737_s5 + $0x20] sm:$0xf] %vm417_vm4, %v480_v0  ;;  %v483_v4 = vpack.c.bf16 %v348_v1, %v348_v1  ;;  %v346_v5 = vmax.f32 %v310_v2, 0.0  ;;  %v331_v6 = vadd.f32 %v540_v3, %v650_v21 }
 0x1ae   :  { %v322_v7 = vpop.f32.mrf.mxu1 }
 0x1af   :  { %429 = vst.msk [vmem:[%s737_s5 + $0x2c] sm:$0xf] %vm417_vm4, %v483_v4  ;;  %v481_v8 = vpack.c.bf16 %v346_v5, %v346_v5  ;;  %v351_v9 = vmax.f32 %v331_v6, 0.0  ;;  %v323_v10 = vadd.f32 %v650_v21, %v322_v7 }
 0x1b0   :  { %v541_v11 = vpop.f32.mrf.mxu1 }
 0x1b1   :  { %427 = vst.msk [vmem:[%s737_s5 + $0x24] sm:$0xf] %vm417_vm4, %v481_v8  ;;  %v486_v12 = vpack.c.bf16 %v351_v9, %v351_v9  ;;  %v349_v13 = vmax.f32 %v323_v10, 0.0  ;;  %v334_v14 = vadd.f32 %v541_v11, %v650_v21 }
 0x1b2   :  { %v325_v15 = vpop.f32.mrf.mxu1 }
 0x1b3   :  { %432 = vst.msk [vmem:[%s737_s5 + $0x38] sm:$0xf] %vm417_vm4, %v486_v12  ;;  %v484_v16 = vpack.c.bf16 %v349_v13, %v349_v13  ;;  %v352_v17 = vmax.f32 %v334_v14, 0.0  ;;  %v326_v18 = vadd.f32 %v650_v21, %v325_v15 }
 0x1b5   :  { %430 = vst.msk [vmem:[%s737_s5 + $0x30] sm:$0xf] %vm417_vm4, %v484_v16  ;;  %v487_v19 = vpack.c.bf16 %v352_v17, %v352_v17  ;;  %v350_v20 = vmax.f32 %v326_v18, 0.0 }
 0x1b7   :  { %433 = vst.msk [vmem:[%s737_s5 + $0x3c] sm:$0xf] %vm417_vm4, %v487_v19  ;;  %v485_v22 = vpack.c.bf16 %v350_v20, %v350_v20 }
 0x1b9   :  { %431 = vst.msk [vmem:[%s737_s5 + $0x34] sm:$0xf] %vm417_vm4, %v485_v22 }

// kernel: graph_transformer_forward.19
= control target key start
LH: loop header
LB: loop body
LE: loop exit
PB: predicated region body
PF: predicated region fallthrough
CT: control target
= control target key end

     0   :  { %vm23_vm0 = vcmask 261120   ;;  %s136_s0 = inlined_call_operand.vmem [shape: f32[16,32], index: 0, kind: input, shape index: {}]   ;;  %s137_s1 = inlined_call_operand.vmem [shape: f32[16,32], index: 1, kind: input, shape index: {}]   ;;  %s138_s2 = inlined_call_operand.vmem [shape: f32[1,32], index: 2, kind: input, shape index: {}]   ;;  %s139_s3 = inlined_call_operand.vmem [shape: f32[1,32], index: 3, kind: input, shape index: {}]   ;;  %s140_s4 = inlined_call_operand.vmem [shape: f32[16,32], index: 4, kind: output, shape index: {}]  }
   0x1   :  { %v17_v0 = vld [vmem:[%s136_s0] sm:$0xff]  ;;  %v18_v2 = vld [vmem:[%s136_s0 + $0x8] sm:$0xff] }
   0x2   :  { %v19_v1 = vld [vmem:[%s137_s1] sm:$0xff]  ;;  %v20_v4 = vld [vmem:[%s137_s1 + $0x8] sm:$0xff] }
   0x3   :  { %v21_v3 = vadd.f32 %v19_v1, %v17_v0  ;;  %v22_v5 = vadd.f32 %v20_v4, %v18_v2  ;;  %v75_v25 = vld [vmem:[%s138_s2] ss:$0 sm:$0xff] }
   0x4   :  { %v76_v27 = vld [vmem:[%s139_s3] ss:$0 sm:$0xff] }
   0x5   :  { %v24_v6 = vsel %vm23_vm0, %v21_v3, 0.0  ;;  %v27_v7 = vsel %vm23_vm0, %v22_v5, 0.0 }
   0x6   :  { %25 = vadd.xlane.f32.xlu0 %v24_v6 }
   0xa   :  { %28 = vadd.xlane.f32.xlu0 %v27_v7 }
  0x8f   :  { %v26_v8 = vpop.xlane.xlu0 %25 }
  0x90   :  { %v31_v9 = vmul.f32 0.03125, %v26_v8 }
  0x92   :  { %v33_v10 = vsub.f32 %v21_v3, %v31_v9 }
  0x93   :  { %v29_v11 = vpop.xlane.xlu0 %28 }
  0x94   :  { %v32_v12 = vmul.f32 0.03125, %v29_v11  ;;  %v35_v13 = vmul.f32 %v33_v10, %v33_v10 }
  0x96   :  { %v34_v14 = vsub.f32 %v22_v5, %v32_v12  ;;  %v37_v15 = vsel %vm23_vm0, %v35_v13, 0.0 }
  0x97   :  { %38 = vadd.xlane.f32.xlu1 %v37_v15 }
  0x98   :  { %v36_v16 = vmul.f32 %v34_v14, %v34_v14 }
  0x9a   :  { %v40_v17 = vsel %vm23_vm0, %v36_v16, 0.0 }
  0x9b   :  { %41 = vadd.xlane.f32.xlu1 %v40_v17 }
 0x120   :  { %v39_v18 = vpop.xlane.xlu1 %38 }
 0x121   :  { %v43_v19 = vmul.f32 0.03125, %v39_v18 }
 0x123   :  { %v45_v20 = vadd.f32 1e-05, %v43_v19 }
 0x124   :  { %v42_v21 = vpop.xlane.xlu1 %41 }
 0x125   :  { %77 = vrsqrt.f32 %v45_v20  ;;  %v44_v22 = vmul.f32 0.03125, %v42_v21 }
 0x127   :  { %v46_v23 = vadd.f32 1e-05, %v44_v22 }
 0x129   :  { %79 = vrsqrt.f32 %v46_v23 }
 0x132   :  { %v78_v24 = vpop.eup %77 }
 0x133   :  { %v49_v26 = vmul.f32 %v78_v24, %v33_v10 }
 0x135   :  { %v58_v28 = vmul.f32 %v75_v25, %v49_v26 }
 0x136   :  { %v80_v29 = vpop.eup %79 }
 0x137   :  { %v67_v30 = vadd.f32 %v76_v27, %v58_v28  ;;  %v50_v31 = vmul.f32 %v80_v29, %v34_v14 }
 0x139   :  { %69 = vst.msk [vmem:[%s140_s4] sm:$0xff] %vm23_vm0, %v67_v30  ;;  %v59_v32 = vmul.f32 %v75_v25, %v50_v31 }
 0x13b   :  { %v68_v33 = vadd.f32 %v76_v27, %v59_v32 }
 0x13d   :  { %70 = vst.msk [vmem:[%s140_s4 + $0x8] sm:$0xff] %vm23_vm0, %v68_v33 }

// kernel: graph_transformer_forward.20
= control target key start
LH: loop header
LB: loop body
LE: loop exit
PB: predicated region body
PF: predicated region fallthrough
CT: control target
= control target key end

     0   :  { %v290_v0 = vmov 0.0   ;;  %vm291_vm0 = vmmov 0   ;;  %vm53_vm1 = vcmask 261120   ;;  %vm140_vm2 = vcmask 523264   ;;  %s381_s1 = inlined_call_operand.vmem [shape: bf16[32,64], index: 1, kind: input, shape index: {}]   ;;  %s382_s0 = inlined_call_operand.vmem [shape: f32[16,32], index: 0, kind: input, shape index: {}]   ;;  %s383_s3 = inlined_call_operand.vmem [shape: bf16[64,32], index: 3, kind: input, shape index: {}]   ;;  %s384_s2 = inlined_call_operand.vmem [shape: f32[1,64], index: 2, kind: input, shape index: {}]   ;;  %s385_s4 = inlined_call_operand.vmem [shape: f32[1,32], index: 4, kind: input, shape index: {}]   ;;  %s386_s5 = inlined_call_operand.vmem [shape: f32[1,32], index: 5, kind: input, shape index: {}]   ;;  %s387_s6 = inlined_call_operand.vmem [shape: f32[1,32], index: 6, kind: input, shape index: {}]   ;;  %s388_s7 = inlined_call_operand.vmem [shape: f32[16,32], index: 7, kind: output, shape index: {}]  }
   0x1   :  { %258 = vmatprep.subr.bf16.mxu0 %v290_v0  ;;  %v280_v1 = vld [vmem:[%s381_s1 + $0x8] sm:$0xff]   ;;  %262 = vmatprep.mubr.msk.bf16.mxu0 %vm291_vm0, %v290_v0  ;;  %v281_v2 = vld [vmem:[%s381_s1] sm:$0xff]   ;;  %v282_v5 = vld [vmem:[%s383_s3 + $0x18] sm:$0xff]  }
   0x2   :  { %266 = vmatprep.subr.bf16.mxu1 %v290_v0  ;;  %274 = vmatprep.mubr.msk.bf16.mxu1 %vm291_vm0, %v290_v0  ;;  %v27_v3 = vld [vmem:[%s382_s0] sm:$0xff]  ;;  %v28_v4 = vld [vmem:[%s382_s0 + $0x8] sm:$0xff]  ;;  %v283_v7 = vld [vmem:[%s383_s3 + $0x10] sm:$0xff]  }
   0x3   :  { %259 = vmatpush3.bf16.msra.mxu0 %v280_v1  ;;  %v29_v6 = vpack.c.bf16 %v28_v4, %v27_v3  ;;  %267 = vmatpush3.bf16.msra.mxu1 %v282_v5  ;;  %v284_v8 = vld [vmem:[%s383_s3 + $0x8] sm:$0xff]   ;;  %v285_v9 = vld [vmem:[%s383_s3] sm:$0xff]  }
   0x4   :  { %260 = vmatprep.subr.bf16.mxu0 %v290_v0  ;;  %268 = vmatprep.subr.bf16.mxu1 %v290_v0  ;;  %v238_v10 = vld [vmem:[%s384_s2] ss:$0 sm:$0xff] }
   0x5   :  { %v242_v20 = vld [vmem:[%s385_s4] ss:$0 sm:$0xff] }
   0x6   :  { %v248_v48 = vld [vmem:[%s386_s5] ss:$0 sm:$0xff] }
   0x7   :  { %261 = vmatpush3.bf16.msra.mxu0 %v281_v2  ;;  %269 = vmatpush3.bf16.msra.mxu1 %v283_v7  ;;  %v249_v50 = vld [vmem:[%s387_s6] ss:$0 sm:$0xff] }
   0x8   :  { %270 = vmatprep.subr.bf16.mxu1 %v290_v0 }
   0xa   :  { %263 = vmatmul.mubr.msk.bf16.vlgmr.msra.gmra.mxu0 %vm53_vm1, %v29_v6 }
   0xb   :  { %271 = vmatpush3.bf16.msra.mxu1 %v284_v8 }
   0xc   :  { %272 = vmatprep.subr.bf16.mxu1 %v290_v0 }
   0xf   :  { %273 = vmatpush3.bf16.msra.mxu1 %v285_v9 }
  0xca   :  { %v91_v11 = vpop.f32.mrf.mxu0 }
  0xcb   :  { %v92_v13 = vadd.f32 %v238_v10, %v91_v11 }
  0xcc   :  { %v264_v12 = vpop.f32.mrf.mxu0 }
  0xcd   :  { %v98_v17 = vmax.f32 %v92_v13, 0.0 }
  0xce   :  { %v94_v14 = vpop.f32.mrf.mxu0 }
  0xcf   :  { %v95_v15 = vadd.f32 %v238_v10, %v94_v14 }
  0xd0   :  { %v265_v16 = vpop.f32.mrf.mxu0 }
  0xd1   :  { %v99_v18 = vmax.f32 %v95_v15, 0.0 }
  0xd3   :  { %v100_v19 = vpack.c.bf16 %v99_v18, %v98_v17 }
  0xd5   :  { %275 = vmatmul.mubr.msk.bf16.vlgmr.msra.gmra.mxu1 %vm140_vm2, %v100_v19 }
 0x195   :  { %v178_v21 = vpop.f32.mrf.mxu1 }
 0x196   :  { %v179_v22 = vadd.f32 %v242_v20, %v178_v21 }
 0x197   :  { %v276_v23 = vpop.f32.mrf.mxu1 }
 0x198   :  { %v185_v24 = vadd.f32 %v179_v22, %v27_v3 }
 0x199   :  { %v181_v25 = vpop.f32.mrf.mxu1 }
 0x19a   :  { %v182_v26 = vadd.f32 %v242_v20, %v181_v25  ;;  %v187_v27 = vsel %vm53_vm1, %v185_v24, 0.0 }
 0x19b   :  { %188 = vadd.xlane.f32.xlu0 %v187_v27  ;;  %v277_v28 = vpop.f32.mrf.mxu1 }
 0x19c   :  { %v186_v29 = vadd.f32 %v182_v26, %v28_v4 }
 0x19e   :  { %v190_v30 = vsel %vm53_vm1, %v186_v29, 0.0 }
 0x19f   :  { %191 = vadd.xlane.f32.xlu0 %v190_v30 }
 0x224   :  { %v189_v31 = vpop.xlane.xlu0 %188 }
 0x225   :  { %v194_v32 = vmul.f32 0.03125, %v189_v31 }
 0x227   :  { %v196_v33 = vsub.f32 %v185_v24, %v194_v32 }
 0x228   :  { %v192_v34 = vpop.xlane.xlu0 %191 }
 0x229   :  { %v195_v35 = vmul.f32 0.03125, %v192_v34  ;;  %v198_v36 = vmul.f32 %v196_v33, %v196_v33 }
 0x22b   :  { %v197_v37 = vsub.f32 %v186_v29, %v195_v35  ;;  %v200_v38 = vsel %vm53_vm1, %v198_v36, 0.0 }
 0x22c   :  { %201 = vadd.xlane.f32.xlu1 %v200_v38 }
 0x22d   :  { %v199_v39 = vmul.f32 %v197_v37, %v197_v37 }
 0x22f   :  { %v203_v40 = vsel %vm53_vm1, %v199_v39, 0.0 }
 0x230   :  { %204 = vadd.xlane.f32.xlu1 %v203_v40 }
 0x2b5   :  { %v202_v41 = vpop.xlane.xlu1 %201 }
 0x2b6   :  { %v206_v42 = vmul.f32 0.03125, %v202_v41 }
 0x2b8   :  { %v208_v43 = vadd.f32 1e-05, %v206_v42 }
 0x2b9   :  { %v205_v44 = vpop.xlane.xlu1 %204 }
 0x2ba   :  { %286 = vrsqrt.f32 %v208_v43  ;;  %v207_v45 = vmul.f32 0.03125, %v205_v44 }
 0x2bc   :  { %v209_v46 = vadd.f32 1e-05, %v207_v45 }
 0x2be   :  { %288 = vrsqrt.f32 %v209_v46 }
 0x2c7   :  { %v287_v47 = vpop.eup %286 }
 0x2c8   :  { %v212_v49 = vmul.f32 %v287_v47, %v196_v33 }
 0x2ca   :  { %v221_v51 = vmul.f32 %v248_v48, %v212_v49 }
 0x2cb   :  { %v289_v52 = vpop.eup %288 }
 0x2cc   :  { %v230_v53 = vadd.f32 %v249_v50, %v221_v51  ;;  %v213_v54 = vmul.f32 %v289_v52, %v197_v37 }
 0x2ce   :  { %232 = vst.msk [vmem:[%s388_s7] sm:$0xff] %vm53_vm1, %v230_v53  ;;  %v222_v55 = vmul.f32 %v248_v48, %v213_v54 }
 0x2d0   :  { %v231_v56 = vadd.f32 %v249_v50, %v222_v55 }
 0x2d2   :  { %233 = vst.msk [vmem:[%s388_s7 + $0x8] sm:$0xff] %vm53_vm1, %v231_v56 }

// kernel: graph_transformer_forward.26
= control target key start
LH: loop header
LB: loop body
LE: loop exit
PB: predicated region body
PF: predicated region fallthrough
CT: control target
= control target key end

     0   :  { %v193_v0 = vmov 0.0   ;;  %vm194_vm0 = vmmov 0   ;;  %vm47_vm1 = vcmask 261120   ;;  %vm110_vm2 = vcmask 130048   ;;  %s252_s1 = inlined_call_operand.vmem [shape: bf16[32,16], index: 1, kind: input, shape index: {}]   ;;  %s253_s0 = inlined_call_operand.vmem [shape: f32[16,32], index: 0, kind: input, shape index: {}]   ;;  %s254_s3 = inlined_call_operand.vmem [shape: bf16[16,4], index: 3, kind: input, shape index: {}]   ;;  %s255_s2 = inlined_call_operand.vmem [shape: f32[1,16], index: 2, kind: input, shape index: {}]   ;;  %s256_s4 = inlined_call_operand.vmem [shape: f32[1,4], index: 4, kind: input, shape index: {}]   ;;  %s257_s5 = inlined_call_operand.vmem [shape: f32[16,4], index: 5, kind: output, shape index: {}]  }
   0x1   :  { %174 = vmatprep.subr.bf16.mxu0 %v193_v0  ;;  %v190_v1 = vld [vmem:[%s252_s1 + $0x8] sm:$0xff]   ;;  %178 = vmatprep.mubr.msk.bf16.mxu0 %vm194_vm0, %v193_v0  ;;  %v191_v2 = vld [vmem:[%s252_s1] sm:$0xff]   ;;  %vm155_vm3 = vcmask 31744  }
   0x2   :  { %182 = vmatprep.subr.bf16.mxu1 %v193_v0  ;;  %184 = vmatprep.mubr.msk.bf16.mxu1 %vm194_vm0, %v193_v0  ;;  %v21_v3 = vld [vmem:[%s253_s0] sm:$0xff]  ;;  %v22_v4 = vld [vmem:[%s253_s0 + $0x8] sm:$0xff] }
   0x3   :  { %175 = vmatpush3.bf16.msra.mxu0 %v190_v1  ;;  %v23_v5 = vpack.c.bf16 %v22_v4, %v21_v3  ;;  %v192_v6 = vld [vmem:[%s254_s3] sm:$0xff]  }
   0x4   :  { %176 = vmatprep.subr.bf16.mxu0 %v193_v0  ;;  %183 = vmatpush3.bf16.msra.mxu1 %v192_v6  ;;  %v162_v7 = vld [vmem:[%s255_s2] ss:$0 sm:$0xff] }
   0x5   :  { %v166_v17 = vld [vmem:[%s256_s4] ss:$0 sm:$0xff] }
   0x7   :  { %177 = vmatpush3.bf16.msra.mxu0 %v191_v2 }
   0xa   :  { %179 = vmatmul.mubr.msk.bf16.vlgmr.msra.gmra.mxu0 %vm47_vm1, %v23_v5 }
  0xca   :  { %v85_v8 = vpop.f32.mrf.mxu0 }
  0xcb   :  { %v86_v10 = vadd.f32 %v162_v7, %v85_v8 }
  0xcc   :  { %v180_v9 = vpop.f32.mrf.mxu0 }
  0xcd   :  { %v92_v14 = vmax.f32 %v86_v10, 0.0 }
  0xce   :  { %v88_v11 = vpop.f32.mrf.mxu0 }
  0xcf   :  { %v89_v12 = vadd.f32 %v162_v7, %v88_v11 }
  0xd0   :  { %v181_v13 = vpop.f32.mrf.mxu0 }
  0xd1   :  { %v93_v15 = vmax.f32 %v89_v12, 0.0 }
  0xd3   :  { %v94_v16 = vpack.c.bf16 %v93_v15, %v92_v14 }
  0xd5   :  { %185 = vmatmul.mubr.msk.bf16.vlgmr.msra.gmra.mxu1 %vm110_vm2, %v94_v16 }
 0x195   :  { %v148_v18 = vpop.f32.mrf.mxu1 }
 0x196   :  { %v149_v19 = vadd.f32 %v166_v17, %v148_v18 }
 0x197   :  { %v186_v20 = vpop.f32.mrf.mxu1 }
 0x198   :  { %156 = vst.msk [vmem:[%s257_s5] sm:$0xff] %vm155_vm3, %v149_v19 }
 0x199   :  { %v151_v21 = vpop.f32.mrf.mxu1 }
 0x19a   :  { %v152_v22 = vadd.f32 %v166_v17, %v151_v21 }
 0x19b   :  { %v187_v23 = vpop.f32.mrf.mxu1 }
 0x19c   :  { %157 = vst.msk [vmem:[%s257_s5 + $0x8] sm:$0xff] %vm155_vm3, %v152_v22 }

// kernel: graph_transformer_forward.27
= control target key start
LH: loop header
LB: loop body
LE: loop exit
PB: predicated region body
PF: predicated region fallthrough
CT: control target
= control target key end

     0   :  { %vm92_vm0 = vcmask 130048   ;;  %vm271_vm1 = vcmask 1043456   ;;  %vm246_vm2 = vcmask 64512   ;;  %vm372_vm3 = vcmask 15360   ;;  %s630_s1 = inlined_call_operand.vmem [shape: bf16[16,8], index: 1, kind: input, shape index: {}]   ;;  %s631_s0 = inlined_call_operand.vmem [shape: bf16[128,16], index: 0, kind: input, shape index: {}]   ;;  %s632_s3 = inlined_call_operand.vmem [shape: bf16[8,2], index: 3, kind: input, shape index: {}]   ;;  %s633_s2 = inlined_call_operand.vmem [shape: f32[1,8], index: 2, kind: input, shape index: {}]   ;;  %s634_s4 = inlined_call_operand.vmem [shape: f32[1,2], index: 4, kind: input, shape index: {}]   ;;  %s635_s5 = inlined_call_operand.vmem [shape: f32[128,2], index: 5, kind: output, shape index: {}]  }
   0x1   :  { %v475_v0 = vld [vmem:[%s630_s1] sm:$0xff]   ;;  %v477_v2 = vld [vmem:[%s631_s0 + $0x8] sm:$0xff]   ;;  %v478_v3 = vld [vmem:[%s631_s0 + $0x10] sm:$0xff]  }
   0x2   :  { %v476_v1 = vld [vmem:[%s631_s0] sm:$0xff]   ;;  %438 = vmatprep.subr.bf16.mxu0 %v475_v0  ;;  %v479_v4 = vld [vmem:[%s631_s0 + $0x18] sm:$0xff]   ;;  %v481_v6 = vld [vmem:[%s631_s0 + $0x28] sm:$0xff]  }
   0x3   :  { %439 = vmatpush3.bf16.msra.mxu0 %v475_v0  ;;  %440 = vmatprep.mubr.msk.bf16.mxu0 %vm92_vm0, %v476_v1  ;;  %v480_v5 = vld [vmem:[%s631_s0 + $0x20] sm:$0xff]   ;;  %v482_v7 = vld [vmem:[%s631_s0 + $0x30] sm:$0xff]   ;;  %v483_v8 = vld [vmem:[%s631_s0 + $0x38] sm:$0xff]  }
   0x4   :  { %v238_v9 = vld [vmem:[%s632_s3] sm:$0xf] }
   0x5   :  { %474 = vmatprep.subr.msk.bf16.mxu1 %vm271_vm1, %v238_v9  ;;  %v273_v10 = vsel %vm271_vm1, %v238_v9, 0  ;;  %v393_v13 = vld [vmem:[%s633_s2] ss:$0 sm:$0xff] }
   0x6   :  { %441 = vmatmul.mubr.msk.bf16.vlgmr.msra.gmra.mxu0 %vm92_vm0, %v477_v2  ;;  %457 = vmatpush3.bf16.msra.mxu1 %v273_v10 }
   0x7   :  { %444 = vmatprep.mubr.msk.bf16.mxu0 %vm92_vm0, %v478_v3 }
   0xe   :  { %445 = vmatmul.mubr.msk.bf16.gmra.mxu0 %vm92_vm0, %v479_v4  ;;  %v411_v4 = vld [vmem:[%s634_s4] ss:$0 sm:$0xff] }
   0xf   :  { %448 = vmatprep.mubr.msk.bf16.mxu0 %vm92_vm0, %v480_v5 }
  0x16   :  { %449 = vmatmul.mubr.msk.bf16.gmra.mxu0 %vm92_vm0, %v481_v6 }
  0x17   :  { %452 = vmatprep.mubr.msk.bf16.mxu0 %vm92_vm0, %v482_v7 }
  0x1e   :  { %453 = vmatmul.mubr.msk.bf16.gmra.mxu0 %vm92_vm0, %v483_v8 }
  0xc6   :  { %v442_v11 = vpop.f32.mrf.mxu0 }
  0xc7   :  { %v160_v17 = vadd.f32 %v442_v11, %v393_v13 }
  0xc8   :  { %v151_v12 = vpop.f32.mrf.mxu0 }
  0xc9   :  { %v152_v15 = vadd.f32 %v393_v13, %v151_v12  ;;  %v216_v24 = vmax.f32 %v160_v17, 0.0 }
  0xca   :  { %v443_v14 = vpop.f32.mrf.mxu0 }
  0xcb   :  { %v163_v16 = vadd.f32 %v443_v14, %v393_v13  ;;  %v214_v22 = vmax.f32 %v152_v15, 0.0 }
  0xcc   :  { %v154_v18 = vpop.f32.mrf.mxu0 }
  0xcd   :  { %v155_v19 = vadd.f32 %v393_v13, %v154_v18  ;;  %v217_v20 = vmax.f32 %v163_v16, 0.0 }
  0xce   :  { %v446_v21 = vpop.f32.mrf.mxu0 }
  0xcf   :  { %v215_v23 = vmax.f32 %v155_v19, 0.0  ;;  %v231_v27 = vpack.c.bf16 %v217_v20, %v216_v24  ;;  %v176_v31 = vadd.f32 %v446_v21, %v393_v13 }
  0xd0   :  { %v167_v25 = vpop.f32.mrf.mxu0 }
  0xd1   :  { %v230_v26 = vpack.c.bf16 %v215_v23, %v214_v22  ;;  %v168_v29 = vadd.f32 %v393_v13, %v167_v25  ;;  %v220_v38 = vmax.f32 %v176_v31, 0.0 }
  0xd2   :  { %v447_v28 = vpop.f32.mrf.mxu0 }
  0xd3   :  { %v179_v30 = vadd.f32 %v447_v28, %v393_v13  ;;  %458 = vmatprep.mubr.msk.bf16.mxu1 %vm246_vm2, %v230_v26  ;;  %v218_v36 = vmax.f32 %v168_v29, 0.0 }
  0xd4   :  { %v170_v32 = vpop.f32.mrf.mxu0  ;;  %459 = vmatmul.mubr.msk.bf16.vlgmr.msra.gmra.mxu1 %vm246_vm2, %v231_v27 }
  0xd5   :  { %v171_v33 = vadd.f32 %v393_v13, %v170_v32  ;;  %v221_v34 = vmax.f32 %v179_v30, 0.0 }
  0xd6   :  { %v450_v35 = vpop.f32.mrf.mxu0 }
  0xd7   :  { %v219_v37 = vmax.f32 %v171_v33, 0.0  ;;  %v233_v41 = vpack.c.bf16 %v221_v34, %v220_v38  ;;  %v192_v45 = vadd.f32 %v450_v35, %v393_v13 }
  0xd8   :  { %v183_v39 = vpop.f32.mrf.mxu0 }
  0xd9   :  { %v232_v40 = vpack.c.bf16 %v219_v37, %v218_v36  ;;  %v184_v43 = vadd.f32 %v393_v13, %v183_v39  ;;  %v224_v52 = vmax.f32 %v192_v45, 0.0 }
  0xda   :  { %v451_v42 = vpop.f32.mrf.mxu0 }
  0xdb   :  { %v195_v44 = vadd.f32 %v451_v42, %v393_v13  ;;  %462 = vmatprep.mubr.msk.bf16.mxu1 %vm246_vm2, %v232_v40  ;;  %v222_v50 = vmax.f32 %v184_v43, 0.0 }
  0xdc   :  { %v186_v46 = vpop.f32.mrf.mxu0  ;;  %463 = vmatmul.mubr.msk.bf16.gmra.mxu1 %vm246_vm2, %v233_v41 }
  0xdd   :  { %v187_v47 = vadd.f32 %v393_v13, %v186_v46  ;;  %v225_v48 = vmax.f32 %v195_v44, 0.0 }
  0xde   :  { %v454_v49 = vpop.f32.mrf.mxu0 }
  0xdf   :  { %v223_v51 = vmax.f32 %v187_v47, 0.0  ;;  %v235_v55 = vpack.c.bf16 %v225_v48, %v224_v52  ;;  %v208_v59 = vadd.f32 %v454_v49, %v393_v13 }
  0xe0   :  { %v199_v53 = vpop.f32.mrf.mxu0 }
  0xe1   :  { %v234_v54 = vpack.c.bf16 %v223_v51, %v222_v50  ;;  %v200_v57 = vadd.f32 %v393_v13, %v199_v53  ;;  %v228_v1 = vmax.f32 %v208_v59, 0.0 }
  0xe2   :  { %v455_v56 = vpop.f32.mrf.mxu0 }
  0xe3   :  { %v211_v58 = vadd.f32 %v455_v56, %v393_v13  ;;  %466 = vmatprep.mubr.msk.bf16.mxu1 %vm246_vm2, %v234_v54  ;;  %v226_v63 = vmax.f32 %v200_v57, 0.0 }
  0xe4   :  { %v202_v60 = vpop.f32.mrf.mxu0  ;;  %467 = vmatmul.mubr.msk.bf16.gmra.mxu1 %vm246_vm2, %v235_v55 }
  0xe5   :  { %v203_v61 = vadd.f32 %v393_v13, %v202_v60  ;;  %v229_v62 = vmax.f32 %v211_v58, 0.0 }
  0xe7   :  { %v227_v0 = vmax.f32 %v203_v61, 0.0  ;;  %v237_v3 = vpack.c.bf16 %v229_v62, %v228_v1 }
  0xe9   :  { %v236_v2 = vpack.c.bf16 %v227_v0, %v226_v63 }
  0xeb   :  { %470 = vmatprep.mubr.msk.bf16.mxu1 %vm246_vm2, %v236_v2 }
  0xec   :  { %471 = vmatmul.mubr.msk.bf16.gmra.mxu1 %vm246_vm2, %v237_v3 }
 0x194   :  { %v460_v5 = vpop.f32.mrf.mxu1 }
 0x195   :  { %v318_v6 = vadd.f32 %v460_v5, %v411_v4 }
 0x196   :  { %v309_v7 = vpop.f32.mrf.mxu1 }
 0x197   :  { %375 = vst.msk [vmem:[%s635_s5 + $0x10] sm:$0xff] %vm372_vm3, %v318_v6  ;;  %v310_v8 = vadd.f32 %v411_v4, %v309_v7 }
 0x198   :  { %v461_v9 = vpop.f32.mrf.mxu1 }
 0x199   :  { %373 = vst.msk [vmem:[%s635_s5] sm:$0xff] %vm372_vm3, %v310_v8  ;;  %v321_v10 = vadd.f32 %v461_v9, %v411_v4 }
 0x19a   :  { %v312_v11 = vpop.f32.mrf.mxu1 }
 0x19b   :  { %376 = vst.msk [vmem:[%s635_s5 + $0x18] sm:$0xff] %vm372_vm3, %v321_v10  ;;  %v313_v12 = vadd.f32 %v411_v4, %v312_v11 }
 0x19c   :  { %v464_v13 = vpop.f32.mrf.mxu1 }
 0x19d   :  { %374 = vst.msk [vmem:[%s635_s5 + $0x8] sm:$0xff] %vm372_vm3, %v313_v12  ;;  %v334_v14 = vadd.f32 %v464_v13, %v411_v4 }
 0x19e   :  { %v325_v15 = vpop.f32.mrf.mxu1 }
 0x19f   :  { %379 = vst.msk [vmem:[%s635_s5 + $0x30] sm:$0xff] %vm372_vm3, %v334_v14  ;;  %v326_v16 = vadd.f32 %v411_v4, %v325_v15 }
 0x1a0   :  { %v465_v17 = vpop.f32.mrf.mxu1 }
 0x1a1   :  { %377 = vst.msk [vmem:[%s635_s5 + $0x20] sm:$0xff] %vm372_vm3, %v326_v16  ;;  %v337_v18 = vadd.f32 %v465_v17, %v411_v4 }
 0x1a2   :  { %v328_v19 = vpop.f32.mrf.mxu1 }
 0x1a3   :  { %380 = vst.msk [vmem:[%s635_s5 + $0x38] sm:$0xff] %vm372_vm3, %v337_v18  ;;  %v329_v20 = vadd.f32 %v411_v4, %v328_v19 }
 0x1a4   :  { %v468_v21 = vpop.f32.mrf.mxu1 }
 0x1a5   :  { %378 = vst.msk [vmem:[%s635_s5 + $0x28] sm:$0xff] %vm372_vm3, %v329_v20  ;;  %v350_v22 = vadd.f32 %v468_v21, %v411_v4 }
 0x1a6   :  { %v341_v23 = vpop.f32.mrf.mxu1 }
 0x1a7   :  { %383 = vst.msk [vmem:[%s635_s5 + $0x50] sm:$0xff] %vm372_vm3, %v350_v22  ;;  %v342_v24 = vadd.f32 %v411_v4, %v341_v23 }
 0x1a8   :  { %v469_v25 = vpop.f32.mrf.mxu1 }
 0x1a9   :  { %381 = vst.msk [vmem:[%s635_s5 + $0x40] sm:$0xff] %vm372_vm3, %v342_v24  ;;  %v353_v26 = vadd.f32 %v469_v25, %v411_v4 }
 0x1aa   :  { %v344_v27 = vpop.f32.mrf.mxu1 }
 0x1ab   :  { %384 = vst.msk [vmem:[%s635_s5 + $0x58] sm:$0xff] %vm372_vm3, %v353_v26  ;;  %v345_v28 = vadd.f32 %v411_v4, %v344_v27 }
 0x1ac   :  { %v472_v29 = vpop.f32.mrf.mxu1 }
 0x1ad   :  { %382 = vst.msk [vmem:[%s635_s5 + $0x48] sm:$0xff] %vm372_vm3, %v345_v28  ;;  %v366_v30 = vadd.f32 %v472_v29, %v411_v4 }
 0x1ae   :  { %v357_v31 = vpop.f32.mrf.mxu1 }
 0x1af   :  { %387 = vst.msk [vmem:[%s635_s5 + $0x70] sm:$0xff] %vm372_vm3, %v366_v30  ;;  %v358_v32 = vadd.f32 %v411_v4, %v357_v31 }
 0x1b0   :  { %v473_v33 = vpop.f32.mrf.mxu1 }
 0x1b1   :  { %385 = vst.msk [vmem:[%s635_s5 + $0x60] sm:$0xff] %vm372_vm3, %v358_v32  ;;  %v369_v34 = vadd.f32 %v473_v33, %v411_v4 }
 0x1b2   :  { %v360_v35 = vpop.f32.mrf.mxu1 }
 0x1b3   :  { %388 = vst.msk [vmem:[%s635_s5 + $0x78] sm:$0xff] %vm372_vm3, %v369_v34  ;;  %v361_v36 = vadd.f32 %v411_v4, %v360_v35 }
 0x1b5   :  { %386 = vst.msk [vmem:[%s635_s5 + $0x68] sm:$0xff] %vm372_vm3, %v361_v36 }

// kernel: graph_transformer_forward.18
= control target key start
LH: loop header
LB: loop body
LE: loop exit
PB: predicated region body
PF: predicated region fallthrough
CT: control target
= control target key end

     0   :  { %s3196_s28 = smov 0   ;;  %s3198_s29 = smov 0   ;;  %s3963_s0 = inlined_call_operand.vmem [shape: f32[2,8,32], index: 0, kind: input, shape index: {}]   ;;  %s3964_s1 = inlined_call_operand.vmem [shape: f32[2,8,64], index: 1, kind: input, shape index: {}]   ;;  %s3965_s2 = inlined_call_operand.vmem [shape: bf16[2,8,8,16], index: 2, kind: input, shape index: {}]   ;;  %s3966_s3 = inlined_call_operand.vmem [shape: f32[2,1,128], index: 3, kind: input, shape index: {}]   ;;  %s3967_s4 = inlined_call_operand.vmem [shape: f32[2,8,1], index: 4, kind: input, shape index: {}, may-alias: {4,5}]   ;;  %s3968_s5 = inlined_call_operand.vmem [shape: f32[2,8,1], index: 5, kind: input, shape index: {}, may-alias: {4,5}]   ;;  %s3969_s6 = inlined_call_operand.vmem [shape: bf16[16,64], index: 6, kind: input, shape index: {}]   ;;  %s3970_s7 = inlined_call_operand.vmem [shape: f32[1,64], index: 7, kind: input, shape index: {}]   ;;  %s3971_s8 = inlined_call_operand.vmem [shape: bf16[32,16], index: 8, kind: input, shape index: {}]   ;;  %s3972_s9 = inlined_call_operand.vmem [shape: f32[1,16], index: 9, kind: input, shape index: {}]   ;;  %s3973_s10 = inlined_call_operand.vmem [shape: bf16[32,32], index: 10, kind: input, shape index: {}]   ;;  %s3974_s11 = inlined_call_operand.vmem [shape: f32[1,32], index: 11, kind: input, shape index: {}]   ;;  %s3975_s12 = inlined_call_operand.vmem [shape: f32[1,16], index: 12, kind: input, shape index: {}]   ;;  %s3976_s13 = inlined_call_operand.vmem [shape: f32[1,16], index: 13, kind: input, shape index: {}]   ;;  %s3977_s14 = inlined_call_operand.vmem [shape: bf16[16,32], index: 14, kind: input, shape index: {}]   ;;  %s3978_s15 = inlined_call_operand.vmem [shape: f32[1,32], index: 15, kind: input, shape index: {}]   ;;  %s3979_s16 = inlined_call_operand.vmem [shape: bf16[32,16], index: 16, kind: input, shape index: {}]   ;;  %s3980_s17 = inlined_call_operand.vmem [shape: f32[1,16], index: 17, kind: input, shape index: {}]   ;;  %s3981_s18 = inlined_call_operand.vmem [shape: f32[1,16], index: 18, kind: input, shape index: {}]   ;;  %s3982_s19 = inlined_call_operand.vmem [shape: f32[1,16], index: 19, kind: input, shape index: {}]   ;;  %s3983_s20 = inlined_call_operand.vmem [shape: bf16[2,8,8,16], index: 20, kind: output, shape index: {0}]   ;;  %s3984_s21 = inlined_call_operand.vmem [shape: f32[2,8,32], index: 21, kind: output, shape index: {1}]   ;;  %s3985_s22 = inlined_call_operand.vmem [shape: f32[2,1,4,16], index: 22, kind: output, shape index: {2}]  }
   0x1   :  { %3986 = sst [smem:[#allocation2_spill]] %s3963_s0 }
   0x2   :  { %3987 = sst [smem:[#allocation3_spill]] %s3964_s1 }
   0x3   :  { %3988 = sst [smem:[#allocation4_spill]] %s3965_s2 }
   0x4   :  { %3989 = sst [smem:[#allocation5_spill]] %s3966_s3  ;;  %s3194_s3 = smov 0  }
   0x5   :  { %3990 = sst [smem:[#allocation6_spill]] %s3967_s4 }
   0x6   :  { %3991 = sst [smem:[#allocation7_spill]] %s3968_s5 }
   0x7   :  { %3992 = sst [smem:[#allocation8_spill]] %s3969_s6 }
   0x8 LB: > { %s45_s30 = sadd.s32 1, %s3065_s28  ;;  %p2803_p0 = scmp.ge.s32.totalorder %s3069_s29, 1  ;;  %s3069_s29 = sphi %s3198_s29, %s33_s29   ;;  %s3065_s28 = sphi %s3196_s28, %s4001_s28   ;;  %s3061_s3 = sphi %s3194_s3, %s4000_s3  }
   0x9   : > { %p47_p1 = scmp.ge.s32.totalorder %s45_s30, 2  ;;  %p696_p2 = scmp.lt.s32.totalorder %s3069_s29, 3 }
   0xb   : > { %s4003_s30 = smov (%p47_p1, %s45_s30), 0  ;;  %p697_p3 = pnand %p2803_p0, %p696_p2 }
   0xc   : > { %s3993_s23 = sld [smem:[#allocation8_spill]] (!%p697_p3)  ;;  %p805_p4 = scmp.lt.s32.totalorder (!%p697_p3), %s3061_s3, 1 }
   0xd   : > { %700 = sbr.rel (%p697_p3) target bundleno = 1845 (0x735), region = 100  ;;  %s3994_s6 = sld [smem:[#allocation4_spill]] (!%p697_p3) }
   0xe   : > { %s3995_s4 = sld [smem:[#allocation6_spill]] (!%p697_p3)  ;;  %s3074_s5 = smov (!%p697_p3), 96  }
   0xf   : > { %s3996_s24 = sld [smem:[#allocation7_spill]] (!%p697_p3) }
  0x12   : > { %v2967_v0 = vld [vmem:[%s3993_s23] sm:$0xff]   ;;  %v909_v1 = vlaneseq  ;;  %s4005_s3 = smov (!%p805_p4, %s3061_s3), 1  ;;  %v3071_v3 = vmov 0   ;;  %vm1051_vm0 = vcmask 130048   ;;  %v3072_v10 = vmov 1.0  }
  0x13   : > { %2881 = vmatprep.subr.bf16.mxu0 %v2967_v0  ;;  %2965 = vset.pattern.permute.xlu0 %v3071_v3  ;;  %s2854_s1 = sshll.u32 %s4005_s3, 5  ;;  %s3336_s26 = sshll.u32 %s4005_s3, 3  ;;  %vm1184_vm9 = vcmask 1040384   ;;  %vm1186_vm10 = vcmask 1041408   ;;  %vm1188_vm11 = vcmask 1042432   ;;  %vm1190_vm12 = vcmask 125952  }
  0x14   : > { %v3217_v2 = vshrl.u32 %v909_v1, 7  ;;  %2882 = vmatpush3.bf16.msra.mxu0 %v2967_v0  ;;  %2966 = vset.pattern.permute.xlu1 %v3071_v3  ;;  %s3231_s25 = scalar_lea.vmem %s3994_s6, %s2854_s1  ;;  %s835_s0 = scalar_lea.vmem %s3995_s4, %s3336_s26  ;;  %vm1619_vm13 = vcmask 261120  }
  0x15   : > { %v889_v9 = vld [vmem:[%s3231_s25] sm:$0xff]   ;;  %v891_v17 = vld [vmem:[%s3231_s25 + $0x8] sm:$0xff]   ;;  %v893_v33 = vld [vmem:[%s3231_s25 + $0x10] sm:$0xff]   ;;  %s839_s6 = scalar_lea.vmem %s3996_s24, %s3336_s26  ;;  %s3075_s24 = smov 32  }
  0x16   : > { %v3222_v4 = vsub.s32 0, %v3217_v2  ;;  %v1009_v5 = vsub.s32 1, %v3217_v2  ;;  %v1013_v6 = vsub.s32 2, %v3217_v2  ;;  %v1017_v7 = vsub.s32 3, %v3217_v2  ;;  %2883 = vmatprep.mubr.msk.bf16.mxu0 %vm1051_vm0, %v889_v9  ;;  %v895_v63 = vld [vmem:[%s3231_s25 + $0x18] sm:$0xff]   ;;  %s2813_s25 = sshll.u32 %s4005_s3, 2 }
  0x17   : > { %v1021_v8 = vsub.s32 4, %v3217_v2  ;;  %v1025_v13 = vsub.s32 5, %v3217_v2  ;;  %v1029_v14 = vsub.s32 6, %v3217_v2  ;;  %v3242_v15 = vunpack.c.l.bf16 %v889_v9  ;;  %2884 = vmatmul.mubr.msk.bf16.vlgmr.msra.gmra.mxu0 %vm1051_vm0, %v891_v17  ;;  %s863_s4 = scalar_lea.vmem %s3985_s22, %s2813_s25  ;;  %s3997_s25 = sld [smem:[#allocation2_spill]] }
  0x18   : > { %v1006_v11 = vrot.slane %v3072_v10, %v3222_v4  ;;  %v1010_v12 = vrot.slane %v3072_v10, %v1009_v5  ;;  %v3244_v16 = vunpack.c.h.bf16 %v889_v9  ;;  %v1033_v18 = vsub.s32 7, %v3217_v2  ;;  %2887 = vmatprep.mubr.msk.bf16.mxu0 %vm1051_vm0, %v893_v33 }
  0x19   : > { %v3248_v19 = vunpack.c.l.bf16 %v891_v17  ;;  %v3250_v20 = vunpack.c.h.bf16 %v891_v17  ;;  %v1014_v37 = vrot.slane %v3072_v10, %v1013_v6  ;;  %v1018_v40 = vrot.slane %v3072_v10, %v1017_v7 }
  0x1a   : > { %vm1102_vm1 = vcmp.gt.f32.partialorder %v1006_v11, 0.0  ;;  %vm1103_vm2 = vcmp.gt.f32.partialorder %v1010_v12, 0.0  ;;  %v1043_v21 = vmul.f32 %v1006_v11, %v3242_v15  ;;  %v1044_v22 = vmul.f32 %v1010_v12, %v3244_v16 }
  0x1b   : > { %v1126_v23 = vsel %vm1102_vm1, %v3242_v15, inf  ;;  %v1127_v24 = vsel %vm1103_vm2, %v3244_v16, inf  ;;  %v1155_v27 = vsel %vm1102_vm1, %v3242_v15, -inf  ;;  %v1156_v28 = vsel %vm1103_vm2, %v3244_v16, -inf }
  0x1c   : > { %v3258_v25 = vsel %vm1051_vm0, %v1126_v23, inf  ;;  %v3261_v26 = vsel %vm1051_vm0, %v1127_v24, inf  ;;  %v1052_v29 = vsel %vm1051_vm0, %v1043_v21, 0.0  ;;  %v1053_v30 = vsel %vm1051_vm0, %v1044_v22, 0.0 }
  0x1d   : > { %v1073_v31 = vmul.f32 %v1043_v21, %v1043_v21  ;;  %v1074_v32 = vmul.f32 %v1044_v22, %v1044_v22  ;;  %v1054_v34 = vadd.f32 %v1053_v30, %v1052_v29  ;;  %v3269_v35 = vsel %vm1051_vm0, %v1155_v27, -inf  ;;  %s811_s2 = scalar_lea.vmem %s3997_s25, %s3336_s26  ;;  %s3078_s25 = smov 64  }
  0x1e   : > { %v3272_v36 = vsel %vm1051_vm0, %v1156_v28, -inf  ;;  %v1045_v42 = vmul.f32 %v1014_v37, %v3248_v19  ;;  %vm1104_vm3 = vcmp.gt.f32.partialorder %v1014_v37, 0.0  ;;  %v3279_v43 = vunpack.c.l.bf16 %v893_v33 }
  0x1f   : > { %v1081_v38 = vsel %vm1051_vm0, %v1073_v31, 0.0  ;;  %v1082_v39 = vsel %vm1051_vm0, %v1074_v32, 0.0  ;;  %v1046_v44 = vmul.f32 %v1018_v40, %v3250_v20  ;;  %vm1105_vm4 = vcmp.gt.f32.partialorder %v1018_v40, 0.0  ;;  %2888 = vmatmul.mubr.msk.bf16.gmra.mxu0 %vm1051_vm0, %v895_v63 }
  0x20   : > { %v1083_v41 = vadd.f32 %v1082_v39, %v1081_v38  ;;  %v1128_v45 = vsel %vm1104_vm3, %v3248_v19, inf  ;;  %v1157_v46 = vsel %vm1104_vm3, %v3248_v19, -inf  ;;  %v1055_v47 = vsel %vm1051_vm0, %v1045_v42, 0.0 }
  0x21   : > { %v1075_v48 = vmul.f32 %v1045_v42, %v1045_v42  ;;  %v1129_v49 = vsel %vm1105_vm4, %v3250_v20, inf  ;;  %v3288_v50 = vsel %vm1051_vm0, %v1128_v45, inf  ;;  %v1056_v51 = vadd.f32 %v1055_v47, %v1054_v34 }
  0x22   : > { %v1057_v52 = vsel %vm1051_vm0, %v1046_v44, 0.0  ;;  %v1076_v53 = vmul.f32 %v1046_v44, %v1046_v44  ;;  %v3292_v54 = vsel %vm1051_vm0, %v1129_v49, inf  ;;  %v1158_v56 = vsel %vm1105_vm4, %v3250_v20, -inf }
  0x23   : > { %v1084_v55 = vsel %vm1051_vm0, %v1075_v48, 0.0  ;;  %v3297_v57 = vsel %vm1051_vm0, %v1157_v46, -inf  ;;  %v3299_v58 = vunpack.c.h.bf16 %v893_v33  ;;  %v1058_v59 = vadd.f32 %v1057_v52, %v1056_v51 }
  0x24   : > { %v1085_v60 = vadd.f32 %v1084_v55, %v1083_v41  ;;  %v1086_v61 = vsel %vm1051_vm0, %v1076_v53, 0.0  ;;  %v3303_v62 = vsel %vm1051_vm0, %v1158_v56, -inf  ;;  %v1022_v0 = vrot.slane %v3072_v10, %v1021_v8 }
  0x25   : > { %v1026_v1 = vrot.slane %v3072_v10, %v1025_v13  ;;  %v3308_v5 = vunpack.c.l.bf16 %v895_v63  ;;  %v3310_v7 = vunpack.c.h.bf16 %v895_v63  ;;  %v1030_v9 = vrot.slane %v3072_v10, %v1029_v14 }
  0x26   : > { %v1087_v6 = vadd.f32 %v1086_v61, %v1085_v60  ;;  %v1034_v11 = vrot.slane %v3072_v10, %v1033_v18  ;;  %v1047_v12 = vmul.f32 %v1022_v0, %v3279_v43  ;;  %vm1106_vm5 = vcmp.gt.f32.partialorder %v1022_v0, 0.0 }
  0x27   : > { %v1048_v17 = vmul.f32 %v1026_v1, %v3299_v58  ;;  %vm1107_vm6 = vcmp.gt.f32.partialorder %v1026_v1, 0.0  ;;  %v1130_v8 = vsel %vm1106_vm5, %v3279_v43, inf  ;;  %v1159_v21 = vsel %vm1106_vm5, %v3279_v43, -inf }
  0x28   : > { %v1131_v13 = vsel %vm1107_vm6, %v3299_v58, inf  ;;  %v1160_v22 = vsel %vm1107_vm6, %v3299_v58, -inf  ;;  %v1059_v14 = vsel %vm1051_vm0, %v1047_v12, 0.0  ;;  %v1077_v18 = vmul.f32 %v1047_v12, %v1047_v12 }
  0x29   : > { %v1061_v10 = vsel %vm1051_vm0, %v1048_v17, 0.0  ;;  %v1078_v23 = vmul.f32 %v1048_v17, %v1048_v17  ;;  %v1060_v24 = vadd.f32 %v1059_v14, %v1058_v59  ;;  %v1138_v27 = vsel %vm1051_vm0, %v1130_v8, inf }
  0x2a   : > { %v1140_v28 = vsel %vm1051_vm0, %v1131_v13, inf  ;;  %v1167_v29 = vsel %vm1051_vm0, %v1159_v21, -inf  ;;  %v1088_v30 = vsel %vm1051_vm0, %v1077_v18, 0.0  ;;  %v1139_v32 = vmin.f32 %v3258_v25, %v1138_v27  ;;  %v3360_v21 = vld [vmem:[%s835_s0] sm:$0xff]  ;;  %s3998_s0 = sld [smem:[#allocation3_spill]] }
  0x2b   : > { %v1090_v31 = vsel %vm1051_vm0, %v1078_v23, 0.0  ;;  %v1141_v33 = vmin.f32 %v3261_v26, %v1140_v28  ;;  %v1062_v34 = vadd.f32 %v1061_v10, %v1060_v24  ;;  %v1089_v37 = vadd.f32 %v1088_v30, %v1087_v6 }
  0x2c   : > { %v1168_v38 = vmax.f32 %v3269_v35, %v1167_v29  ;;  %v1169_v39 = vsel %vm1051_vm0, %v1160_v22, -inf  ;;  %v1049_v42 = vmul.f32 %v1030_v9, %v3308_v5  ;;  %v1050_v44 = vmul.f32 %v1034_v11, %v3310_v7 }
  0x2d   : > { %v1146_v40 = vmin.f32 %v1139_v32, %v1141_v33  ;;  %v1170_v41 = vmax.f32 %v3272_v36, %v1169_v39  ;;  %v1091_v45 = vadd.f32 %v1090_v31, %v1089_v37  ;;  %vm1108_vm7 = vcmp.gt.f32.partialorder %v1030_v9, 0.0 }
  0x2e   : > { %vm1109_vm8 = vcmp.gt.f32.partialorder %v1034_v11, 0.0  ;;  %v1063_v26 = vsel %vm1051_vm0, %v1049_v42, 0.0  ;;  %v1065_v35 = vsel %vm1051_vm0, %v1050_v44, 0.0  ;;  %v1079_v46 = vmul.f32 %v1049_v42, %v1049_v42 }
  0x2f   : > { %v1175_v25 = vmax.f32 %v1168_v38, %v1170_v41  ;;  %v1064_v47 = vadd.f32 %v1063_v26, %v1062_v34  ;;  %v1080_v48 = vmul.f32 %v1050_v44, %v1050_v44  ;;  %v1132_v36 = vsel %vm1108_vm7, %v3308_v5, inf }
  0x30   : > { %v1133_v49 = vsel %vm1109_vm8, %v3310_v7, inf  ;;  %v1092_v51 = vsel %vm1051_vm0, %v1079_v46, 0.0  ;;  %v1142_v52 = vsel %vm1051_vm0, %v1132_v36, inf  ;;  %v1161_v55 = vsel %vm1108_vm7, %v3308_v5, -inf  ;;  %s815_s23 = scalar_lea.vmem %s3998_s0, %s3336_s26  ;;  %s3930_s0 = scalar_lea.vmem %s3983_s20, %s2854_s1 }
  0x31   : > { %v1144_v53 = vsel %vm1051_vm0, %v1133_v49, inf  ;;  %v1066_v56 = vadd.f32 %v1065_v35, %v1064_v47  ;;  %v1093_v59 = vadd.f32 %v1092_v51, %v1091_v45  ;;  %v1094_v60 = vsel %vm1051_vm0, %v1080_v48, 0.0 }
  0x32   : > { %v1143_v61 = vmin.f32 %v3288_v50, %v1142_v52  ;;  %v1145_v63 = vmin.f32 %v3292_v54, %v1144_v53  ;;  %v1162_v0 = vsel %vm1109_vm8, %v3310_v7, -inf  ;;  %v1171_v1 = vsel %vm1051_vm0, %v1161_v55, -inf }
  0x33   : > { %v3073_v6 = vmov 1966171168   ;;  %v1067_v12 = vrot.slane %v1066_v56, 4  ;;  %v1095_v17 = vadd.f32 %v1094_v60, %v1093_v59  ;;  %v1172_v8 = vmax.f32 %v3297_v57, %v1171_v1 }
  0x34   : > { %v907_v9 = vunpack.c.l.s4 %v3073_v6  ;;  %v1173_v13 = vsel %vm1051_vm0, %v1162_v0, -inf  ;;  %v1147_v22 = vmin.f32 %v1143_v61, %v1145_v63  ;;  %v905_v11 = vcombine.high %v3360_v21, %v3360_v21 }
  0x35   : > { %v1174_v50 = vmax.f32 %v3303_v62, %v1173_v13  ;;  %v1068_v14 = vadd.f32 %v1067_v12, %v1066_v56  ;;  %v1096_v10 = vrot.slane %v1095_v17, 4  ;;  %vm2472_vm1 = vcmask 1041409  }
  0x36   : > { %v908_v54 = vunpack.c.0.s8 %v907_v9  ;;  %v1148_v18 = vmin.f32 %v1146_v40, %v1147_v22  ;;  %v3376_v40 = vld [vmem:[%s839_s6] sm:$0xff]  ;;  %vm2474_vm2 = vcmask 1042434   ;;  %vm2476_vm3 = vcmask 1043459  }
  0x37   : > { %v1176_v23 = vmax.f32 %v1172_v8, %v1174_v50  ;;  %v1069_v57 = vrot.slane %v1068_v14, 2  ;;  %v1097_v27 = vadd.f32 %v1096_v10, %v1095_v17  ;;  %vm2214_vm14 = vcmp.gt.f32.partialorder %v3376_v40, 0.0 }
  0x38   : > { %v3366_v24 = vsub.s32 %v908_v54, %v3217_v2  ;;  %v1149_v28 = vrot.slane %v1148_v18, 4  ;;  %vm2478_vm4 = vcmask 1044484   ;;  %vm2480_vm5 = vcmask 1045509  }
  0x39   : > { %v1177_v29 = vmax.f32 %v1175_v25, %v1176_v23  ;;  %v1070_v31 = vadd.f32 %v1069_v57, %v1068_v14  ;;  %v1098_v32 = vrot.slane %v1097_v27, 2  ;;  %vm2482_vm6 = vcmask 1046534  }
  0x3a   : > { %v912_v62 = vrot.slane %v3360_v21, %v3366_v24  ;;  %v919_v30 = vrot.slane %v905_v11, %v3366_v24  ;;  %v1150_v33 = vmin.f32 %v1148_v18, %v1149_v28  ;;  %vm2484_vm7 = vcmask 1047559  }
  0x3b   : > { %v1178_v34 = vrot.slane %v1177_v29, 4  ;;  %v1071_v38 = vrot.slane %v1070_v31, 1  ;;  %v1099_v39 = vadd.f32 %v1098_v32, %v1097_v27  ;;  %vm3077_vm8 = vmmov 0  }
  0x3c   : > { %v928_v2 = vrot.slane %v912_v62, %v3366_v24  ;;  %v920_v37 = vcombine.high %v912_v62, %v912_v62  ;;  %v935_v41 = vrot.slane %v919_v30, %v3366_v24  ;;  %v1151_v42 = vrot.slane %v1150_v33, 2  ;;  %v2818_v62 = vld [vmem:[%s3970_s7] ss:$0 sm:$0xff] }
  0x3d   : > { %v1179_v44 = vmax.f32 %v1177_v29, %v1178_v34  ;;  %v1072_v26 = vadd.f32 %v1071_v38, %v1070_v31  ;;  %v921_v46 = vcombine.high %v919_v30, %v919_v30  ;;  %v1100_v51 = vrot.slane %v1099_v39, 1 }
  0x3e   : > { %v957_v45 = vrot.slane %v928_v2, %v3222_v4  ;;  %v942_v25 = vrot.slane %v920_v37, %v3366_v24  ;;  %v950_v35 = vcombine.high %v928_v2, %v928_v2  ;;  %v1152_v47 = vmin.f32 %v1150_v33, %v1151_v42 }
  0x3f   : > { %v1180_v48 = vrot.slane %v1179_v44, 2  ;;  %v973_v53 = vrot.slane %v935_v41, %v3222_v4  ;;  %v951_v61 = vcombine.high %v935_v41, %v935_v41  ;;  %v949_v1 = vrot.slane %v921_v46, %v3366_v24 }
  0x40   : > { %v994_v36 = vmul.f32 %v957_v45, %v3376_v40  ;;  %v961_v49 = vrot.slane %v942_v25, %v3222_v4  ;;  %v965_v52 = vrot.slane %v950_v35, %v3222_v4  ;;  %v952_v55 = vcombine.high %v942_v25, %v942_v25 }
  0x41   : > { %v1153_v56 = vrot.slane %v1152_v47, 1  ;;  %v1181_v59 = vmax.f32 %v1179_v44, %v1180_v48  ;;  %v1101_v12 = vadd.f32 %v1100_v51, %v1099_v39  ;;  %v977_v8 = vrot.slane %v949_v1, %v3222_v4 }
  0x42   : > { %1290 = vperm.xlu0 %2965, %v994_v36   ;;  %v995_v60 = vmul.f32 %v961_v49, %v3376_v40  ;;  %v996_v63 = vmul.f32 %v965_v52, %v3376_v40  ;;  %v969_v0 = vrot.slane %v952_v55, %v3222_v4  ;;  %v953_v13 = vcombine.high %v949_v1, %v949_v1 }
  0x43   : > { %v1154_v6 = vmin.f32 %v1152_v47, %v1153_v56  ;;  %v1182_v9 = vrot.slane %v1181_v59, 1  ;;  %v998_v54 = vmul.f32 %v973_v53, %v3376_v40  ;;  %v981_v11 = vrot.slane %v951_v61, %v3222_v4 }
  0x44   : > { %1300 = vperm.xlu1 %2966, %v996_v63   ;;  %v997_v17 = vmul.f32 %v969_v0, %v3376_v40  ;;  %v999_v18 = vmul.f32 %v977_v8, %v3376_v40  ;;  %v985_v23 = vrot.slane %v953_v13, %v3222_v4  ;;  %v875_v0 = vld [vmem:[%s811_s2] sm:$0xff]  ;;  %s3999_s2 = sld [smem:[#allocation5_spill]] }
  0x45   : > { %v1183_v22 = vmax.f32 %v1181_v59, %v1182_v9  ;;  %v1185_v50 = vsel %vm1184_vm9, %v1072_v26, %v1154_v6  ;;  %v1000_v57 = vmul.f32 %v981_v11, %v3376_v40 }
  0x46   : > { %1295 = vperm.xlu0 %2965, %v995_v60   ;;  %v1001_v27 = vmul.f32 %v985_v23, %v3376_v40 }
  0x47   : > { %v1187_v14 = vsel %vm1186_vm10, %v1185_v50, %v1183_v22 }
  0x48   : > { %v1189_v10 = vsel %vm1188_vm11, %v1187_v14, %v1101_v12  ;;  %1305 = vperm.xlu1 %2966, %v997_v17   ;;  %v882_v17 = vld [vmem:[%s815_s23] sm:$0xff] }
  0x49   : > { %1191 = vst.msk [vmem:[%s863_s4] sm:$0xf] %vm1190_vm12, %v1189_v10 }
  0x4a   : > { %1310 = vperm.xlu0 %2965, %v998_v54   ;;  %s828_s27 = scalar_lea.vmem %s3999_s2, %s4005_s3 }
  0x4c   : > { %1315 = vperm.xlu1 %2966, %v999_v18  }
  0x4e   : > { %1320 = vperm.xlu0 %2965, %v1000_v57  }
  0x50   : > { %1325 = vperm.xlu1 %2966, %v1001_v27  }
  0x52   : > { %878 = vperm.xlu0 %2965, %v3360_v21  }
  0x54   : > { %885 = vperm.xlu1 %2966, %v3376_v40  }
  0xbd   : > { %v3404_v29 = vpop.permute.xlu0 %1290 }
  0xbf   : > { %v3410_v2 = vpop.permute.xlu1 %1300 }
  0xc1   : > { %v3413_v21 = vpop.permute.xlu0 %1295 }
  0xc3   : > { %v3419_v44 = vpop.permute.xlu1 %1305 }
  0xc5   : > { %v3423_v26 = vpop.permute.xlu0 %1310 }
  0xc7   : > { %v3428_v49 = vpop.permute.xlu1 %1315 }
  0xc9   : > { %v3432_v53 = vpop.permute.xlu0 %1320 }
  0xcb   : > { %v3444_v60 = vpop.permute.xlu1 %1325 }
  0xcd   : > { %v3455_v63 = vpop.permute.xlu0 %878 }
  0xce   : > { %v881_v1 = vmul.f32 %v3455_v63, %v875_v0 }
  0xcf   : > { %v3464_v13 = vpop.permute.xlu1 %885 }
  0xd0   : > { %v1344_v6 = vrot.slane %v881_v1, %v3366_v24  ;;  %v3469_v54 = vmul.f32 %v3464_v13, %v882_v17  ;;  %v1337_v23 = vcombine.high %v881_v1, %v881_v1 }
  0xd2   : > { %v1360_v9 = vrot.slane %v1344_v6, %v3366_v24  ;;  %v1352_v12 = vcombine.high %v1344_v6, %v1344_v6 }
  0xd4   : > { %v1382_v8 = vcombine.high %v1360_v9, %v1360_v9  ;;  %v1374_v22 = vrot.slane %v1352_v12, %v3366_v24  ;;  %v1389_v50 = vrot.slane %v1360_v9, %v3222_v4 }
  0xd6   : > { %v1397_v11 = vrot.slane %v1382_v8, %v3222_v4  ;;  %v1393_v14 = vrot.slane %v1374_v22, %v3222_v4  ;;  %v1426_v10 = vmul.f32 %v1389_v50, %v3469_v54  ;;  %v1384_v18 = vcombine.high %v1374_v22, %v1374_v22 }
  0xd7   : > { %v2885_v28 = vpop.f32.mrf.mxu0 }
  0xd8   : > { %v1266_v33 = vadd.f32 %v2885_v28, %v2818_v62  ;;  %v1428_v57 = vmul.f32 %v1397_v11, %v3469_v54  ;;  %v1427_v27 = vmul.f32 %v1393_v14, %v3469_v54 }
  0xd9   : > { %v1257_v30 = vpop.f32.mrf.mxu0 }
  0xda   : > { %v1258_v31 = vadd.f32 %v2818_v62, %v1257_v30  ;;  %v1330_v39 = vmul.f32 %v3410_v2, %v1266_v33  ;;  %v1401_v30 = vrot.slane %v1384_v18, %v3222_v4  ;;  %v1436_v33 = vmul.f32 0.35355338, %v1428_v57 }
  0xdb   : > { %v2886_v32 = vpop.f32.mrf.mxu0 }
  0xdc   : > { %v1328_v34 = vmul.f32 %v3404_v29, %v1258_v31  ;;  %v1269_v41 = vadd.f32 %v2886_v32, %v2818_v62  ;;  %v1351_v31 = vrot.slane %v1337_v23, %v3366_v24 }
  0xdd   : > { %v1260_v37 = vpop.f32.mrf.mxu0 }
  0xde   : > { %v1261_v38 = vadd.f32 %v2818_v62, %v1260_v37  ;;  %1466 = vrot.lane.b32.xlu0 %v1328_v34, %s3074_s5  ;;  %v1331_v45 = vmul.f32 %v3419_v44, %v1269_v41  ;;  %v1442_v28 = vadd.f32 1.0, %v1328_v34  ;;  %v1367_v32 = vrot.slane %v1351_v31, %v3366_v24 }
  0xdf   : > { %v2889_v25 = vpop.f32.mrf.mxu0  ;;  %v1435_v37 = vmul.f32 0.35355338, %v1427_v27  ;;  %v1444_v41 = vadd.f32 1.0, %v1330_v39 }
  0xe0   : > { %v1329_v42 = vmul.f32 %v3413_v21, %v1261_v38  ;;  %v1282_v48 = vadd.f32 %v2889_v25, %v2818_v62 }
  0xe1   : > { %v1273_v35 = vpop.f32.mrf.mxu0  ;;  %v1452_v34 = vmul.f32 %v1444_v41, %v1436_v33 }
  0xe2   : > { %1470 = vrot.lane.b32.xlu0 %v1330_v39, %s3074_s5  ;;  %1468 = vrot.lane.b32.xlu1 %v1329_v42, %s3074_s5  ;;  %v1274_v46 = vadd.f32 %v2818_v62, %v1273_v35  ;;  %v3435_v55 = vmul.f32 %v3432_v53, %v1282_v48  ;;  %v1443_v25 = vadd.f32 1.0, %v1329_v42  ;;  %v1429_v35 = vmul.f32 %v1401_v30, %v3469_v54 }
  0xe3   : > { %v2890_v47 = vpop.f32.mrf.mxu0  ;;  %v1405_v42 = vrot.slane %v1367_v32, %v3222_v4 }
  0xe4   : > { %v3426_v36 = vmul.f32 %v3423_v26, %v1274_v46  ;;  %v1285_v56 = vadd.f32 %v2890_v47, %v2818_v62  ;;  %v1353_v47 = vcombine.high %v1351_v31, %v1351_v31  ;;  %v1437_v0 = vmul.f32 0.35355338, %v1429_v35 }
  0xe5   : > { %v1276_v51 = vpop.f32.mrf.mxu0  ;;  %v1430_v22 = vmul.f32 %v1405_v42, %v3469_v54 }
  0xe6   : > { %1472 = vrot.lane.b32.xlu1 %v1331_v45, %s3074_s5  ;;  %v1277_v52 = vadd.f32 %v2818_v62, %v1276_v51  ;;  %1474 = vrot.lane.b32.xlu0 %v3426_v36, %s3074_s5  ;;  %v3447_v61 = vmul.f32 %v3444_v60, %v1285_v56  ;;  %v1434_v62 = vmul.f32 0.35355338, %v1426_v10  ;;  %v1383_v51 = vcombine.high %v1367_v32, %v1367_v32 }
  0xe7   : > { %v1445_v56 = vadd.f32 1.0, %v1331_v45  ;;  %v1381_v12 = vrot.slane %v1353_v47, %v3366_v24  ;;  %v1446_v10 = vadd.f32 1.0, %v3426_v36  ;;  %v1438_v18 = vmul.f32 0.35355338, %v1430_v22 }
  0xe8   : > { %v3438_v59 = vmul.f32 %v3428_v49, %v1277_v52  ;;  %v1450_v38 = vmul.f32 %v1442_v28, %v1434_v62  ;;  %v1451_v52 = vmul.f32 %v1443_v25, %v1435_v37  ;;  %v1413_v45 = vrot.slane %v1383_v51, %v3222_v4 }
  0xe9   : > { %v1453_v17 = vmul.f32 %v1445_v56, %v1437_v0  ;;  %v1409_v11 = vrot.slane %v1381_v12, %v3222_v4  ;;  %v1385_v14 = vcombine.high %v1381_v12, %v1381_v12  ;;  %v1454_v27 = vmul.f32 %v1446_v10, %v1438_v18  ;;  %v2972_v56 = vld [vmem:[%s3971_s8 + $0x8] sm:$0xff]  }
  0xea   : > { %1478 = vrot.lane.b32.xlu0 %v3435_v55, %s3074_s5  ;;  %1476 = vrot.lane.b32.xlu1 %v3438_v59, %s3074_s5  ;;  %v1432_v24 = vmul.f32 %v1413_v45, %v3469_v54  ;;  %v1448_v28 = vadd.f32 1.0, %v3435_v55  ;;  %v1447_v30 = vadd.f32 1.0, %v3438_v59  ;;  %v1449_v41 = vadd.f32 1.0, %v3447_v61 }
  0xeb   : > { %v1431_v23 = vmul.f32 %v1409_v11, %v3469_v54  ;;  %v1417_v57 = vrot.slane %v1385_v14, %v3222_v4  ;;  %2891 = vmatprep.subr.bf16.mxu1 %v2972_v56 }
  0xec   : > { %v1440_v62 = vmul.f32 0.35355338, %v1432_v24  ;;  %2892 = vmatpush3.bf16.msra.mxu1 %v2972_v56 }
  0xed   : > { %v1439_v36 = vmul.f32 0.35355338, %v1431_v23  ;;  %v1433_v33 = vmul.f32 %v1417_v57, %v3469_v54 }
  0xee   : > { %1480 = vrot.lane.b32.xlu1 %v3447_v61, %s3074_s5  ;;  %v1456_v37 = vmul.f32 %v1448_v28, %v1440_v62  ;;  %v1498_v61 = vld [vmem:[%s828_s27] sm:$0x1] }
  0xef   : > { %v1441_v59 = vmul.f32 0.35355338, %v1433_v33 }
  0xf1   : > { %v1457_v47 = vmul.f32 %v1449_v41, %v1441_v59 }
 0x150   : > { %v1467_v46 = vpop.permute.xlu0 %1466 }
 0x151   : > { %v3480_v48 = vadd.f32 %v1467_v46, %v1450_v38  ;;  %v1455_v38 = vmul.f32 %v1447_v30, %v1439_v36  ;;  %v3555_v30 = vrot.slane %v1498_v61, %v3222_v4 }
 0x153   : > { %1514 = vrot.lane.b32.xlu0 %v3480_v48, %s3075_s24 }
 0x154   : > { %v1471_v1 = vpop.permute.xlu0 %1470  ;;  %v1469_v6 = vpop.permute.xlu1 %1468 }
 0x155   : > { %v3484_v9 = vadd.f32 %v1471_v1, %v1452_v34  ;;  %v3486_v39 = vadd.f32 %v1469_v6, %v1451_v52  ;;  %v1499_v52 = vadd.f32 1.0, %v1498_v61 }
 0x157   : > { %1518 = vrot.lane.b32.xlu0 %v3484_v9, %s3075_s24  ;;  %1516 = vrot.lane.b32.xlu1 %v3486_v39, %s3075_s24  ;;  %v3533_v0 = vrot.slane %v1499_v52, %v3222_v4 }
 0x158   : > { %v1473_v8 = vpop.permute.xlu1 %1472  ;;  %v1475_v31 = vpop.permute.xlu0 %1474 }
 0x159   : > { %v3496_v50 = vadd.f32 %v1473_v8, %v1453_v17  ;;  %v3507_v32 = vadd.f32 %v1475_v31, %v1454_v27  ;;  %v2973_v17 = vld [vmem:[%s3971_s8] sm:$0xff]  }
 0x15a   : > { %2893 = vmatprep.subr.bf16.mxu1 %v2973_v17 }
 0x15b   : > { %1520 = vrot.lane.b32.xlu1 %v3496_v50, %s3075_s24  ;;  %1522 = vrot.lane.b32.xlu0 %v3507_v32, %s3075_s24 }
 0x15c   : > { %v1479_v25 = vpop.permute.xlu0 %1478  ;;  %v1477_v35 = vpop.permute.xlu1 %1476  ;;  %2894 = vmatpush3.bf16.msra.mxu1 %v2973_v17  ;;  %v2824_v17 = vld [vmem:[%s3972_s9] ss:$0 sm:$0xff] }
 0x15d   : > { %v3513_v55 = vadd.f32 %v1479_v25, %v1456_v37  ;;  %v3515_v46 = vadd.f32 %v1477_v35, %v1455_v38 }
 0x15f   : > { %1526 = vrot.lane.b32.xlu0 %v3513_v55, %s3075_s24  ;;  %1524 = vrot.lane.b32.xlu1 %v3515_v46, %s3075_s24 }
 0x160   : > { %v1481_v51 = vpop.permute.xlu1 %1480 }
 0x161   : > { %v3521_v34 = vadd.f32 %v1481_v51, %v1457_v47 }
 0x163   : > { %1528 = vrot.lane.b32.xlu1 %v3521_v34, %s3075_s24  ;;  %s856_s24 = scalar_lea.vmem %s3984_s21, %s3336_s26 }
 0x1c5   : > { %v1515_v1 = vpop.permute.xlu0 %1514 }
 0x1c6   : > { %v1538_v6 = vmul.f32 %v1515_v1, %v3533_v0 }
 0x1c8   : > { %1560 = vrot.lane.b32.xlu0 %v1538_v6, %s3074_s5 }
 0x1c9   : > { %v1519_v42 = vpop.permute.xlu0 %1518  ;;  %v1517_v12 = vpop.permute.xlu1 %1516 }
 0x1ca   : > { %v1540_v45 = vmul.f32 %v1519_v42, %v3533_v0  ;;  %v1539_v8 = vmul.f32 %v1517_v12, %v3533_v0 }
 0x1cc   : > { %1564 = vrot.lane.b32.xlu0 %v1540_v45, %s3074_s5  ;;  %1562 = vrot.lane.b32.xlu1 %v1539_v8, %s3074_s5 }
 0x1cd   : > { %v1521_v22 = vpop.permute.xlu1 %1520  ;;  %v1523_v14 = vpop.permute.xlu0 %1522 }
 0x1ce   : > { %v1541_v11 = vmul.f32 %v1521_v22, %v3533_v0  ;;  %v1542_v10 = vmul.f32 %v1523_v14, %v3533_v0 }
 0x1d0   : > { %1566 = vrot.lane.b32.xlu1 %v1541_v11, %s3074_s5  ;;  %1568 = vrot.lane.b32.xlu0 %v1542_v10, %s3074_s5 }
 0x1d1   : > { %v1527_v24 = vpop.permute.xlu0 %1526  ;;  %v1525_v18 = vpop.permute.xlu1 %1524 }
 0x1d2   : > { %v1544_v23 = vmul.f32 %v1527_v24, %v3533_v0  ;;  %v1543_v57 = vmul.f32 %v1525_v18, %v3533_v0 }
 0x1d4   : > { %1572 = vrot.lane.b32.xlu0 %v1544_v23, %s3074_s5  ;;  %1570 = vrot.lane.b32.xlu1 %v1543_v57, %s3074_s5 }
 0x1d5   : > { %v1529_v27 = vpop.permute.xlu1 %1528 }
 0x1d6   : > { %v1545_v28 = vmul.f32 %v1529_v27, %v3533_v0 }
 0x1d8   : > { %1574 = vrot.lane.b32.xlu1 %v1545_v28, %s3074_s5 }
 0x23a   : > { %v1561_v62 = vpop.permute.xlu0 %1560 }
 0x23b   : > { %v1584_v36 = vadd.f32 %v1561_v62, %v3555_v30 }
 0x23e   : > { %v1563_v31 = vpop.permute.xlu1 %1562  ;;  %v1565_v37 = vpop.permute.xlu0 %1564 }
 0x23f   : > { %v1585_v33 = vadd.f32 %v1563_v31, %v3555_v30  ;;  %v1586_v25 = vadd.f32 %v1565_v37, %v3555_v30 }
 0x241   : > { %v1592_v38 = vpack.c.bf16 %v1585_v33, %v1584_v36 }
 0x242   : > { %v1567_v41 = vpop.permute.xlu1 %1566  ;;  %v1569_v4 = vpop.permute.xlu0 %1568 }
 0x243   : > { %v1587_v35 = vadd.f32 %v1567_v41, %v3555_v30  ;;  %2895 = vmatprep.mubr.msk.bf16.mxu1 %vm1619_vm13, %v1592_v38  ;;  %v1588_v51 = vadd.f32 %v1569_v4, %v3555_v30 }
 0x245   : > { %v1593_v59 = vpack.c.bf16 %v1587_v35, %v1586_v25 }
 0x246   : > { %v1571_v47 = vpop.permute.xlu1 %1570  ;;  %v1573_v52 = vpop.permute.xlu0 %1572 }
 0x247   : > { %2896 = vmatmul.mubr.msk.bf16.vlgmr.msra.gmra.mxu1 %vm1619_vm13, %v1593_v59  ;;  %v1589_v61 = vadd.f32 %v1571_v47, %v3555_v30  ;;  %v1590_v6 = vadd.f32 %v1573_v52, %v3555_v30 }
 0x249   : > { %v1594_v56 = vpack.c.bf16 %v1589_v61, %v1588_v51 }
 0x24a   : > { %v1575_v1 = vpop.permute.xlu1 %1574 }
 0x24b   : > { %v1591_v42 = vadd.f32 %v1575_v1, %v3555_v30  ;;  %2899 = vmatprep.mubr.msk.bf16.mxu1 %vm1619_vm13, %v1594_v56 }
 0x24d   : > { %v1595_v12 = vpack.c.bf16 %v1591_v42, %v1590_v6 }
 0x24f   : > { %2900 = vmatmul.mubr.msk.bf16.gmra.mxu1 %vm1619_vm13, %v1595_v12 }
 0x307   : > { %v2897_v45 = vpop.f32.mrf.mxu1 }
 0x308   : > { %v1675_v8 = vadd.f32 %v2897_v45, %v2824_v17 }
 0x309   : > { %v1666_v22 = vpop.f32.mrf.mxu1 }
 0x30a   : > { %v1667_v11 = vadd.f32 %v2824_v17, %v1666_v22  ;;  %v1699_v10 = vmul.f32 %v1675_v8, %v3410_v2 }
 0x30b   : > { %v2898_v14 = vpop.f32.mrf.mxu1 }
 0x30c   : > { %v1697_v24 = vmul.f32 %v1667_v11, %v3404_v29  ;;  %v1678_v18 = vadd.f32 %v2898_v14, %v2824_v17  ;;  %v1707_v36 = vadd.f32 %v1699_v10, %v3248_v19 }
 0x30d   : > { %v1669_v23 = vpop.f32.mrf.mxu1 }
 0x30e   : > { %v1670_v57 = vadd.f32 %v2824_v17, %v1669_v23  ;;  %v1705_v27 = vadd.f32 %v1697_v24, %v3242_v15  ;;  %v1700_v28 = vmul.f32 %v1678_v18, %v3419_v44  ;;  %v1719_v29 = vsel %vm1051_vm0, %v1707_v36, 0.0 }
 0x30f   : > { %v2901_v15 = vpop.f32.mrf.mxu1 }
 0x310   : > { %v1698_v62 = vmul.f32 %v1670_v57, %v3413_v21  ;;  %v1713_v31 = vsel %vm1051_vm0, %v1705_v27, 0.0  ;;  %v1708_v37 = vadd.f32 %v1700_v28, %v3250_v20  ;;  %v1691_v38 = vadd.f32 %v2901_v15, %v2824_v17 }
 0x311   : > { %1714 = vadd.xlane.f32.xlu0 %v1713_v31  ;;  %v1682_v21 = vpop.f32.mrf.mxu1 }
 0x312   : > { %v1706_v33 = vadd.f32 %v1698_v62, %v3244_v16  ;;  %v1722_v44 = vsel %vm1051_vm0, %v1708_v37, 0.0  ;;  %v1683_v41 = vadd.f32 %v2824_v17, %v1682_v21  ;;  %v1703_v19 = vmul.f32 %v1691_v38, %v3432_v53 }
 0x313   : > { %v2902_v25 = vpop.f32.mrf.mxu1 }
 0x314   : > { %v1716_v2 = vsel %vm1051_vm0, %v1706_v33, 0.0  ;;  %v1701_v16 = vmul.f32 %v1683_v41, %v3423_v26  ;;  %v1694_v35 = vadd.f32 %v2902_v25, %v2824_v17  ;;  %v1711_v52 = vadd.f32 %v1703_v19, %v3308_v5 }
 0x315   : > { %1717 = vadd.xlane.f32.xlu1 %v1716_v2  ;;  %1720 = vadd.xlane.f32.xlu0 %v1719_v29  ;;  %v1685_v59 = vpop.f32.mrf.mxu1 }
 0x316   : > { %v1686_v4 = vadd.f32 %v2824_v17, %v1685_v59  ;;  %v1709_v47 = vadd.f32 %v1701_v16, %v3279_v43  ;;  %v1704_v20 = vmul.f32 %v1694_v35, %v3444_v60  ;;  %v1731_v26 = vsel %vm1051_vm0, %v1711_v52, 0.0 }
 0x318   : > { %v1702_v51 = vmul.f32 %v1686_v4, %v3428_v49  ;;  %v1725_v61 = vsel %vm1051_vm0, %v1709_v47, 0.0  ;;  %v1712_v1 = vadd.f32 %v1704_v20, %v3310_v7  ;;  %v2215_v20 = vsel %vm2214_vm14, 1, %v3071_v3 }
 0x319   : > { %1723 = vadd.xlane.f32.xlu0 %v1722_v44  ;;  %1726 = vadd.xlane.f32.xlu1 %v1725_v61 }
 0x31a   : > { %v1710_v56 = vadd.f32 %v1702_v51, %v3299_v58  ;;  %v1734_v43 = vsel %vm1051_vm0, %v1712_v1, 0.0  ;;  %v2974_v51 = vld [vmem:[%s3977_s14] sm:$0xff]  }
 0x31b   : > { %2903 = vmatprep.subr.bf16.mxu0 %v2974_v51 }
 0x31c   : > { %v1728_v53 = vsel %vm1051_vm0, %v1710_v56, 0.0  ;;  %2904 = vmatpush3.bf16.msra.mxu0 %v2974_v51 }
 0x31d   : > { %1729 = vadd.xlane.f32.xlu0 %v1728_v53  ;;  %1732 = vadd.xlane.f32.xlu1 %v1731_v26 }
 0x321   : > { %1735 = vadd.xlane.f32.xlu0 %v1734_v43 }
 0x39a   : > { %v1715_v60 = vpop.xlane.xlu0 %1714 }
 0x39b   : > { %v1738_v49 = vmul.f32 0.0625, %v1715_v60 }
 0x39d   : > { %v3596_v6 = vsub.f32 %v1705_v27, %v1738_v49 }
 0x39e   : > { %v1721_v42 = vpop.xlane.xlu0 %1720  ;;  %v1718_v5 = vpop.xlane.xlu1 %1717 }
 0x39f   : > { %v1740_v12 = vmul.f32 0.0625, %v1721_v42  ;;  %v1739_v17 = vmul.f32 0.0625, %v1718_v5  ;;  %v1754_v58 = vmul.f32 %v3596_v6, %v3596_v6 }
 0x3a1   : > { %v3600_v45 = vsub.f32 %v1707_v36, %v1740_v12  ;;  %v3602_v8 = vsub.f32 %v1706_v33, %v1739_v17  ;;  %v1762_v7 = vsel %vm1051_vm0, %v1754_v58, 0.0  ;;  %v3646_v17 = vld [vmem:[%s3975_s12] ss:$0 sm:$0xff] }
 0x3a2   : > { %v1724_v22 = vpop.xlane.xlu0 %1723  ;;  %1763 = vadd.xlane.f32.xlu1 %v1762_v7  ;;  %v1727_v28 = vpop.xlane.xlu1 %1726 }
 0x3a3   : > { %v1741_v11 = vmul.f32 0.0625, %v1724_v22  ;;  %v1756_v14 = vmul.f32 %v3600_v45, %v3600_v45  ;;  %v1755_v10 = vmul.f32 %v3602_v8, %v3602_v8  ;;  %v1742_v62 = vmul.f32 0.0625, %v1727_v28 }
 0x3a5   : > { %v3609_v24 = vsub.f32 %v1708_v37, %v1741_v11  ;;  %v1768_v18 = vsel %vm1051_vm0, %v1756_v14, 0.0  ;;  %v1765_v23 = vsel %vm1051_vm0, %v1755_v10, 0.0  ;;  %v3616_v31 = vsub.f32 %v1709_v47, %v1742_v62 }
 0x3a6   : > { %1769 = vadd.xlane.f32.xlu1 %v1768_v18  ;;  %1766 = vadd.xlane.f32.xlu0 %v1765_v23  ;;  %v1730_v36 = vpop.xlane.xlu0 %1729  ;;  %v1733_v33 = vpop.xlane.xlu1 %1732  ;;  %v3653_v23 = vld [vmem:[%s3976_s13] ss:$0 sm:$0xff] }
 0x3a7   : > { %v1757_v57 = vmul.f32 %v3609_v24, %v3609_v24  ;;  %v1743_v2 = vmul.f32 0.0625, %v1730_v36  ;;  %v1744_v29 = vmul.f32 0.0625, %v1733_v33  ;;  %v1758_v37 = vmul.f32 %v3616_v31, %v3616_v31 }
 0x3a9   : > { %v1771_v27 = vsel %vm1051_vm0, %v1757_v57, 0.0  ;;  %v3620_v15 = vsub.f32 %v1710_v56, %v1743_v2  ;;  %v3622_v38 = vsub.f32 %v1711_v52, %v1744_v29  ;;  %v1774_v44 = vsel %vm1051_vm0, %v1758_v37, 0.0 }
 0x3aa   : > { %1772 = vadd.xlane.f32.xlu0 %v1771_v27  ;;  %v1736_v21 = vpop.xlane.xlu0 %1735  ;;  %1775 = vadd.xlane.f32.xlu1 %v1774_v44 }
 0x3ab   : > { %v1745_v41 = vmul.f32 0.0625, %v1736_v21  ;;  %v1759_v25 = vmul.f32 %v3620_v15, %v3620_v15  ;;  %v1760_v19 = vmul.f32 %v3622_v38, %v3622_v38 }
 0x3ad   : > { %v3629_v16 = vsub.f32 %v1712_v1, %v1745_v41  ;;  %v1777_v35 = vsel %vm1051_vm0, %v1759_v25, 0.0  ;;  %v1780_v59 = vsel %vm1051_vm0, %v1760_v19, 0.0 }
 0x3ae   : > { %1778 = vadd.xlane.f32.xlu0 %v1777_v35  ;;  %1781 = vadd.xlane.f32.xlu1 %v1780_v59 }
 0x3af   : > { %v1761_v4 = vmul.f32 %v3629_v16, %v3629_v16 }
 0x3b1   : > { %v1783_v47 = vsel %vm1051_vm0, %v1761_v4, 0.0 }
 0x3b2   : > { %1784 = vadd.xlane.f32.xlu0 %v1783_v47 }
 0x3bf   : > { %2217 = vperm.xlu1 %2966, %v2215_v20  }
 0x3c8   : > { %2397 = vrot.lane.b32.xlu0 %v3469_v54, %s3074_s5 }
 0x42b   : > { %v1764_v61 = vpop.xlane.xlu1 %1763 }
 0x42c   : > { %v1786_v52 = vmul.f32 0.0625, %v1764_v61 }
 0x42e   : > { %v1794_v56 = vadd.f32 1e-05, %v1786_v52 }
 0x42f   : > { %v1767_v53 = vpop.xlane.xlu0 %1766  ;;  %v1770_v26 = vpop.xlane.xlu1 %1769 }
 0x430   : > { %2983 = vrsqrt.f32 %v1794_v56  ;;  %v1787_v1 = vmul.f32 0.0625, %v1767_v53  ;;  %v1788_v40 = vmul.f32 0.0625, %v1770_v26 }
 0x432   : > { %v1795_v43 = vadd.f32 1e-05, %v1787_v1  ;;  %v1796_v3 = vadd.f32 1e-05, %v1788_v40 }
 0x433   : > { %v1773_v60 = vpop.xlane.xlu0 %1772  ;;  %v1776_v42 = vpop.xlane.xlu1 %1775 }
 0x434   : > { %2985 = vrsqrt.f32 %v1795_v43  ;;  %v1789_v49 = vmul.f32 0.0625, %v1773_v60  ;;  %v1790_v5 = vmul.f32 0.0625, %v1776_v42 }
 0x435   : > { %2987 = vrsqrt.f32 %v1796_v3 }
 0x436   : > { %v1797_v54 = vadd.f32 1e-05, %v1789_v49  ;;  %v1798_v7 = vadd.f32 1e-05, %v1790_v5 }
 0x437   : > { %v1779_v22 = vpop.xlane.xlu0 %1778  ;;  %v1782_v11 = vpop.xlane.xlu1 %1781 }
 0x438   : > { %2989 = vrsqrt.f32 %v1797_v54  ;;  %v1791_v14 = vmul.f32 0.0625, %v1779_v22  ;;  %v1792_v10 = vmul.f32 0.0625, %v1782_v11 }
 0x439   : > { %2991 = vrsqrt.f32 %v1798_v7 }
 0x43a   : > { %v1799_v28 = vadd.f32 1e-05, %v1791_v14  ;;  %v1800_v62 = vadd.f32 1e-05, %v1792_v10 }
 0x43b   : > { %v1785_v33 = vpop.xlane.xlu0 %1784  ;;  %v2218_v2 = vpop.permute.xlu1 %2217 }
 0x43c   : > { %2993 = vrsqrt.f32 %v1799_v28  ;;  %v1793_v37 = vmul.f32 0.0625, %v1785_v33  ;;  %vm2219_vm15 = vcmp.eq.s32.totalorder %v2218_v2, 1 }
 0x43d   : > { %v2984_v12 = vpop.eup %2983  ;;  %2995 = vrsqrt.f32 %v1800_v62  ;;  %v3675_v35 = vsel %vm2219_vm15, %v3484_v9, -1e+30  ;;  %v3679_v59 = vsel %vm2219_vm15, %v3496_v50, -1e+30  ;;  %v3683_v4 = vsel %vm2219_vm15, %v3507_v32, -1e+30 }
 0x43e   : > { %v1810_v58 = vmul.f32 %v2984_v12, %v3596_v6  ;;  %v1801_v19 = vadd.f32 1e-05, %v1793_v37  ;;  %v3701_v50 = vsel %vm2219_vm15, %v3521_v34, -1e+30  ;;  %v2249_v20 = vsel %vm1619_vm13, %v3679_v59, -inf }
 0x43f   : > { %v2250_v52 = vrot.slane %v2249_v20, 4  ;;  %v2256_v34 = vsel %vm1619_vm13, %v3683_v4, -inf  ;;  %v2277_v5 = vsel %vm1619_vm13, %v3701_v50, -inf }
 0x440   : > { %v1825_v18 = vmul.f32 %v3646_v17, %v1810_v58  ;;  %2997 = vrsqrt.f32 %v1801_v19  ;;  %v2257_v53 = vrot.slane %v2256_v34, 4 }
 0x441   : > { %v2986_v57 = vpop.eup %2985  ;;  %v2251_v3 = vmax.f32 %v2249_v20, %v2250_v52 }
 0x442   : > { %v2988_v27 = vpop.eup %2987  ;;  %v1811_v36 = vmul.f32 %v2986_v57, %v3602_v8  ;;  %v3658_v29 = vadd.f32 %v3653_v23, %v1825_v18  ;;  %v3666_v8 = vsel %vm2219_vm15, %v3480_v48, -1e+30  ;;  %v3687_v48 = vsel %vm2219_vm15, %v3515_v46, -1e+30 }
 0x443   : > { %v1812_v6 = vmul.f32 %v2988_v27, %v3600_v45  ;;  %v3670_v45 = vsel %vm2219_vm15, %v3486_v39, -1e+30  ;;  %v3691_v39 = vsel %vm2219_vm15, %v3513_v55, -1e+30  ;;  %v2228_v32 = vsel %vm1619_vm13, %v3666_v8, -inf }
 0x444   : > { %v1826_v44 = vmul.f32 %v3646_v17, %v1811_v36  ;;  %v2229_v46 = vrot.slane %v2228_v32, 4  ;;  %v2235_v47 = vsel %vm1619_vm13, %v3670_v45, -inf  ;;  %v2242_v55 = vsel %vm1619_vm13, %v3675_v35, -inf }
 0x445   : > { %v2990_v21 = vpop.eup %2989  ;;  %v3662_v41 = vmul.f32 %v3646_v17, %v1812_v6  ;;  %v2236_v51 = vrot.slane %v2235_v47, 4  ;;  %v2243_v61 = vrot.slane %v2242_v55, 4  ;;  %v2263_v26 = vsel %vm1619_vm13, %v3687_v48, -inf }
 0x446   : > { %v1813_v25 = vmul.f32 %v2990_v21, %v3609_v24  ;;  %v3694_v24 = vadd.f32 %v3653_v23, %v1826_v44  ;;  %v2230_v56 = vmax.f32 %v2228_v32, %v2229_v46  ;;  %v2270_v1 = vsel %vm1619_vm13, %v3691_v39, -inf  ;;  %v2992_v57 = vpop.eup %2991 }
 0x447   : > { %v2237_v40 = vmax.f32 %v2235_v47, %v2236_v51  ;;  %v2244_v43 = vmax.f32 %v2242_v55, %v2243_v61  ;;  %v2264_v60 = vrot.slane %v2263_v26, 4  ;;  %v2258_v54 = vmax.f32 %v2256_v34, %v2257_v53 }
 0x448   : > { %v3697_v9 = vmul.f32 %v3646_v17, %v1813_v25  ;;  %v2231_v49 = vrot.slane %v2230_v56, 2  ;;  %v2271_v42 = vrot.slane %v2270_v1, 4  ;;  %v2252_v7 = vrot.slane %v2251_v3, 2 }
 0x449   : > { %v2238_v12 = vrot.slane %v2237_v40, 2  ;;  %v2245_v58 = vrot.slane %v2244_v43, 2  ;;  %v2265_v22 = vmax.f32 %v2263_v26, %v2264_v60  ;;  %v2259_v14 = vrot.slane %v2258_v54, 2  ;;  %v2994_v6 = vpop.eup %2993 }
 0x44a   : > { %v2232_v11 = vmax.f32 %v2230_v56, %v2231_v49  ;;  %v2272_v10 = vmax.f32 %v2270_v1, %v2271_v42  ;;  %v2278_v18 = vrot.slane %v2277_v5, 4  ;;  %v2253_v62 = vmax.f32 %v2251_v3, %v2252_v7  ;;  %v2996_v21 = vpop.eup %2995 }
 0x44b   : > { %v2239_v27 = vmax.f32 %v2237_v40, %v2238_v12  ;;  %v2246_v28 = vmax.f32 %v2244_v43, %v2245_v58  ;;  %v2266_v36 = vrot.slane %v2265_v22, 2  ;;  %v2260_v2 = vmax.f32 %v2258_v54, %v2259_v14 }
 0x44c   : > { %v2233_v33 = vrot.slane %v2232_v11, 1  ;;  %v2273_v37 = vrot.slane %v2272_v10, 2  ;;  %v2279_v44 = vmax.f32 %v2277_v5, %v2278_v18  ;;  %v2254_v32 = vrot.slane %v2253_v62, 1 }
 0x44d   : > { %v2240_v25 = vrot.slane %v2239_v27, 1  ;;  %v2247_v19 = vrot.slane %v2246_v28, 1  ;;  %v2267_v46 = vmax.f32 %v2265_v22, %v2266_v36  ;;  %v2261_v55 = vrot.slane %v2260_v2, 1  ;;  %v2998_v53 = vpop.eup %2997 }
 0x44e   : > { %v2234_v47 = vmax.f32 %v2232_v11, %v2233_v33  ;;  %v2274_v20 = vmax.f32 %v2272_v10, %v2273_v37  ;;  %v2280_v51 = vrot.slane %v2279_v44, 2  ;;  %v2255_v34 = vmax.f32 %v2253_v62, %v2254_v32 }
 0x44f   : > { %v2241_v61 = vmax.f32 %v2239_v27, %v2240_v25  ;;  %v2248_v52 = vmax.f32 %v2246_v28, %v2247_v19  ;;  %v2268_v56 = vrot.slane %v2267_v46, 1  ;;  %v2262_v26 = vmax.f32 %v2260_v2, %v2261_v55 }
 0x450   : > { %v2275_v1 = vrot.slane %v2274_v20, 1  ;;  %v2281_v40 = vmax.f32 %v2279_v44, %v2280_v51  ;;  %v2284_v43 = vsub.f32 %v3666_v8, %v2234_v47  ;;  %v2287_v54 = vsub.f32 %v3679_v59, %v2255_v34 }
 0x451   : > { %v2269_v3 = vmax.f32 %v2267_v46, %v2268_v56  ;;  %v2285_v60 = vsub.f32 %v3670_v45, %v2241_v61  ;;  %v2286_v49 = vsub.f32 %v3675_v35, %v2248_v52  ;;  %v2288_v12 = vsub.f32 %v3683_v4, %v2262_v26 }
 0x452   : > { %v2276_v42 = vmax.f32 %v2274_v20, %v2275_v1  ;;  %v2282_v5 = vrot.slane %v2281_v40, 1  ;;  %v2292_v58 = vmul.f32 1.442695, %v2284_v43  ;;  %v2298_v14 = vmul.f32 1.442695, %v2287_v54 }
 0x453   : > { %v2289_v7 = vsub.f32 %v3687_v48, %v2269_v3  ;;  %v2294_v22 = vmul.f32 1.442695, %v2285_v60  ;;  %v2296_v11 = vmul.f32 1.442695, %v2286_v49  ;;  %v2300_v18 = vmul.f32 1.442695, %v2288_v12 }
 0x454   : > { %v2283_v10 = vmax.f32 %v2281_v40, %v2282_v5  ;;  %v2290_v8 = vsub.f32 %v3691_v39, %v2276_v42  ;;  %2999 = vpow2.f32 %v2292_v58  ;;  %v1848_v35 = vpack.c.bf16 %v3694_v24, %v3658_v29 }
 0x455   : > { %3001 = vpow2.f32 %v2294_v22  ;;  %v2302_v45 = vmul.f32 1.442695, %v2289_v7  ;;  %v3730_v59 = vadd.f32 %v3653_v23, %v3662_v41  ;;  %v3735_v27 = vadd.f32 %v3653_v23, %v3697_v9 }
 0x456   : > { %v2291_v4 = vsub.f32 %v3701_v50, %v2283_v10  ;;  %3003 = vpow2.f32 %v2296_v11  ;;  %v2304_v48 = vmul.f32 1.442695, %v2290_v8  ;;  %2905 = vmatprep.mubr.msk.bf16.mxu0 %vm1051_vm0, %v1848_v35  ;;  %v1814_v39 = vmul.f32 %v2992_v57, %v3616_v31 }
 0x457   : > { %3005 = vpow2.f32 %v2298_v14  ;;  %v1815_v28 = vmul.f32 %v2994_v6, %v3620_v15  ;;  %v1816_v62 = vmul.f32 %v2996_v21, %v3622_v38  ;;  %v1849_v50 = vpack.c.bf16 %v3735_v27, %v3730_v59 }
 0x458   : > { %3007 = vpow2.f32 %v2300_v18  ;;  %v2306_v41 = vmul.f32 1.442695, %v2291_v4  ;;  %v1817_v36 = vmul.f32 %v2998_v53, %v3629_v16  ;;  %v1829_v9 = vmul.f32 %v3646_v17, %v1814_v39 }
 0x459   : > { %3009 = vpow2.f32 %v2302_v45  ;;  %v1830_v33 = vmul.f32 %v3646_v17, %v1815_v28  ;;  %v1831_v2 = vmul.f32 %v3646_v17, %v1816_v62  ;;  %2906 = vmatmul.mubr.msk.bf16.vlgmr.msra.gmra.mxu0 %vm1051_vm0, %v1849_v50 }
 0x45a   : > { %3011 = vpow2.f32 %v2304_v48  ;;  %v1832_v31 = vmul.f32 %v3646_v17, %v1817_v36  ;;  %v3750_v15 = vadd.f32 %v3653_v23, %v1829_v9 }
 0x45b   : > { %3013 = vpow2.f32 %v2306_v41  ;;  %v3753_v38 = vadd.f32 %v3653_v23, %v1830_v33  ;;  %v3756_v16 = vadd.f32 %v3653_v23, %v1831_v2 }
 0x45c   : > { %v3759_v57 = vadd.f32 %v3653_v23, %v1832_v31 }
 0x45d   : > { %v1850_v6 = vpack.c.bf16 %v3753_v38, %v3750_v15 }
 0x45e   : > { %v1851_v37 = vpack.c.bf16 %v3759_v57, %v3756_v16 }
 0x45f   : > { %2909 = vmatprep.mubr.msk.bf16.mxu0 %vm1051_vm0, %v1850_v6 }
 0x461   : > { %v3000_v17 = vpop.eup %2999  ;;  %2910 = vmatmul.mubr.msk.bf16.gmra.mxu0 %vm1051_vm0, %v1851_v37 }
 0x462   : > { %v3002_v44 = vpop.eup %3001  ;;  %v3767_v21 = vmul.f32 %v3000_v17, %v3464_v13 }
 0x463   : > { %v3004_v25 = vpop.eup %3003  ;;  %v3771_v19 = vmul.f32 %v3002_v44, %v3464_v13 }
 0x464   : > { %v3006_v23 = vpop.eup %3005  ;;  %v3774_v32 = vmul.f32 %v3004_v25, %v3464_v13  ;;  %v2316_v46 = vsel %vm1619_vm13, %v3767_v21, 0.0 }
 0x465   : > { %v3008_v47 = vpop.eup %3007  ;;  %v3779_v55 = vmul.f32 %v3006_v23, %v3464_v13  ;;  %v2317_v20 = vrot.slane %v2316_v46, 4  ;;  %v2323_v51 = vsel %vm1619_vm13, %v3771_v19, 0.0 }
 0x466   : > { %v3010_v61 = vpop.eup %3009  ;;  %v3784_v52 = vmul.f32 %v3008_v47, %v3464_v13  ;;  %v2324_v34 = vrot.slane %v2323_v51, 4  ;;  %v2330_v56 = vsel %vm1619_vm13, %v3774_v32, 0.0 }
 0x467   : > { %v3012_v53 = vpop.eup %3011  ;;  %v2318_v26 = vadd.f32 %v2317_v20, %v2316_v46  ;;  %v2331_v1 = vrot.slane %v2330_v56, 4  ;;  %v2337_v40 = vsel %vm1619_vm13, %v3779_v55, 0.0  ;;  %v3791_v43 = vmul.f32 %v3010_v61, %v3464_v13 }
 0x468   : > { %v3014_v3 = vpop.eup %3013  ;;  %v2325_v60 = vadd.f32 %v2324_v34, %v2323_v51  ;;  %v2338_v49 = vrot.slane %v2337_v40, 4  ;;  %v2344_v54 = vsel %vm1619_vm13, %v3784_v52, 0.0  ;;  %v3796_v42 = vmul.f32 %v3012_v53, %v3464_v13 }
 0x469   : > { %v2319_v5 = vrot.slane %v2318_v26, 2  ;;  %v2332_v12 = vadd.f32 %v2331_v1, %v2330_v56  ;;  %v2345_v58 = vrot.slane %v2344_v54, 4  ;;  %v3799_v7 = vmul.f32 %v3014_v3, %v3464_v13 }
 0x46a   : > { %v2326_v22 = vrot.slane %v2325_v60, 2  ;;  %v2339_v11 = vadd.f32 %v2338_v49, %v2337_v40  ;;  %v2351_v14 = vsel %vm1619_vm13, %v3791_v43, 0.0  ;;  %v2358_v10 = vsel %vm1619_vm13, %v3796_v42, 0.0 }
 0x46b   : > { %v2320_v8 = vadd.f32 %v2319_v5, %v2318_v26  ;;  %v2333_v18 = vrot.slane %v2332_v12, 2  ;;  %v2346_v45 = vadd.f32 %v2345_v58, %v2344_v54  ;;  %v2352_v35 = vrot.slane %v2351_v14, 4 }
 0x46c   : > { %v2327_v4 = vadd.f32 %v2326_v22, %v2325_v60  ;;  %v2340_v48 = vrot.slane %v2339_v11, 2  ;;  %v2359_v39 = vrot.slane %v2358_v10, 4  ;;  %v2365_v28 = vsel %vm1619_vm13, %v3799_v7, 0.0 }
 0x46d   : > { %v2321_v13 = vrot.slane %v2320_v8, 1  ;;  %v2334_v62 = vadd.f32 %v2333_v18, %v2332_v12  ;;  %v2347_v41 = vrot.slane %v2346_v45, 2  ;;  %v2353_v50 = vadd.f32 %v2352_v35, %v2351_v14 }
 0x46e   : > { %v2328_v36 = vrot.slane %v2327_v4, 1  ;;  %v2341_v9 = vadd.f32 %v2340_v48, %v2339_v11  ;;  %v2360_v33 = vadd.f32 %v2359_v39, %v2358_v10  ;;  %v2366_v2 = vrot.slane %v2365_v28, 4  ;;  %v2398_v48 = vpop.permute.xlu0 %2397 }
 0x46f   : > { %v2322_v31 = vadd.f32 %v2321_v13, %v2320_v8  ;;  %v2335_v6 = vrot.slane %v2334_v62, 1  ;;  %v2348_v37 = vadd.f32 %v2347_v41, %v2346_v45  ;;  %v2354_v17 = vrot.slane %v2353_v50, 2 }
 0x470   : > { %v2329_v44 = vadd.f32 %v2328_v36, %v2327_v4  ;;  %v2342_v25 = vrot.slane %v2341_v9, 1  ;;  %v2361_v23 = vrot.slane %v2360_v33, 2  ;;  %v2367_v46 = vadd.f32 %v2366_v2, %v2365_v28 }
 0x471   : > { %v2336_v47 = vadd.f32 %v2335_v6, %v2334_v62  ;;  %v2349_v20 = vrot.slane %v2348_v37, 1  ;;  %v2372_v51 = vmax.f32 %v2322_v31, 1e-30  ;;  %v2355_v61 = vadd.f32 %v2354_v17, %v2353_v50 }
 0x472   : > { %v2343_v34 = vadd.f32 %v2342_v25, %v2341_v9  ;;  %v2373_v56 = vmax.f32 %v2329_v44, 1e-30  ;;  %v2362_v53 = vadd.f32 %v2361_v23, %v2360_v33  ;;  %v2368_v26 = vrot.slane %v2367_v46, 2 }
 0x473   : > { %v2350_v1 = vadd.f32 %v2349_v20, %v2348_v37  ;;  %v2374_v40 = vmax.f32 %v2336_v47, 1e-30  ;;  %3015 = vrcp.f32 %v2372_v51  ;;  %v2356_v3 = vrot.slane %v2355_v61, 1 }
 0x474   : > { %v2375_v60 = vmax.f32 %v2343_v34, 1e-30  ;;  %3017 = vrcp.f32 %v2373_v56  ;;  %v2363_v49 = vrot.slane %v2362_v53, 1  ;;  %v2369_v54 = vadd.f32 %v2368_v26, %v2367_v46 }
 0x475   : > { %v2376_v5 = vmax.f32 %v2350_v1, 1e-30  ;;  %3019 = vrcp.f32 %v2374_v40  ;;  %v2357_v12 = vadd.f32 %v2356_v3, %v2355_v61 }
 0x476   : > { %3021 = vrcp.f32 %v2375_v60  ;;  %v2364_v58 = vadd.f32 %v2363_v49, %v2362_v53  ;;  %v2370_v22 = vrot.slane %v2369_v54, 1 }
 0x477   : > { %3023 = vrcp.f32 %v2376_v5  ;;  %v2377_v11 = vmax.f32 %v2357_v12, 1e-30 }
 0x478   : > { %v2371_v14 = vadd.f32 %v2370_v22, %v2369_v54  ;;  %v2378_v10 = vmax.f32 %v2364_v58, 1e-30 }
 0x479   : > { %3025 = vrcp.f32 %v2377_v11 }
 0x47a   : > { %v2379_v8 = vmax.f32 %v2371_v14, 1e-30  ;;  %3027 = vrcp.f32 %v2378_v10 }
 0x47c   : > { %3029 = vrcp.f32 %v2379_v8 }
 0x480   : > { %v3016_v18 = vpop.eup %3015 }
 0x481   : > { %v3018_v45 = vpop.eup %3017  ;;  %v2388_v35 = vmul.f32 %v3016_v18, %v3767_v21 }
 0x482   : > { %v3020_v4 = vpop.eup %3019  ;;  %v2389_v39 = vmul.f32 %v3018_v45, %v3771_v19 }
 0x483   : > { %v3022_v28 = vpop.eup %3021  ;;  %v2390_v13 = vmul.f32 %v3020_v4, %v3774_v32  ;;  %v2400_v62 = vmul.f32 %v2398_v48, %v2388_v35 }
 0x484   : > { %v3024_v41 = vpop.eup %3023  ;;  %v2391_v50 = vmul.f32 %v3022_v28, %v3779_v55  ;;  %v2401_v36 = vmul.f32 %v2398_v48, %v2389_v39 }
 0x485   : > { %v2392_v9 = vmul.f32 %v3024_v41, %v3784_v52  ;;  %v2402_v33 = vmul.f32 %v2398_v48, %v2390_v13  ;;  %v2408_v2 = vsel %vm1619_vm13, %v2400_v62, 0.0 }
 0x486   : > { %v3026_v31 = vpop.eup %3025  ;;  %v2403_v6 = vmul.f32 %v2398_v48, %v2391_v50  ;;  %v2409_v21 = vrot.slane %v2408_v2, 4  ;;  %v2415_v37 = vsel %vm1619_vm13, %v2401_v36, 0.0 }
 0x487   : > { %v3028_v17 = vpop.eup %3027  ;;  %v2404_v19 = vmul.f32 %v2398_v48, %v2392_v9  ;;  %v2416_v44 = vrot.slane %v2415_v37, 4  ;;  %v2422_v32 = vsel %vm1619_vm13, %v2402_v33, 0.0  ;;  %v2393_v25 = vmul.f32 %v3026_v31, %v3791_v43 }
 0x488   : > { %v2410_v23 = vadd.f32 %v2409_v21, %v2408_v2  ;;  %v2423_v55 = vrot.slane %v2422_v32, 4  ;;  %v2394_v46 = vmul.f32 %v3028_v17, %v3796_v42  ;;  %v2429_v52 = vsel %vm1619_vm13, %v2403_v6, 0.0  ;;  %v2975_v17 = vld [vmem:[%s3979_s16 + $0x8] sm:$0xff]  }
 0x489   : > { %v3030_v47 = vpop.eup %3029  ;;  %v2417_v20 = vadd.f32 %v2416_v44, %v2415_v37  ;;  %v2405_v51 = vmul.f32 %v2398_v48, %v2393_v25  ;;  %v2430_v61 = vrot.slane %v2429_v52, 4  ;;  %v2436_v34 = vsel %vm1619_vm13, %v2404_v19, 0.0  ;;  %2913 = vmatprep.subr.bf16.mxu1 %v2975_v17 }
 0x48a   : > { %v2395_v56 = vmul.f32 %v3030_v47, %v3799_v7  ;;  %v2406_v53 = vmul.f32 %v2398_v48, %v2394_v46  ;;  %v2411_v26 = vrot.slane %v2410_v23, 2  ;;  %v2424_v1 = vadd.f32 %v2423_v55, %v2422_v32  ;;  %2914 = vmatpush3.bf16.msra.mxu1 %v2975_v17 }
 0x48b   : > { %v2418_v43 = vrot.slane %v2417_v20, 2  ;;  %v2431_v40 = vadd.f32 %v2430_v61, %v2429_v52  ;;  %v2437_v3 = vrot.slane %v2436_v34, 4  ;;  %v2443_v42 = vsel %vm1619_vm13, %v2405_v51, 0.0 }
 0x48c   : > { %v2407_v60 = vmul.f32 %v2398_v48, %v2395_v56  ;;  %v2412_v49 = vadd.f32 %v2411_v26, %v2410_v23  ;;  %v2425_v54 = vrot.slane %v2424_v1, 2  ;;  %v2444_v5 = vrot.slane %v2443_v42, 4 }
 0x48d   : > { %v2419_v12 = vadd.f32 %v2418_v43, %v2417_v20  ;;  %v2432_v58 = vrot.slane %v2431_v40, 2  ;;  %v2438_v22 = vadd.f32 %v2437_v3, %v2436_v34  ;;  %v2450_v11 = vsel %vm1619_vm13, %v2406_v53, 0.0 }
 0x48e   : > { %v2413_v14 = vrot.slane %v2412_v49, 1  ;;  %v2426_v10 = vadd.f32 %v2425_v54, %v2424_v1  ;;  %v2445_v7 = vadd.f32 %v2444_v5, %v2443_v42  ;;  %v2451_v8 = vrot.slane %v2450_v11, 4  ;;  %v2976_v1 = vld [vmem:[%s3979_s16] sm:$0xff]  }
 0x48f   : > { %v2420_v18 = vrot.slane %v2419_v12, 1  ;;  %v2433_v45 = vadd.f32 %v2432_v58, %v2431_v40  ;;  %v2439_v35 = vrot.slane %v2438_v22, 2  ;;  %v2457_v4 = vsel %vm1619_vm13, %v2407_v60, 0.0  ;;  %2915 = vmatprep.subr.bf16.mxu1 %v2976_v1  ;;  %v2833_v60 = vld [vmem:[%s3978_s15] ss:$0 sm:$0xff] }
 0x490   : > { %v2414_v39 = vadd.f32 %v2413_v14, %v2412_v49  ;;  %v2427_v28 = vrot.slane %v2426_v10, 1  ;;  %v2446_v48 = vrot.slane %v2445_v7, 2  ;;  %v2452_v13 = vadd.f32 %v2451_v8, %v2450_v11  ;;  %2916 = vmatpush3.bf16.msra.mxu1 %v2976_v1 }
 0x491   : > { %v2421_v62 = vadd.f32 %v2420_v18, %v2419_v12  ;;  %v2434_v41 = vrot.slane %v2433_v45, 1  ;;  %v2440_v50 = vadd.f32 %v2439_v35, %v2438_v22  ;;  %v2458_v36 = vrot.slane %v2457_v4, 4 }
 0x492   : > { %v2428_v9 = vadd.f32 %v2427_v28, %v2426_v10  ;;  %v2447_v33 = vadd.f32 %v2446_v48, %v2445_v7  ;;  %v2453_v2 = vrot.slane %v2452_v13, 2 }
 0x493   : > { %v2435_v31 = vadd.f32 %v2434_v41, %v2433_v45  ;;  %v2441_v6 = vrot.slane %v2440_v50, 1  ;;  %v2459_v21 = vadd.f32 %v2458_v36, %v2457_v4  ;;  %v2473_v37 = vsel %vm2472_vm1, %v2421_v62, %v2414_v39 }
 0x494   : > { %v2448_v19 = vrot.slane %v2447_v33, 1  ;;  %v2454_v44 = vadd.f32 %v2453_v2, %v2452_v13  ;;  %v2475_v32 = vsel %vm2474_vm2, %v2428_v9, %v2473_v37  ;;  %v2977_v2 = vld [vmem:[%s3973_s10 + $0x8] sm:$0xff]  }
 0x495   : > { %v2442_v25 = vadd.f32 %v2441_v6, %v2440_v50  ;;  %v2460_v23 = vrot.slane %v2459_v21, 2  ;;  %v2477_v55 = vsel %vm2476_vm3, %v2435_v31, %v2475_v32  ;;  %v3076_v31 = vmov 0.0   ;;  %v2978_v6 = vld [vmem:[%s3973_s10] sm:$0xff]  }
 0x496   : > { %v2449_v46 = vadd.f32 %v2448_v19, %v2447_v33  ;;  %v2455_v52 = vrot.slane %v2454_v44, 1  ;;  %2925 = vmatprep.subr.bf16.mxu0 %v3076_v31  ;;  %2929 = vmatprep.mubr.msk.bf16.mxu0 %vm3077_vm8, %v3076_v31  ;;  %v2839_v19 = vld [vmem:[%s3980_s17] ss:$0 sm:$0xff] }
 0x497   : > { %v2461_v47 = vadd.f32 %v2460_v23, %v2459_v21  ;;  %v2479_v20 = vsel %vm2478_vm4, %v2442_v25, %v2477_v55  ;;  %2926 = vmatpush3.bf16.msra.mxu0 %v2977_v2 }
 0x498   : > { %v2456_v51 = vadd.f32 %v2455_v52, %v2454_v44  ;;  %v2481_v61 = vsel %vm2480_vm5, %v2449_v46, %v2479_v20  ;;  %2927 = vmatprep.subr.bf16.mxu0 %v3076_v31 }
 0x499   : > { %v2462_v34 = vrot.slane %v2461_v47, 1 }
 0x49a   : > { %v2483_v56 = vsel %vm2482_vm6, %v2456_v51, %v2481_v61 }
 0x49b   : > { %v2463_v53 = vadd.f32 %v2462_v34, %v2461_v47  ;;  %2928 = vmatpush3.bf16.msra.mxu0 %v2978_v6 }
 0x49d   : > { %v2485_v26 = vsel %vm2484_vm7, %v2463_v53, %v2483_v56 }
 0x49e   : > { %2486 = vrot.lane.b32.xlu1 %v2485_v26, %s3074_s5 }
 0x510   : > { %v2487_v43 = vpop.permute.xlu1 %2486 }
 0x511   : > { %v2489_v40 = vmul.f32 %v2487_v43, %v3533_v0 }
 0x513   : > { %2491 = vrot.lane.b32.xlu1 %v2489_v40, %s3074_s5 }
 0x519   : > { %v2907_v3 = vpop.f32.mrf.mxu0 }
 0x51a   : > { %v1922_v12 = vadd.f32 %v2907_v3, %v2833_v60 }
 0x51b   : > { %v1913_v42 = vpop.f32.mrf.mxu0 }
 0x51c   : > { %v1914_v54 = vadd.f32 %v2833_v60, %v1913_v42  ;;  %v1946_v8 = vmax.f32 %v1922_v12, 0.0 }
 0x51d   : > { %v2908_v49 = vpop.f32.mrf.mxu0 }
 0x51e   : > { %v1925_v5 = vadd.f32 %v2908_v49, %v2833_v60  ;;  %v1944_v10 = vmax.f32 %v1914_v54, 0.0 }
 0x51f   : > { %v1916_v58 = vpop.f32.mrf.mxu0 }
 0x520   : > { %v1917_v22 = vadd.f32 %v2833_v60, %v1916_v58  ;;  %v1947_v11 = vmax.f32 %v1925_v5, 0.0 }
 0x521   : > { %v2911_v14 = vpop.f32.mrf.mxu0 }
 0x522   : > { %v1945_v7 = vmax.f32 %v1917_v22, 0.0  ;;  %v1953_v45 = vpack.c.bf16 %v1947_v11, %v1946_v8  ;;  %v1938_v28 = vadd.f32 %v2911_v14, %v2833_v60 }
 0x523   : > { %v1929_v0 = vpop.f32.mrf.mxu0 }
 0x524   : > { %v1952_v18 = vpack.c.bf16 %v1945_v7, %v1944_v10  ;;  %v1930_v4 = vadd.f32 %v2833_v60, %v1929_v0  ;;  %v1950_v36 = vmax.f32 %v1938_v28, 0.0 }
 0x525   : > { %v2912_v35 = vpop.f32.mrf.mxu0 }
 0x526   : > { %v1941_v39 = vadd.f32 %v2912_v35, %v2833_v60  ;;  %2917 = vmatprep.mubr.msk.bf16.mxu1 %vm1619_vm13, %v1952_v18  ;;  %v1948_v41 = vmax.f32 %v1930_v4, 0.0 }
 0x527   : > { %v1932_v48 = vpop.f32.mrf.mxu0  ;;  %2918 = vmatmul.mubr.msk.bf16.vlgmr.msra.gmra.mxu1 %vm1619_vm13, %v1953_v45 }
 0x528   : > { %v1933_v13 = vadd.f32 %v2833_v60, %v1932_v48  ;;  %v1951_v62 = vmax.f32 %v1941_v39, 0.0 }
 0x52a   : > { %v1949_v50 = vmax.f32 %v1933_v13, 0.0  ;;  %v1955_v33 = vpack.c.bf16 %v1951_v62, %v1950_v36 }
 0x52c   : > { %v1954_v9 = vpack.c.bf16 %v1949_v50, %v1948_v41 }
 0x52e   : > { %2921 = vmatprep.mubr.msk.bf16.mxu1 %vm1619_vm13, %v1954_v9 }
 0x52f   : > { %2922 = vmatmul.mubr.msk.bf16.gmra.mxu1 %vm1619_vm13, %v1955_v33 }
 0x585   : > { %v2492_v21 = vpop.permute.xlu1 %2491 }
 0x586   : > { %v2494_v37 = vadd.f32 %v2492_v21, %v3555_v30 }
 0x588   : > { %v2495_v17 = vpack.c.bf16 %v2494_v37, %v2494_v37 }
 0x58a   : > { %2508 = vrot.lane.b32.xlu0 %v2495_v17, %s3078_s25 }
 0x5e7   : > { %v2919_v44 = vpop.f32.mrf.mxu1 }
 0x5e8   : > { %v2034_v32 = vadd.f32 %v2919_v44, %v2839_v19 }
 0x5e9   : > { %v2025_v25 = vpop.f32.mrf.mxu1 }
 0x5ea   : > { %v2026_v23 = vadd.f32 %v2839_v19, %v2025_v25  ;;  %v2058_v55 = vadd.f32 %v2034_v32, %v3730_v59 }
 0x5eb   : > { %v2920_v46 = vpop.f32.mrf.mxu1 }
 0x5ec   : > { %v2037_v52 = vadd.f32 %v2920_v46, %v2839_v19  ;;  %v2070_v47 = vsel %vm1051_vm0, %v2058_v55, 0.0  ;;  %v2056_v20 = vadd.f32 %v2026_v23, %v3658_v29 }
 0x5ed   : > { %v2028_v30 = vpop.f32.mrf.mxu1  ;;  %2071 = vadd.xlane.f32.xlu0 %v2070_v47 }
 0x5ee   : > { %v2029_v51 = vadd.f32 %v2839_v19, %v2028_v30  ;;  %v2064_v61 = vsel %vm1051_vm0, %v2056_v20, 0.0  ;;  %v2059_v34 = vadd.f32 %v2037_v52, %v3735_v27 }
 0x5ef   : > { %v2923_v56 = vpop.f32.mrf.mxu1  ;;  %2065 = vadd.xlane.f32.xlu1 %v2064_v61 }
 0x5f0   : > { %v2057_v53 = vadd.f32 %v2029_v51, %v3694_v24  ;;  %v2050_v1 = vadd.f32 %v2923_v56, %v2839_v19  ;;  %v2073_v43 = vsel %vm1051_vm0, %v2059_v34, 0.0  ;;  %v2848_v51 = vld [vmem:[%s3974_s11] ss:$0 sm:$0xff] }
 0x5f1   : > { %v2041_v26 = vpop.f32.mrf.mxu1 }
 0x5f2   : > { %v2042_v59 = vadd.f32 %v2839_v19, %v2041_v26  ;;  %v2067_v40 = vsel %vm1051_vm0, %v2057_v53, 0.0  ;;  %v2062_v54 = vadd.f32 %v2050_v1, %v3756_v16 }
 0x5f3   : > { %v2924_v3 = vpop.f32.mrf.mxu1  ;;  %2074 = vadd.xlane.f32.xlu1 %v2073_v43  ;;  %2068 = vadd.xlane.f32.xlu0 %v2067_v40 }
 0x5f4   : > { %v2060_v29 = vadd.f32 %v2042_v59, %v3750_v15  ;;  %v2053_v60 = vadd.f32 %v2924_v3, %v2839_v19  ;;  %v2082_v12 = vsel %vm1051_vm0, %v2062_v54, 0.0 }
 0x5f5   : > { %v2044_v42 = vpop.f32.mrf.mxu1 }
 0x5f6   : > { %v2045_v49 = vadd.f32 %v2839_v19, %v2044_v42  ;;  %v2076_v27 = vsel %vm1051_vm0, %v2060_v29, 0.0  ;;  %v2063_v58 = vadd.f32 %v2053_v60, %v3759_v57 }
 0x5f7   : > { %2077 = vadd.xlane.f32.xlu0 %v2076_v27 }
 0x5f8   : > { %v2061_v24 = vadd.f32 %v2045_v49, %v3753_v38  ;;  %v2085_v15 = vsel %vm1051_vm0, %v2063_v58, 0.0 }
 0x5fa   : > { %v2079_v5 = vsel %vm1051_vm0, %v2061_v24, 0.0 }
 0x5fb   : > { %2080 = vadd.xlane.f32.xlu1 %v2079_v5  ;;  %2083 = vadd.xlane.f32.xlu0 %v2082_v12 }
 0x5fc   : > { %v2509_v22 = vpop.permute.xlu0 %2508 }
 0x5fd   : > { %2930 = vmatmul.mubr.msk.bf16.vlgmr.msra.gmra.mxu0 %vm1619_vm13, %v2509_v22 }
 0x5ff   : > { %2086 = vadd.xlane.f32.xlu1 %v2085_v15 }
 0x676   : > { %v2072_v11 = vpop.xlane.xlu0 %2071 }
 0x677   : > { %v2090_v14 = vmul.f32 0.0625, %v2072_v11 }
 0x678   : > { %v2066_v16 = vpop.xlane.xlu1 %2065 }
 0x679   : > { %v3868_v10 = vsub.f32 %v2058_v55, %v2090_v14  ;;  %v2088_v38 = vmul.f32 0.0625, %v2066_v16 }
 0x67b   : > { %v3870_v7 = vsub.f32 %v2056_v20, %v2088_v38  ;;  %v2106_v8 = vmul.f32 %v3868_v10, %v3868_v10 }
 0x67c   : > { %v2069_v57 = vpop.xlane.xlu0 %2068  ;;  %v2075_v0 = vpop.xlane.xlu1 %2074 }
 0x67d   : > { %v2089_v18 = vmul.f32 0.0625, %v2069_v57  ;;  %v2091_v45 = vmul.f32 0.0625, %v2075_v0  ;;  %v2118_v35 = vsel %vm1051_vm0, %v2106_v8, 0.0  ;;  %v2104_v4 = vmul.f32 %v3870_v7, %v3870_v7  ;;  %v2846_v57 = vld [vmem:[%s3981_s18] ss:$0 sm:$0xff] }
 0x67e   : > { %2119 = vadd.xlane.f32.xlu0 %v2118_v35  ;;  %v2847_v35 = vld [vmem:[%s3982_s19] ss:$0 sm:$0xff] }
 0x67f   : > { %v3877_v39 = vsub.f32 %v2057_v53, %v2089_v18  ;;  %v3879_v28 = vsub.f32 %v2059_v34, %v2091_v45  ;;  %v2112_v62 = vsel %vm1051_vm0, %v2104_v4, 0.0 }
 0x680   : > { %v2078_v48 = vpop.xlane.xlu0 %2077 }
 0x681   : > { %v2092_v13 = vmul.f32 0.0625, %v2078_v48  ;;  %v2107_v41 = vmul.f32 %v3879_v28, %v3879_v28  ;;  %v2105_v9 = vmul.f32 %v3877_v39, %v3877_v39 }
 0x682   : > { %2113 = vadd.xlane.f32.xlu0 %v2112_v62 }
 0x683   : > { %v3884_v50 = vsub.f32 %v2060_v29, %v2092_v13  ;;  %v2121_v36 = vsel %vm1051_vm0, %v2107_v41, 0.0  ;;  %v2115_v44 = vsel %vm1051_vm0, %v2105_v9, 0.0 }
 0x684   : > { %v2084_v33 = vpop.xlane.xlu0 %2083  ;;  %2122 = vadd.xlane.f32.xlu1 %v2121_v36  ;;  %v2081_v2 = vpop.xlane.xlu1 %2080 }
 0x685   : > { %v2094_v31 = vmul.f32 0.0625, %v2084_v33  ;;  %v2093_v6 = vmul.f32 0.0625, %v2081_v2  ;;  %v2108_v21 = vmul.f32 %v3884_v50, %v3884_v50 }
 0x687   : > { %v3891_v37 = vsub.f32 %v2062_v54, %v2094_v31  ;;  %v3893_v17 = vsub.f32 %v2061_v24, %v2093_v6  ;;  %v2124_v19 = vsel %vm1051_vm0, %v2108_v21, 0.0 }
 0x688   : > { %2125 = vadd.xlane.f32.xlu0 %v2124_v19  ;;  %2116 = vadd.xlane.f32.xlu1 %v2115_v44  ;;  %v2087_v32 = vpop.xlane.xlu1 %2086 }
 0x689   : > { %v2095_v25 = vmul.f32 0.0625, %v2087_v32  ;;  %v2110_v23 = vmul.f32 %v3891_v37, %v3891_v37  ;;  %v2109_v55 = vmul.f32 %v3893_v17, %v3893_v17 }
 0x68b   : > { %v3901_v46 = vsub.f32 %v2063_v58, %v2095_v25  ;;  %v2130_v52 = vsel %vm1051_vm0, %v2110_v23, 0.0  ;;  %v2127_v47 = vsel %vm1051_vm0, %v2109_v55, 0.0 }
 0x68c   : > { %2131 = vadd.xlane.f32.xlu0 %v2130_v52  ;;  %2128 = vadd.xlane.f32.xlu1 %v2127_v47 }
 0x68d   : > { %v2111_v20 = vmul.f32 %v3901_v46, %v3901_v46 }
 0x68f   : > { %v2133_v30 = vsel %vm1051_vm0, %v2111_v20, 0.0 }
 0x690   : > { %2134 = vadd.xlane.f32.xlu1 %v2133_v30 }
 0x6bd   : > { %v2559_v61 = vpop.f32.mrf.mxu0 }
 0x6be   : > { %v2560_v34 = vadd.f32 %v2848_v51, %v2559_v61 }
 0x6bf   : > { %v2931_v56 = vpop.f32.mrf.mxu0 }
 0x6c0   : > { %v2565_v53 = vmul.f32 %v2560_v34, %v3455_v63 }
 0x6c1   : > { %v2562_v26 = vpop.f32.mrf.mxu0 }
 0x6c2   : > { %2566 = vst.msk [vmem:[%s856_s24] sm:$0xff] %vm1619_vm13, %v2565_v53 }
 0x6c3   : > { %v2932_v1 = vpop.f32.mrf.mxu0 }
 0x707   : > { %v2120_v59 = vpop.xlane.xlu0 %2119 }
 0x708   : > { %v2138_v43 = vmul.f32 0.0625, %v2120_v59 }
 0x70a   : > { %v2146_v40 = vadd.f32 1e-05, %v2138_v43 }
 0x70b   : > { %v2114_v3 = vpop.xlane.xlu0 %2113 }
 0x70c   : > { %3031 = vrsqrt.f32 %v2146_v40  ;;  %v2136_v29 = vmul.f32 0.0625, %v2114_v3 }
 0x70d   : > { %v2123_v42 = vpop.xlane.xlu1 %2122 }
 0x70e   : > { %v2144_v60 = vadd.f32 1e-05, %v2136_v29  ;;  %v2139_v49 = vmul.f32 0.0625, %v2123_v42 }
 0x710   : > { %3033 = vrsqrt.f32 %v2144_v60  ;;  %v2147_v27 = vadd.f32 1e-05, %v2139_v49 }
 0x711   : > { %v2126_v54 = vpop.xlane.xlu0 %2125  ;;  %v2117_v24 = vpop.xlane.xlu1 %2116 }
 0x712   : > { %3035 = vrsqrt.f32 %v2147_v27  ;;  %v2140_v5 = vmul.f32 0.0625, %v2126_v54  ;;  %v2137_v63 = vmul.f32 0.0625, %v2117_v24 }
 0x714   : > { %v2148_v12 = vadd.f32 1e-05, %v2140_v5  ;;  %v2145_v58 = vadd.f32 1e-05, %v2137_v63 }
 0x715   : > { %v2132_v22 = vpop.xlane.xlu0 %2131  ;;  %v2129_v15 = vpop.xlane.xlu1 %2128 }
 0x716   : > { %3037 = vrsqrt.f32 %v2148_v12  ;;  %v2142_v11 = vmul.f32 0.0625, %v2132_v22  ;;  %v2141_v14 = vmul.f32 0.0625, %v2129_v15 }
 0x717   : > { %3039 = vrsqrt.f32 %v2145_v58 }
 0x718   : > { %v2150_v16 = vadd.f32 1e-05, %v2142_v11  ;;  %v2149_v38 = vadd.f32 1e-05, %v2141_v14 }
 0x719   : > { %v3032_v8 = vpop.eup %3031  ;;  %v2135_v0 = vpop.xlane.xlu1 %2134 }
 0x71a   : > { %v2162_v18 = vmul.f32 %v3032_v8, %v3868_v10  ;;  %3041 = vrsqrt.f32 %v2150_v16  ;;  %v2143_v45 = vmul.f32 0.0625, %v2135_v0 }
 0x71b   : > { %3043 = vrsqrt.f32 %v2149_v38 }
 0x71c   : > { %v2177_v4 = vmul.f32 %v2846_v57, %v2162_v18  ;;  %v2151_v48 = vadd.f32 1e-05, %v2143_v45 }
 0x71d   : > { %v3034_v13 = vpop.eup %3033 }
 0x71e   : > { %v2192_v62 = vadd.f32 %v2847_v35, %v2177_v4  ;;  %v2160_v41 = vmul.f32 %v3034_v13, %v3870_v7  ;;  %3045 = vrsqrt.f32 %v2151_v48 }
 0x71f   : > { %v3036_v36 = vpop.eup %3035 }
 0x720   : > { %v2200_v10 = vpack.c.bf16 %v2192_v62, %v2192_v62  ;;  %v2175_v9 = vmul.f32 %v2846_v57, %v2160_v41  ;;  %v2163_v33 = vmul.f32 %v3036_v36, %v3879_v28 }
 0x722   : > { %2208 = vst.msk [vmem:[%s3930_s0 + $0x8] sm:$0xf] %vm1190_vm12, %v2200_v10  ;;  %v2190_v2 = vadd.f32 %v2847_v35, %v2175_v9  ;;  %v2178_v31 = vmul.f32 %v2846_v57, %v2163_v33 }
 0x723   : > { %v3038_v7 = vpop.eup %3037 }
 0x724   : > { %v3040_v6 = vpop.eup %3039  ;;  %v2198_v21 = vpack.c.bf16 %v2190_v2, %v2190_v2  ;;  %v2193_v19 = vadd.f32 %v2847_v35, %v2178_v31  ;;  %v2164_v44 = vmul.f32 %v3038_v7, %v3884_v50 }
 0x725   : > { %v2161_v32 = vmul.f32 %v3040_v6, %v3877_v39 }
 0x726   : > { %2206 = vst.msk [vmem:[%s3930_s0] sm:$0xf] %vm1190_vm12, %v2198_v21  ;;  %v2201_v25 = vpack.c.bf16 %v2193_v19, %v2193_v19  ;;  %v2179_v23 = vmul.f32 %v2846_v57, %v2164_v44 }
 0x727   : > { %v3042_v55 = vpop.eup %3041  ;;  %v2176_v28 = vmul.f32 %v2846_v57, %v2161_v32 }
 0x728   : > { %v3044_v52 = vpop.eup %3043  ;;  %2209 = vst.msk [vmem:[%s3930_s0 + $0xc] sm:$0xf] %vm1190_vm12, %v2201_v25  ;;  %v2194_v47 = vadd.f32 %v2847_v35, %v2179_v23  ;;  %v2166_v20 = vmul.f32 %v3042_v55, %v3891_v37 }
 0x729   : > { %v2191_v30 = vadd.f32 %v2847_v35, %v2176_v28  ;;  %v2165_v50 = vmul.f32 %v3044_v52, %v3893_v17 }
 0x72a   : > { %v2202_v39 = vpack.c.bf16 %v2194_v47, %v2194_v47  ;;  %v2181_v51 = vmul.f32 %v2846_v57, %v2166_v20 }
 0x72b   : > { %v3046_v61 = vpop.eup %3045  ;;  %v2199_v34 = vpack.c.bf16 %v2191_v30, %v2191_v30  ;;  %v2180_v56 = vmul.f32 %v2846_v57, %v2165_v50 }
 0x72c   : > { %2210 = vst.msk [vmem:[%s3930_s0 + $0x10] sm:$0xf] %vm1190_vm12, %v2202_v39  ;;  %v2196_v53 = vadd.f32 %v2847_v35, %v2181_v51  ;;  %v2167_v26 = vmul.f32 %v3046_v61, %v3901_v46 }
 0x72d   : > { %2207 = vst.msk [vmem:[%s3930_s0 + $0x4] sm:$0xf] %vm1190_vm12, %v2199_v34  ;;  %v2195_v1 = vadd.f32 %v2847_v35, %v2180_v56 }
 0x72e   : > { %v2204_v37 = vpack.c.bf16 %v2196_v53, %v2196_v53  ;;  %v2182_v59 = vmul.f32 %v2846_v57, %v2167_v26 }
 0x72f   : > { %v2203_v43 = vpack.c.bf16 %v2195_v1, %v2195_v1 }
 0x730   : > { %2212 = vst.msk [vmem:[%s3930_s0 + $0x18] sm:$0xf] %vm1190_vm12, %v2204_v37  ;;  %v2197_v17 = vadd.f32 %v2847_v35, %v2182_v59 }
 0x731   : > { %2211 = vst.msk [vmem:[%s3930_s0 + $0x14] sm:$0xf] %vm1190_vm12, %v2203_v43 }
 0x732   : > { %v2205_v40 = vpack.c.bf16 %v2197_v17, %v2197_v17 }
 0x734   : > { %2213 = vst.msk [vmem:[%s3930_s0 + $0x1c] sm:$0xf] %vm1190_vm12, %v2205_v40 }
 0x735 PF: > { %s33_s29 = sadd.s32 1, %s3069_s29   ;;  %s4000_s3 = smov %s3065_s28 }
 0x736   : > { %p30_p5 = scmp.ge.s32.totalorder %s33_s29, 4   ;;  %s4001_s28 = smov %s4003_s30 }
 0x738   :  { %32 = sbr.rel (!%p30_p5) target bundleno = 8 (0x8), region = 169 }

</bundles_post_ra>
